<compile_context>
chip_gen: v5e
topology: v5e:2x2
jax: 0.10.0
libtpu: 0.0.40
codegen_flags: <defaults>
</compile_context>

<pallas_src>
import functools

import jax
import jax.numpy as jnp
from jax.experimental import pallas as pl
from jax.experimental.pallas import tpu as pltpu


def _round_up(v, m):
    return ((v + m - 1) // m) * m


_VMEM_LIMIT = 32 * 1024 * 1024  # safe on v5e (raises 16MiB default) and v7x (64MiB phys)


# ----------------------------- Pallas kernels ------------------------------

def _pointconv_kernel(x_ref, w_ref, b_ref, o_ref, *, relu):
    # x: (1, tm, Cin), w: (Cin, Cout) bf16, b: (1, 1, Cout) f32
    x = x_ref[0].astype(jnp.bfloat16)
    y = jnp.dot(x, w_ref[...], preferred_element_type=jnp.float32)
    y = y + b_ref[0]
    if relu:
        y = jnp.maximum(y, 0.0)
    o_ref[0] = y.astype(o_ref.dtype)


def _pointconv_gmax_kernel(x_ref, w_ref, b_ref, o_ref, *, n_valid, needs_mask):
    # Fused conv1x1 + bias + relu + running max over the point (N) axis.
    # Grid: (B, Cout-tiles, N-tiles); N is last / "arbitrary"; the (1,1,tc)
    # output block is resident across the N axis (accumulator pattern).
    n = pl.program_id(2)
    x = x_ref[0].astype(jnp.bfloat16)
    y = jnp.dot(x, w_ref[...], preferred_element_type=jnp.float32)
    y = jnp.maximum(y + b_ref[0], 0.0)
    if needs_mask:
        # Only the last N tile can contain padded / out-of-bounds rows; 0 is a
        # neutral element for the max because conv5 ends in ReLU (values >= 0).
        tm = x_ref.shape[1]
        is_last = n == pl.num_programs(2) - 1
        rows = jax.lax.broadcasted_iota(jnp.int32, (tm, 1), 0) + n * tm
        keep = jnp.logical_or(jnp.logical_not(is_last), rows < n_valid)
        y = jnp.where(keep, y, 0.0)
    t = jnp.max(y, axis=0, keepdims=True)  # (1, tc)

    @pl.when(n == 0)
    def _():
        o_ref[0] = t

    @pl.when(n > 0)
    def _():
        o_ref[0] = jnp.maximum(o_ref[0], t)


def _neg_pdist_kernel(xi_ref, xj_ref, o_ref, *, n_valid, needs_mask):
    # -(||xi - xj||^2) = 2 xi.xj - ||xi||^2 - ||xj||^2, one (ti, tj) tile.
    # bf16 operands for the MXU; norms / accumulation stay f32.
    xi = xi_ref[0]
    xj = xj_ref[0]
    xx = jax.lax.dot_general(xi.astype(jnp.bfloat16), xj.astype(jnp.bfloat16),
                             (((1,), (1,)), ((), ())),
                             preferred_element_type=jnp.float32)
    xif = xi.astype(jnp.float32)
    xjf = xj.astype(jnp.float32)
    sqi = jnp.sum(xif * xif, axis=1, keepdims=True)   # (ti, 1)
    sqj = jnp.sum(xjf * xjf, axis=1, keepdims=True)   # (tj, 1)
    d = 2.0 * xx - sqi - jnp.transpose(sqj)
    if needs_mask:
        # Padded points must never be selected as neighbors: mask their
        # columns (only the last j tile can contain them).
        j = pl.program_id(2)
        tn = xj_ref.shape[1]
        is_last = j == pl.num_programs(2) - 1
        cols = jax.lax.broadcasted_iota(jnp.int32, (1, tn), 1) + j * tn
        keep = jnp.logical_or(jnp.logical_not(is_last), cols < n_valid)
        d = jnp.where(keep, d, jnp.finfo(jnp.float32).min)
    o_ref[0] = d


def _fused_head_kernel(x_ref, w6_ref, bias6_ref, w7_ref, b7_ref, w8_ref, b8_ref,
                       o_ref):
    # Layers 6 -> 7 -> 8 fused per point-tile; intermediates stay in VMEM.
    x = x_ref[0].astype(jnp.bfloat16)                               # (tm, 64)
    h = jnp.dot(x, w6_ref[...], preferred_element_type=jnp.float32)
    h = jnp.maximum(h + bias6_ref[0], 0.0)                          # (tm, 512)
    h = jnp.dot(h.astype(jnp.bfloat16), w7_ref[...],
                preferred_element_type=jnp.float32)
    h = jnp.maximum(h + b7_ref[0], 0.0)                             # (tm, 128)
    h = jnp.dot(h.astype(jnp.bfloat16), w8_ref[...],
                preferred_element_type=jnp.float32)
    h = jnp.maximum(h + b8_ref[0], 0.0)                             # (tm, Cout)
    o_ref[0] = h.astype(o_ref.dtype)


# ------------------------------ Pallas wrappers -----------------------------
# All wrappers assume the point axis (N) is already a multiple of 8 (done once
# at the top of gann_forward); n_valid marks the logically valid rows.

def pointconv(x_bnc, w, bias3, *, relu=True, tm_max=1024, out_dtype=jnp.bfloat16):
    """(B, N, Cin) -> (B, N, Cout) = relu(x @ w + b), bf16 output in HBM."""
    B, N, Cin = x_bnc.shape
    Cout = w.shape[1]
    tm = min(tm_max, N)
    grid_n = pl.cdiv(N, tm)
    return pl.pallas_call(
        functools.partial(_pointconv_kernel, relu=relu),
        out_shape=jax.ShapeDtypeStruct((B, N, Cout), out_dtype),
        grid=(B, grid_n),
        in_specs=[
            pl.BlockSpec((1, tm, Cin), lambda b, i: (b, i, 0)),
            pl.BlockSpec((Cin, Cout), lambda b, i: (0, 0)),
            pl.BlockSpec((1, 1, Cout), lambda b, i: (0, 0, 0)),
        ],
        out_specs=pl.BlockSpec((1, tm, Cout), lambda b, i: (b, i, 0)),
        compiler_params=pltpu.CompilerParams(
            dimension_semantics=("parallel", "parallel"),
            vmem_limit_bytes=_VMEM_LIMIT),
    )(x_bnc, w, bias3)


def pointconv_global_max(x_bnc, w, bias3, n_valid, *, tm_max=512, tc_max=256):
    """(B, N, Cin) -> (B, Cout) = max_n relu(x @ w + b).  The (B, N, Cout)
    activation is never materialized; Cout is tiled for a second parallel axis."""
    B, N, Cin = x_bnc.shape
    Cout = w.shape[1]
    tm = min(tm_max, N)
    grid_n = pl.cdiv(N, tm)
    tc = min(tc_max, Cout)
    if Cout % tc != 0:
        tc = Cout
    needs_mask = (grid_n * tm != n_valid)
    out = pl.pallas_call(
        functools.partial(_pointconv_gmax_kernel, n_valid=n_valid,
                          needs_mask=needs_mask),
        out_shape=jax.ShapeDtypeStruct((B, 1, Cout), jnp.float32),
        grid=(B, Cout // tc, grid_n),
        in_specs=[
            pl.BlockSpec((1, tm, Cin), lambda b, c, n: (b, n, 0)),
            pl.BlockSpec((Cin, tc), lambda b, c, n: (0, c)),
            pl.BlockSpec((1, 1, tc), lambda b, c, n: (0, 0, c)),
        ],
        out_specs=pl.BlockSpec((1, 1, tc), lambda b, c, n: (b, 0, c)),
        compiler_params=pltpu.CompilerParams(
            dimension_semantics=("parallel", "parallel", "arbitrary"),
            vmem_limit_bytes=_VMEM_LIMIT),
    )(x_bnc, w, bias3)
    return out[:, 0, :]


def pairwise_neg_sqdist(x_bnc, n_valid, *, tn_max=512):
    """(B, N, C) -> (B, N, N) of -squared distances; padded columns masked to
    -FLT_MAX so they are never selected by the subsequent top_k."""
    B, N, C = x_bnc.shape
    tn = min(tn_max, N)
    grid_n = pl.cdiv(N, tn)
    needs_mask = (N != n_valid)
    return pl.pallas_call(
        functools.partial(_neg_pdist_kernel, n_valid=n_valid,
                          needs_mask=needs_mask),
        out_shape=jax.ShapeDtypeStruct((B, N, N), jnp.float32),
        grid=(B, grid_n, grid_n),
        in_specs=[
            pl.BlockSpec((1, tn, C), lambda b, i, j: (b, i, 0)),
            pl.BlockSpec((1, tn, C), lambda b, i, j: (b, j, 0)),
        ],
        out_specs=pl.BlockSpec((1, tn, tn), lambda b, i, j: (b, i, j)),
        compiler_params=pltpu.CompilerParams(
            dimension_semantics=("parallel", "parallel", "parallel"),
            vmem_limit_bytes=_VMEM_LIMIT),
    )(x_bnc, x_bnc)


def fused_head(x1_bnc, bias6_b, w6a, w7, b7, w8, b8, *, tm_max=512):
    """relu(relu(relu(x1 @ W6a + bias6) @ W7 + b7) @ W8 + b8) fused per tile."""
    B, N, Cin = x1_bnc.shape
    Cout = w8.shape[1]
    tm = min(tm_max, N)
    grid_n = pl.cdiv(N, tm)
    return pl.pallas_call(
        _fused_head_kernel,
        out_shape=jax.ShapeDtypeStruct((B, N, Cout), jnp.float32),
        grid=(B, grid_n),
        in_specs=[
            pl.BlockSpec((1, tm, Cin), lambda b, i: (b, i, 0)),
            pl.BlockSpec(w6a.shape, lambda b, i: (0, 0)),
            pl.BlockSpec((1, 1, w6a.shape[1]), lambda b, i: (b, 0, 0)),
            pl.BlockSpec(w7.shape, lambda b, i: (0, 0)),
            pl.BlockSpec((1, 1, w7.shape[1]), lambda b, i: (0, 0, 0)),
            pl.BlockSpec(w8.shape, lambda b, i: (0, 0)),
            pl.BlockSpec((1, 1, Cout), lambda b, i: (0, 0, 0)),
        ],
        out_specs=pl.BlockSpec((1, tm, Cout), lambda b, i: (b, i, 0)),
        compiler_params=pltpu.CompilerParams(
            dimension_semantics=("parallel", "parallel"),
            vmem_limit_bytes=_VMEM_LIMIT),
    )(x1_bnc, w6a, bias6_b, w7, b7, w8, b8)


# ------------------------------- glue (JAX) --------------------------------

def edge_block(feat_bnc, w, bias3, k, n_valid):
    """One edge_cov block: KNN on `feat`, then max_k relu(bn(conv(x_j))).
    Uses the conv/gather commute: conv once per point, gather+max afterwards."""
    neg_d = pairwise_neg_sqdist(feat_bnc, n_valid)          # Pallas, (B, N, N)
    # TODO(synk): top_k (k-NN selection) has no robust Mosaic lowering; XLA.
    idx = jax.lax.top_k(neg_d, k)[1]                        # (B, N, k)
    y = pointconv(feat_bnc, w, bias3, relu=True)            # Pallas, bf16
    # TODO(synk): arbitrary-row gather + k-max has no robust Mosaic lowering;
    # done as an XLA gather (bf16 activations halve its HBM traffic).
    g = jax.vmap(lambda f, ind: f[ind])(y, idx)             # (B, N, k, Cout)
    return jnp.max(g, axis=2)                               # (B, N, Cout) bf16


def init_gann_params(key, input_channel, output_channel):
    eps = 1e-5

    def bn_fold(bn_key, c):
        k1, k2, k3, k4 = jax.random.split(bn_key, 4)
        gamma = 1.0 + 0.1 * jax.random.normal(k1, (c,), jnp.float32)
        beta = 0.1 * jax.random.normal(k2, (c,), jnp.float32)
        mean = 0.1 * jax.random.normal(k3, (c,), jnp.float32)
        var = 1.0 + 0.1 * jnp.abs(jax.random.normal(k4, (c,), jnp.float32))
        scale = gamma / jnp.sqrt(var + eps)
        bias = beta - mean * scale
        return scale, bias

    def conv_w(w_key, cin, cout):
        return jax.random.normal(w_key, (cin, cout), jnp.float32) * jnp.sqrt(2.0 / cin)

    dims = [(input_channel, 64), (64, 64), (64, 64), (64, 64),
            (64, 1024), (1088, 512), (512, 128), (128, output_channel)]
    keys = jax.random.split(key, 2 * len(dims))
    params = {}
    for i, (cin, cout) in enumerate(dims):
        w = conv_w(keys[2 * i], cin, cout)
        if i < 7:  # edge_cov1..7 have BatchNorm; edge_cov8 has none
            scale, bias = bn_fold(keys[2 * i + 1], cout)
        else:
            scale = jnp.ones((cout,), jnp.float32)
            bias = jnp.zeros((cout,), jnp.float32)
        w_folded = (w * scale[None, :]).astype(jnp.bfloat16)  # fold BN scale
        if i == 5:  # layer 6 is split: rows [:64] multiply x1, [64:] multiply g
            params["w6a"] = w_folded[:64, :]
            params["w6b"] = w_folded[64:, :]
        else:
            params[f"w{i + 1}"] = w_folded
        params[f"b{i + 1}"] = bias[None, None, :]              # (1, 1, Cout)
    return params


def gann_forward(params, x_bcn, k):
    B, C, N = x_bcn.shape
    x = jnp.transpose(x_bcn, (0, 2, 1)).astype(jnp.float32)   # (B, N, C)

    # Pad the point axis ONCE to a multiple of 8 and the channel axis to >= 8.
    # Padded rows are kept through the whole pipeline and masked where they
    # matter (pdist columns, gmax rows); the final output is sliced back to N.
    Np = _round_up(N, 8)
    Cpad = max(8, _round_up(C, 8))
    x = jnp.pad(x, ((0, 0), (0, Np - N), (0, Cpad - C)))
    w1 = params["w1"]
    if Cpad != w1.shape[0]:
        w1 = jnp.pad(w1, ((0, Cpad - w1.shape[0]), (0, 0)))

    x = edge_block(x, w1, params["b1"], k, N)                 # (B, Np, 64)
    x1 = edge_block(x, params["w2"], params["b2"], k, N)      # (B, Np, 64)
    x = edge_block(x1, params["w3"], params["b3"], k, N)      # (B, Np, 64)
    x = edge_block(x, params["w4"], params["b4"], k, N)       # (B, Np, 64)

    # conv5 + global max over points, fused (no (B, N, 1024) activation).
    g = pointconv_global_max(x, params["w5"], params["b5"], N)    # (B, 1024)

    # Layer-6 split: the broadcast global feature becomes a per-batch bias.
    # Tiny matmul -> plain XLA dot (no padded 1-row kernel launch).
    bias6 = (jnp.dot(g.astype(jnp.bfloat16), params["w6b"],
                     preferred_element_type=jnp.float32)
             + params["b6"][0, 0])[:, None, :]                    # (B, 1, 512)

    # Layers 6 -> 7 -> 8 fused into one kernel; only the final output hits HBM.
    y = fused_head(x1, bias6, params["w6a"], params["w7"], params["b7"],
                   params["w8"], params["b8"])                    # (B, Np, out)
    return jnp.transpose(y[:, :N, :], (0, 2, 1))                  # (B, out, N)


# --------------------------------- main -------------------------------------

if __name__ == "__main__":
    key = jax.random.PRNGKey(0)
    kx, kp = jax.random.split(key)

    B, C_IN, N, K, C_OUT = 2, 3, 128, 8, 16
    x = jax.random.normal(kx, (B, C_IN, N), jnp.float32)
    params = init_gann_params(kp, C_IN, C_OUT)

    fwd = jax.jit(functools.partial(gann_forward, k=K))
    y = fwd(params, x)
    jax.block_until_ready(y)
    assert y.shape == (B, C_OUT, N), y.shape
    assert bool(jnp.all(y >= 0.0))  # edge_cov8 ends in ReLU
    print("KERNEL_OK")
</pallas_src>

<mosaic_0001>
module attributes {stable_mosaic.version = 11 : i64} {
  func.func @_neg_pdist_kernel(%arg0: i32, %arg1: i32, %arg2: i32, %arg3: memref<1x128x8xf32, #tpu.memory_space<vmem>>, %arg4: memref<1x128x8xf32, #tpu.memory_space<vmem>>, %arg5: memref<1x128x128xf32, #tpu.memory_space<vmem>>) attributes {dimension_semantics = [#tpu.dimension_semantics<parallel>, #tpu.dimension_semantics<parallel>, #tpu.dimension_semantics<parallel>], iteration_bounds = array<i64: 2, 1, 1>, scalar_prefetch = 0 : i64, scratch_operands = 0 : i64, tpu.core_type = #tpu.core_type<tc>, window_params = [{transform_indices = @transform_0, window_bounds = array<i64: 1, 128, 8>}, {transform_indices = @transform_1, window_bounds = array<i64: 1, 128, 8>}, {transform_indices = @transform_2, window_bounds = array<i64: 1, 128, 128>}]} {
    %c0 = arith.constant 0 : index
    %c0_0 = arith.constant 0 : index
    %c0_1 = arith.constant 0 : index
    %0 = vector.load %arg3[%c0, %c0_0, %c0_1] : memref<1x128x8xf32, #tpu.memory_space<vmem>>, vector<1x128x8xf32>
    %1 = vector.shape_cast %0 : vector<1x128x8xf32> to vector<128x8xf32>
    %c0_2 = arith.constant 0 : index
    %c0_3 = arith.constant 0 : index
    %c0_4 = arith.constant 0 : index
    %2 = vector.load %arg4[%c0_2, %c0_3, %c0_4] : memref<1x128x8xf32, #tpu.memory_space<vmem>>, vector<1x128x8xf32>
    %3 = vector.shape_cast %2 : vector<1x128x8xf32> to vector<128x8xf32>
    %4 = arith.truncf %1 : vector<128x8xf32> to vector<128x8xbf16>
    %5 = arith.truncf %3 : vector<128x8xf32> to vector<128x8xbf16>
    %cst = arith.constant dense<0.000000e+00> : vector<128x128xf32>
    %6 = tpu.matmul %4, %5, %cst {dimension_numbers = #tpu.dot_dimension_numbers<[1], [1], [0], [0], [0, 0, 1, 0], [], []>} : vector<128x8xbf16>, vector<128x8xbf16>, vector<128x128xf32> -> vector<128x128xf32>
    %7 = arith.mulf %1, %1 : vector<128x8xf32>
    %cst_5 = arith.constant dense<0.000000e+00> : vector<128xf32>
    %8 = vector.multi_reduction <add>, %7, %cst_5 [1] : vector<128x8xf32> to vector<128xf32>
    %9 = vector.shape_cast %8 : vector<128xf32> to vector<128x1xf32>
    %10 = arith.mulf %3, %3 : vector<128x8xf32>
    %cst_6 = arith.constant dense<0.000000e+00> : vector<128xf32>
    %11 = vector.multi_reduction <add>, %10, %cst_6 [1] : vector<128x8xf32> to vector<128xf32>
    %12 = vector.shape_cast %11 : vector<128xf32> to vector<128x1xf32>
    %cst_7 = arith.constant 2.000000e+00 : f32
    %13 = vector.broadcast %cst_7 : f32 to vector<128x128xf32>
    %14 = arith.mulf %13, %6 : vector<128x128xf32>
    %15 = vector.broadcast %9 : vector<128x1xf32> to vector<128x128xf32>
    %16 = arith.subf %14, %15 : vector<128x128xf32>
    %17 = tpu.transpose %12, [1, 0] : vector<128x1xf32> -> vector<1x128xf32>
    %18 = vector.broadcast %17 : vector<1x128xf32> to vector<128x128xf32>
    %19 = arith.subf %16, %18 : vector<128x128xf32>
    %c0_8 = arith.constant 0 : index
    %c0_9 = arith.constant 0 : index
    %c0_10 = arith.constant 0 : index
    %20 = vector.load %arg5[%c0_8, %c0_9, %c0_10] : memref<1x128x128xf32, #tpu.memory_space<vmem>>, vector<1x128x128xf32>
    %21 = vector.shape_cast %20 : vector<1x128x128xf32> to vector<128x128xf32>
    %22 = vector.shape_cast %19 : vector<128x128xf32> to vector<1x128x128xf32>
    tpu.vector_store %arg5[%c0_8, %c0_9, %c0_10], %22 {strides = array<i32>} : memref<1x128x128xf32, #tpu.memory_space<vmem>>, vector<1x128x128xf32>,
    return
  }
  func.func @transform_0(%arg0: i32, %arg1: i32, %arg2: i32) -> (i32, i32, i32) {
    %c0_i32 = arith.constant 0 : i32
    %c0_i32_0 = arith.constant 0 : i32
    return %arg0, %arg1, %c0_i32 : i32, i32, i32
  }
  func.func @transform_1(%arg0: i32, %arg1: i32, %arg2: i32) -> (i32, i32, i32) {
    %c0_i32 = arith.constant 0 : i32
    %c0_i32_0 = arith.constant 0 : i32
    return %arg0, %arg2, %c0_i32 : i32, i32, i32
  }
  func.func @transform_2(%arg0: i32, %arg1: i32, %arg2: i32) -> (i32, i32, i32) {
    %c0_i32 = arith.constant 0 : i32
    return %arg0, %arg1, %arg2 : i32, i32, i32
  }
}

module attributes {stable_mosaic.version = 11 : i64} {
  func.func @_pointconv_kernel(%arg0: i32, %arg1: i32, %arg2: memref<1x128x8xf32, #tpu.memory_space<vmem>>, %arg3: memref<8x64xbf16, #tpu.memory_space<vmem>>, %arg4: memref<1x1x64xf32, #tpu.memory_space<vmem>>, %arg5: memref<1x128x64xbf16, #tpu.memory_space<vmem>>) attributes {dimension_semantics = [#tpu.dimension_semantics<parallel>, #tpu.dimension_semantics<parallel>], iteration_bounds = array<i64: 2, 1>, scalar_prefetch = 0 : i64, scratch_operands = 0 : i64, tpu.core_type = #tpu.core_type<tc>, window_params = [{transform_indices = @transform_0, window_bounds = array<i64: 1, 128, 8>}, {pipeline_mode = #tpu.pipeline_mode<synchronous>, transform_indices = @transform_1, window_bounds = array<i64: 8, 64>}, {pipeline_mode = #tpu.pipeline_mode<synchronous>, transform_indices = @transform_2, window_bounds = array<i64: 1, 1, 64>}, {transform_indices = @transform_3, window_bounds = array<i64: 1, 128, 64>}]} {
    %c0 = arith.constant 0 : index
    %c0_0 = arith.constant 0 : index
    %c0_1 = arith.constant 0 : index
    %0 = vector.load %arg2[%c0, %c0_0, %c0_1] : memref<1x128x8xf32, #tpu.memory_space<vmem>>, vector<1x128x8xf32>
    %1 = vector.shape_cast %0 : vector<1x128x8xf32> to vector<128x8xf32>
    %2 = arith.truncf %1 : vector<128x8xf32> to vector<128x8xbf16>
    %c0_2 = arith.constant 0 : index
    %c0_3 = arith.constant 0 : index
    %3 = vector.load %arg3[%c0_2, %c0_3] : memref<8x64xbf16, #tpu.memory_space<vmem>>, vector<8x64xbf16>
    %cst = arith.constant dense<0.000000e+00> : vector<128x64xf32>
    %4 = tpu.matmul %2, %3, %cst {dimension_numbers = #tpu.dot_dimension_numbers<[1], [0], [0], [1], [0, 0, 1, 1], [], []>} : vector<128x8xbf16>, vector<8x64xbf16>, vector<128x64xf32> -> vector<128x64xf32>
    %c0_4 = arith.constant 0 : index
    %c0_5 = arith.constant 0 : index
    %c0_6 = arith.constant 0 : index
    %5 = vector.load %arg4[%c0_4, %c0_5, %c0_6] : memref<1x1x64xf32, #tpu.memory_space<vmem>>, vector<1x1x64xf32>
    %6 = vector.shape_cast %5 : vector<1x1x64xf32> to vector<1x64xf32>
    %7 = vector.broadcast %6 : vector<1x64xf32> to vector<128x64xf32>
    %8 = arith.addf %4, %7 : vector<128x64xf32>
    %cst_7 = arith.constant 0.000000e+00 : f32
    %9 = vector.broadcast %cst_7 : f32 to vector<128x64xf32>
    %10 = arith.maximumf %8, %9 : vector<128x64xf32>
    %11 = arith.truncf %10 : vector<128x64xf32> to vector<128x64xbf16>
    %c0_8 = arith.constant 0 : index
    %c0_9 = arith.constant 0 : index
    %c0_10 = arith.constant 0 : index
    %12 = vector.load %arg5[%c0_8, %c0_9, %c0_10] : memref<1x128x64xbf16, #tpu.memory_space<vmem>>, vector<1x128x64xbf16>
    %13 = vector.shape_cast %12 : vector<1x128x64xbf16> to vector<128x64xbf16>
    %14 = vector.shape_cast %11 : vector<128x64xbf16> to vector<1x128x64xbf16>
    tpu.vector_store %arg5[%c0_8, %c0_9, %c0_10], %14 {strides = array<i32>} : memref<1x128x64xbf16, #tpu.memory_space<vmem>>, vector<1x128x64xbf16>,
    return
  }
  func.func @transform_0(%arg0: i32, %arg1: i32) -> (i32, i32, i32) {
    %c0_i32 = arith.constant 0 : i32
    %c0_i32_0 = arith.constant 0 : i32
    return %arg0, %arg1, %c0_i32 : i32, i32, i32
  }
  func.func @transform_1(%arg0: i32, %arg1: i32) -> (i32, i32) {
    %c0_i32 = arith.constant 0 : i32
    %c0_i32_0 = arith.constant 0 : i32
    %c0_i32_1 = arith.constant 0 : i32
    return %c0_i32, %c0_i32_0 : i32, i32
  }
  func.func @transform_2(%arg0: i32, %arg1: i32) -> (i32, i32, i32) {
    %c0_i32 = arith.constant 0 : i32
    %c0_i32_0 = arith.constant 0 : i32
    %c0_i32_1 = arith.constant 0 : i32
    %c0_i32_2 = arith.constant 0 : i32
    return %c0_i32, %c0_i32_0, %c0_i32_1 : i32, i32, i32
  }
  func.func @transform_3(%arg0: i32, %arg1: i32) -> (i32, i32, i32) {
    %c0_i32 = arith.constant 0 : i32
    %c0_i32_0 = arith.constant 0 : i32
    return %arg0, %arg1, %c0_i32 : i32, i32, i32
  }
}

module attributes {stable_mosaic.version = 11 : i64} {
  func.func @_neg_pdist_kernel(%arg0: i32, %arg1: i32, %arg2: i32, %arg3: memref<1x128x64xbf16, #tpu.memory_space<vmem>>, %arg4: memref<1x128x64xbf16, #tpu.memory_space<vmem>>, %arg5: memref<1x128x128xf32, #tpu.memory_space<vmem>>) attributes {dimension_semantics = [#tpu.dimension_semantics<parallel>, #tpu.dimension_semantics<parallel>, #tpu.dimension_semantics<parallel>], iteration_bounds = array<i64: 2, 1, 1>, scalar_prefetch = 0 : i64, scratch_operands = 0 : i64, tpu.core_type = #tpu.core_type<tc>, window_params = [{transform_indices = @transform_0, window_bounds = array<i64: 1, 128, 64>}, {transform_indices = @transform_1, window_bounds = array<i64: 1, 128, 64>}, {transform_indices = @transform_2, window_bounds = array<i64: 1, 128, 128>}]} {
    %c0 = arith.constant 0 : index
    %c0_0 = arith.constant 0 : index
    %c0_1 = arith.constant 0 : index
    %0 = vector.load %arg3[%c0, %c0_0, %c0_1] : memref<1x128x64xbf16, #tpu.memory_space<vmem>>, vector<1x128x64xbf16>
    %1 = vector.shape_cast %0 : vector<1x128x64xbf16> to vector<128x64xbf16>
    %c0_2 = arith.constant 0 : index
    %c0_3 = arith.constant 0 : index
    %c0_4 = arith.constant 0 : index
    %2 = vector.load %arg4[%c0_2, %c0_3, %c0_4] : memref<1x128x64xbf16, #tpu.memory_space<vmem>>, vector<1x128x64xbf16>
    %3 = vector.shape_cast %2 : vector<1x128x64xbf16> to vector<128x64xbf16>
    %cst = arith.constant dense<0.000000e+00> : vector<128x128xf32>
    %4 = tpu.matmul %1, %3, %cst {dimension_numbers = #tpu.dot_dimension_numbers<[1], [1], [0], [0], [0, 0, 1, 0], [], []>} : vector<128x64xbf16>, vector<128x64xbf16>, vector<128x128xf32> -> vector<128x128xf32>
    %5 = arith.extf %1 : vector<128x64xbf16> to vector<128x64xf32>
    %6 = arith.extf %3 : vector<128x64xbf16> to vector<128x64xf32>
    %7 = arith.mulf %5, %5 : vector<128x64xf32>
    %cst_5 = arith.constant dense<0.000000e+00> : vector<128xf32>
    %8 = vector.multi_reduction <add>, %7, %cst_5 [1] : vector<128x64xf32> to vector<128xf32>
    %9 = vector.shape_cast %8 : vector<128xf32> to vector<128x1xf32>
    %10 = arith.mulf %6, %6 : vector<128x64xf32>
    %cst_6 = arith.constant dense<0.000000e+00> : vector<128xf32>
    %11 = vector.multi_reduction <add>, %10, %cst_6 [1] : vector<128x64xf32> to vector<128xf32>
    %12 = vector.shape_cast %11 : vector<128xf32> to vector<128x1xf32>
    %cst_7 = arith.constant 2.000000e+00 : f32
    %13 = vector.broadcast %cst_7 : f32 to vector<128x128xf32>
    %14 = arith.mulf %13, %4 : vector<128x128xf32>
    %15 = vector.broadcast %9 : vector<128x1xf32> to vector<128x128xf32>
    %16 = arith.subf %14, %15 : vector<128x128xf32>
    %17 = tpu.transpose %12, [1, 0] : vector<128x1xf32> -> vector<1x128xf32>
    %18 = vector.broadcast %17 : vector<1x128xf32> to vector<128x128xf32>
    %19 = arith.subf %16, %18 : vector<128x128xf32>
    %c0_8 = arith.constant 0 : index
    %c0_9 = arith.constant 0 : index
    %c0_10 = arith.constant 0 : index
    %20 = vector.load %arg5[%c0_8, %c0_9, %c0_10] : memref<1x128x128xf32, #tpu.memory_space<vmem>>, vector<1x128x128xf32>
    %21 = vector.shape_cast %20 : vector<1x128x128xf32> to vector<128x128xf32>
    %22 = vector.shape_cast %19 : vector<128x128xf32> to vector<1x128x128xf32>
    tpu.vector_store %arg5[%c0_8, %c0_9, %c0_10], %22 {strides = array<i32>} : memref<1x128x128xf32, #tpu.memory_space<vmem>>, vector<1x128x128xf32>,
    return
  }
  func.func @transform_0(%arg0: i32, %arg1: i32, %arg2: i32) -> (i32, i32, i32) {
    %c0_i32 = arith.constant 0 : i32
    %c0_i32_0 = arith.constant 0 : i32
    return %arg0, %arg1, %c0_i32 : i32, i32, i32
  }
  func.func @transform_1(%arg0: i32, %arg1: i32, %arg2: i32) -> (i32, i32, i32) {
    %c0_i32 = arith.constant 0 : i32
    %c0_i32_0 = arith.constant 0 : i32
    return %arg0, %arg2, %c0_i32 : i32, i32, i32
  }
  func.func @transform_2(%arg0: i32, %arg1: i32, %arg2: i32) -> (i32, i32, i32) {
    %c0_i32 = arith.constant 0 : i32
    return %arg0, %arg1, %arg2 : i32, i32, i32
  }
}

module attributes {stable_mosaic.version = 11 : i64} {
  func.func @_pointconv_kernel(%arg0: i32, %arg1: i32, %arg2: memref<1x128x64xbf16, #tpu.memory_space<vmem>>, %arg3: memref<64x64xbf16, #tpu.memory_space<vmem>>, %arg4: memref<1x1x64xf32, #tpu.memory_space<vmem>>, %arg5: memref<1x128x64xbf16, #tpu.memory_space<vmem>>) attributes {dimension_semantics = [#tpu.dimension_semantics<parallel>, #tpu.dimension_semantics<parallel>], iteration_bounds = array<i64: 2, 1>, scalar_prefetch = 0 : i64, scratch_operands = 0 : i64, tpu.core_type = #tpu.core_type<tc>, window_params = [{transform_indices = @transform_0, window_bounds = array<i64: 1, 128, 64>}, {pipeline_mode = #tpu.pipeline_mode<synchronous>, transform_indices = @transform_1, window_bounds = array<i64: 64, 64>}, {pipeline_mode = #tpu.pipeline_mode<synchronous>, transform_indices = @transform_2, window_bounds = array<i64: 1, 1, 64>}, {transform_indices = @transform_3, window_bounds = array<i64: 1, 128, 64>}]} {
    %c0 = arith.constant 0 : index
    %c0_0 = arith.constant 0 : index
    %c0_1 = arith.constant 0 : index
    %0 = vector.load %arg2[%c0, %c0_0, %c0_1] : memref<1x128x64xbf16, #tpu.memory_space<vmem>>, vector<1x128x64xbf16>
    %1 = vector.shape_cast %0 : vector<1x128x64xbf16> to vector<128x64xbf16>
    %c0_2 = arith.constant 0 : index
    %c0_3 = arith.constant 0 : index
    %2 = vector.load %arg3[%c0_2, %c0_3] : memref<64x64xbf16, #tpu.memory_space<vmem>>, vector<64x64xbf16>
    %cst = arith.constant dense<0.000000e+00> : vector<128x64xf32>
    %3 = tpu.matmul %1, %2, %cst {dimension_numbers = #tpu.dot_dimension_numbers<[1], [0], [0], [1], [0, 0, 1, 1], [], []>} : vector<128x64xbf16>, vector<64x64xbf16>, vector<128x64xf32> -> vector<128x64xf32>
    %c0_4 = arith.constant 0 : index
    %c0_5 = arith.constant 0 : index
    %c0_6 = arith.constant 0 : index
    %4 = vector.load %arg4[%c0_4, %c0_5, %c0_6] : memref<1x1x64xf32, #tpu.memory_space<vmem>>, vector<1x1x64xf32>
    %5 = vector.shape_cast %4 : vector<1x1x64xf32> to vector<1x64xf32>
    %6 = vector.broadcast %5 : vector<1x64xf32> to vector<128x64xf32>
    %7 = arith.addf %3, %6 : vector<128x64xf32>
    %cst_7 = arith.constant 0.000000e+00 : f32
    %8 = vector.broadcast %cst_7 : f32 to vector<128x64xf32>
    %9 = arith.maximumf %7, %8 : vector<128x64xf32>
    %10 = arith.truncf %9 : vector<128x64xf32> to vector<128x64xbf16>
    %c0_8 = arith.constant 0 : index
    %c0_9 = arith.constant 0 : index
    %c0_10 = arith.constant 0 : index
    %11 = vector.load %arg5[%c0_8, %c0_9, %c0_10] : memref<1x128x64xbf16, #tpu.memory_space<vmem>>, vector<1x128x64xbf16>
    %12 = vector.shape_cast %11 : vector<1x128x64xbf16> to vector<128x64xbf16>
    %13 = vector.shape_cast %10 : vector<128x64xbf16> to vector<1x128x64xbf16>
    tpu.vector_store %arg5[%c0_8, %c0_9, %c0_10], %13 {strides = array<i32>} : memref<1x128x64xbf16, #tpu.memory_space<vmem>>, vector<1x128x64xbf16>,
    return
  }
  func.func @transform_0(%arg0: i32, %arg1: i32) -> (i32, i32, i32) {
    %c0_i32 = arith.constant 0 : i32
    %c0_i32_0 = arith.constant 0 : i32
    return %arg0, %arg1, %c0_i32 : i32, i32, i32
  }
  func.func @transform_1(%arg0: i32, %arg1: i32) -> (i32, i32) {
    %c0_i32 = arith.constant 0 : i32
    %c0_i32_0 = arith.constant 0 : i32
    %c0_i32_1 = arith.constant 0 : i32
    return %c0_i32, %c0_i32_0 : i32, i32
  }
  func.func @transform_2(%arg0: i32, %arg1: i32) -> (i32, i32, i32) {
    %c0_i32 = arith.constant 0 : i32
    %c0_i32_0 = arith.constant 0 : i32
    %c0_i32_1 = arith.constant 0 : i32
    %c0_i32_2 = arith.constant 0 : i32
    return %c0_i32, %c0_i32_0, %c0_i32_1 : i32, i32, i32
  }
  func.func @transform_3(%arg0: i32, %arg1: i32) -> (i32, i32, i32) {
    %c0_i32 = arith.constant 0 : i32
    %c0_i32_0 = arith.constant 0 : i32
    return %arg0, %arg1, %c0_i32 : i32, i32, i32
  }
}

module attributes {stable_mosaic.version = 11 : i64} {
  func.func @_pointconv_gmax_kernel(%arg0: i32, %arg1: i32, %arg2: i32, %arg3: memref<1x128x64xbf16, #tpu.memory_space<vmem>>, %arg4: memref<64x256xbf16, #tpu.memory_space<vmem>>, %arg5: memref<1x1x256xf32, #tpu.memory_space<vmem>>, %arg6: memref<1x1x256xf32, #tpu.memory_space<vmem>>) attributes {dimension_semantics = [#tpu.dimension_semantics<parallel>, #tpu.dimension_semantics<parallel>, #tpu.dimension_semantics<arbitrary>], iteration_bounds = array<i64: 2, 4, 1>, scalar_prefetch = 0 : i64, scratch_operands = 0 : i64, tpu.core_type = #tpu.core_type<tc>, window_params = [{transform_indices = @transform_0, window_bounds = array<i64: 1, 128, 64>}, {transform_indices = @transform_1, window_bounds = array<i64: 64, 256>}, {transform_indices = @transform_2, window_bounds = array<i64: 1, 1, 256>}, {transform_indices = @transform_3, window_bounds = array<i64: 1, 1, 256>}]} {
    %c0 = arith.constant 0 : index
    %c0_0 = arith.constant 0 : index
    %c0_1 = arith.constant 0 : index
    %0 = vector.load %arg3[%c0, %c0_0, %c0_1] : memref<1x128x64xbf16, #tpu.memory_space<vmem>>, vector<1x128x64xbf16>
    %1 = vector.shape_cast %0 : vector<1x128x64xbf16> to vector<128x64xbf16>
    %c0_2 = arith.constant 0 : index
    %c0_3 = arith.constant 0 : index
    %2 = vector.load %arg4[%c0_2, %c0_3] : memref<64x256xbf16, #tpu.memory_space<vmem>>, vector<64x256xbf16>
    %cst = arith.constant dense<0.000000e+00> : vector<128x256xf32>
    %3 = tpu.matmul %1, %2, %cst {dimension_numbers = #tpu.dot_dimension_numbers<[1], [0], [0], [1], [0, 0, 1, 1], [], []>} : vector<128x64xbf16>, vector<64x256xbf16>, vector<128x256xf32> -> vector<128x256xf32>
    %c0_4 = arith.constant 0 : index
    %c0_5 = arith.constant 0 : index
    %c0_6 = arith.constant 0 : index
    %4 = vector.load %arg5[%c0_4, %c0_5, %c0_6] : memref<1x1x256xf32, #tpu.memory_space<vmem>>, vector<1x1x256xf32>
    %5 = vector.shape_cast %4 : vector<1x1x256xf32> to vector<1x256xf32>
    %6 = vector.broadcast %5 : vector<1x256xf32> to vector<128x256xf32>
    %7 = arith.addf %3, %6 : vector<128x256xf32>
    %cst_7 = arith.constant 0.000000e+00 : f32
    %8 = vector.broadcast %cst_7 : f32 to vector<128x256xf32>
    %9 = arith.maximumf %7, %8 : vector<128x256xf32>
    %cst_8 = arith.constant dense<0xFF800000> : vector<256xf32>
    %10 = vector.multi_reduction <maximumf>, %9, %cst_8 [0] : vector<128x256xf32> to vector<256xf32>
    %11 = vector.shape_cast %10 : vector<256xf32> to vector<1x256xf32>
    %c0_i32 = arith.constant 0 : i32
    %12 = arith.cmpi eq, %arg2, %c0_i32 : i32
    %13 = arith.extui %12 : i1 to i32
    %c0_i32_9 = arith.constant 0 : i32
    %14 = arith.cmpi ne, %13, %c0_i32_9 : i32
    scf.if %14 {
      %c0_12 = arith.constant 0 : index
      %c0_13 = arith.constant 0 : index
      %c0_14 = arith.constant 0 : index
      %18 = vector.load %arg6[%c0_12, %c0_13, %c0_14] : memref<1x1x256xf32, #tpu.memory_space<vmem>>, vector<1x1x256xf32>
      %19 = vector.shape_cast %18 : vector<1x1x256xf32> to vector<1x256xf32>
      %20 = vector.shape_cast %11 : vector<1x256xf32> to vector<1x1x256xf32>
      tpu.vector_store %arg6[%c0_12, %c0_13, %c0_14], %20 {strides = array<i32>} : memref<1x1x256xf32, #tpu.memory_space<vmem>>, vector<1x1x256xf32>,
    } else {
    }
    %c0_i32_10 = arith.constant 0 : i32
    %15 = arith.cmpi sgt, %arg2, %c0_i32_10 : i32
    %16 = arith.extui %15 : i1 to i32
    %c0_i32_11 = arith.constant 0 : i32
    %17 = arith.cmpi ne, %16, %c0_i32_11 : i32
    scf.if %17 {
      %c0_12 = arith.constant 0 : index
      %c0_13 = arith.constant 0 : index
      %c0_14 = arith.constant 0 : index
      %18 = vector.load %arg6[%c0_12, %c0_13, %c0_14] : memref<1x1x256xf32, #tpu.memory_space<vmem>>, vector<1x1x256xf32>
      %19 = vector.shape_cast %18 : vector<1x1x256xf32> to vector<1x256xf32>
      %20 = arith.maximumf %19, %11 : vector<1x256xf32>
      %c0_15 = arith.constant 0 : index
      %c0_16 = arith.constant 0 : index
      %c0_17 = arith.constant 0 : index
      %21 = vector.load %arg6[%c0_15, %c0_16, %c0_17] : memref<1x1x256xf32, #tpu.memory_space<vmem>>, vector<1x1x256xf32>
      %22 = vector.shape_cast %21 : vector<1x1x256xf32> to vector<1x256xf32>
      %23 = vector.shape_cast %20 : vector<1x256xf32> to vector<1x1x256xf32>
      tpu.vector_store %arg6[%c0_15, %c0_16, %c0_17], %23 {strides = array<i32>} : memref<1x1x256xf32, #tpu.memory_space<vmem>>, vector<1x1x256xf32>,
    } else {
    }
    return
  }
  func.func @transform_0(%arg0: i32, %arg1: i32, %arg2: i32) -> (i32, i32, i32) {
    %c0_i32 = arith.constant 0 : i32
    %c0_i32_0 = arith.constant 0 : i32
    return %arg0, %arg2, %c0_i32 : i32, i32, i32
  }
  func.func @transform_1(%arg0: i32, %arg1: i32, %arg2: i32) -> (i32, i32) {
    %c0_i32 = arith.constant 0 : i32
    %c0_i32_0 = arith.constant 0 : i32
    return %c0_i32, %arg1 : i32, i32
  }
  func.func @transform_2(%arg0: i32, %arg1: i32, %arg2: i32) -> (i32, i32, i32) {
    %c0_i32 = arith.constant 0 : i32
    %c0_i32_0 = arith.constant 0 : i32
    %c0_i32_1 = arith.constant 0 : i32
    return %c0_i32, %c0_i32_0, %arg1 : i32, i32, i32
  }
  func.func @transform_3(%arg0: i32, %arg1: i32, %arg2: i32) -> (i32, i32, i32) {
    %c0_i32 = arith.constant 0 : i32
    %c0_i32_0 = arith.constant 0 : i32
    return %arg0, %c0_i32, %arg1 : i32, i32, i32
  }
}

module attributes {stable_mosaic.version = 11 : i64} {
  func.func @_fused_head_kernel(%arg0: i32, %arg1: i32, %arg2: memref<1x128x64xbf16, #tpu.memory_space<vmem>>, %arg3: memref<64x512xbf16, #tpu.memory_space<vmem>>, %arg4: memref<1x1x512xf32, #tpu.memory_space<vmem>>, %arg5: memref<512x128xbf16, #tpu.memory_space<vmem>>, %arg6: memref<1x1x128xf32, #tpu.memory_space<vmem>>, %arg7: memref<128x16xbf16, #tpu.memory_space<vmem>>, %arg8: memref<1x1x16xf32, #tpu.memory_space<vmem>>, %arg9: memref<1x128x16xf32, #tpu.memory_space<vmem>>) attributes {dimension_semantics = [#tpu.dimension_semantics<parallel>, #tpu.dimension_semantics<parallel>], iteration_bounds = array<i64: 2, 1>, scalar_prefetch = 0 : i64, scratch_operands = 0 : i64, tpu.core_type = #tpu.core_type<tc>, window_params = [{transform_indices = @transform_0, window_bounds = array<i64: 1, 128, 64>}, {pipeline_mode = #tpu.pipeline_mode<synchronous>, transform_indices = @transform_1, window_bounds = array<i64: 64, 512>}, {transform_indices = @transform_2, window_bounds = array<i64: 1, 1, 512>}, {pipeline_mode = #tpu.pipeline_mode<synchronous>, transform_indices = @transform_3, window_bounds = array<i64: 512, 128>}, {pipeline_mode = #tpu.pipeline_mode<synchronous>, transform_indices = @transform_4, window_bounds = array<i64: 1, 1, 128>}, {pipeline_mode = #tpu.pipeline_mode<synchronous>, transform_indices = @transform_5, window_bounds = array<i64: 128, 16>}, {pipeline_mode = #tpu.pipeline_mode<synchronous>, transform_indices = @transform_6, window_bounds = array<i64: 1, 1, 16>}, {transform_indices = @transform_7, window_bounds = array<i64: 1, 128, 16>}]} {
    %c0 = arith.constant 0 : index
    %c0_0 = arith.constant 0 : index
    %c0_1 = arith.constant 0 : index
    %0 = vector.load %arg2[%c0, %c0_0, %c0_1] : memref<1x128x64xbf16, #tpu.memory_space<vmem>>, vector<1x128x64xbf16>
    %1 = vector.shape_cast %0 : vector<1x128x64xbf16> to vector<128x64xbf16>
    %c0_2 = arith.constant 0 : index
    %c0_3 = arith.constant 0 : index
    %2 = vector.load %arg3[%c0_2, %c0_3] : memref<64x512xbf16, #tpu.memory_space<vmem>>, vector<64x512xbf16>
    %cst = arith.constant dense<0.000000e+00> : vector<128x512xf32>
    %3 = tpu.matmul %1, %2, %cst {dimension_numbers = #tpu.dot_dimension_numbers<[1], [0], [0], [1], [0, 0, 1, 1], [], []>} : vector<128x64xbf16>, vector<64x512xbf16>, vector<128x512xf32> -> vector<128x512xf32>
    %c0_4 = arith.constant 0 : index
    %c0_5 = arith.constant 0 : index
    %c0_6 = arith.constant 0 : index
    %4 = vector.load %arg4[%c0_4, %c0_5, %c0_6] : memref<1x1x512xf32, #tpu.memory_space<vmem>>, vector<1x1x512xf32>
    %5 = vector.shape_cast %4 : vector<1x1x512xf32> to vector<1x512xf32>
    %6 = vector.broadcast %5 : vector<1x512xf32> to vector<128x512xf32>
    %7 = arith.addf %3, %6 : vector<128x512xf32>
    %cst_7 = arith.constant 0.000000e+00 : f32
    %8 = vector.broadcast %cst_7 : f32 to vector<128x512xf32>
    %9 = arith.maximumf %7, %8 : vector<128x512xf32>
    %10 = arith.truncf %9 : vector<128x512xf32> to vector<128x512xbf16>
    %c0_8 = arith.constant 0 : index
    %c0_9 = arith.constant 0 : index
    %11 = vector.load %arg5[%c0_8, %c0_9] : memref<512x128xbf16, #tpu.memory_space<vmem>>, vector<512x128xbf16>
    %cst_10 = arith.constant dense<0.000000e+00> : vector<128x128xf32>
    %12 = tpu.matmul %10, %11, %cst_10 {dimension_numbers = #tpu.dot_dimension_numbers<[1], [0], [0], [1], [0, 0, 1, 1], [], []>} : vector<128x512xbf16>, vector<512x128xbf16>, vector<128x128xf32> -> vector<128x128xf32>
    %c0_11 = arith.constant 0 : index
    %c0_12 = arith.constant 0 : index
    %c0_13 = arith.constant 0 : index
    %13 = vector.load %arg6[%c0_11, %c0_12, %c0_13] : memref<1x1x128xf32, #tpu.memory_space<vmem>>, vector<1x1x128xf32>
    %14 = vector.shape_cast %13 : vector<1x1x128xf32> to vector<1x128xf32>
    %15 = vector.broadcast %14 : vector<1x128xf32> to vector<128x128xf32>
    %16 = arith.addf %12, %15 : vector<128x128xf32>
    %cst_14 = arith.constant 0.000000e+00 : f32
    %17 = vector.broadcast %cst_14 : f32 to vector<128x128xf32>
    %18 = arith.maximumf %16, %17 : vector<128x128xf32>
    %19 = arith.truncf %18 : vector<128x128xf32> to vector<128x128xbf16>
    %c0_15 = arith.constant 0 : index
    %c0_16 = arith.constant 0 : index
    %20 = vector.load %arg7[%c0_15, %c0_16] : memref<128x16xbf16, #tpu.memory_space<vmem>>, vector<128x16xbf16>
    %cst_17 = arith.constant dense<0.000000e+00> : vector<128x16xf32>
    %21 = tpu.matmul %19, %20, %cst_17 {dimension_numbers = #tpu.dot_dimension_numbers<[1], [0], [0], [1], [0, 0, 1, 1], [], []>} : vector<128x128xbf16>, vector<128x16xbf16>, vector<128x16xf32> -> vector<128x16xf32>
    %c0_18 = arith.constant 0 : index
    %c0_19 = arith.constant 0 : index
    %c0_20 = arith.constant 0 : index
    %22 = vector.load %arg8[%c0_18, %c0_19, %c0_20] : memref<1x1x16xf32, #tpu.memory_space<vmem>>, vector<1x1x16xf32>
    %23 = vector.shape_cast %22 : vector<1x1x16xf32> to vector<1x16xf32>
    %24 = vector.broadcast %23 : vector<1x16xf32> to vector<128x16xf32>
    %25 = arith.addf %21, %24 : vector<128x16xf32>
    %cst_21 = arith.constant 0.000000e+00 : f32
    %26 = vector.broadcast %cst_21 : f32 to vector<128x16xf32>
    %27 = arith.maximumf %25, %26 : vector<128x16xf32>
    %c0_22 = arith.constant 0 : index
    %c0_23 = arith.constant 0 : index
    %c0_24 = arith.constant 0 : index
    %28 = vector.load %arg9[%c0_22, %c0_23, %c0_24] : memref<1x128x16xf32, #tpu.memory_space<vmem>>, vector<1x128x16xf32>
    %29 = vector.shape_cast %28 : vector<1x128x16xf32> to vector<128x16xf32>
    %30 = vector.shape_cast %27 : vector<128x16xf32> to vector<1x128x16xf32>
    tpu.vector_store %arg9[%c0_22, %c0_23, %c0_24], %30 {strides = array<i32>} : memref<1x128x16xf32, #tpu.memory_space<vmem>>, vector<1x128x16xf32>,
    return
  }
  func.func @transform_0(%arg0: i32, %arg1: i32) -> (i32, i32, i32) {
    %c0_i32 = arith.constant 0 : i32
    %c0_i32_0 = arith.constant 0 : i32
    return %arg0, %arg1, %c0_i32 : i32, i32, i32
  }
  func.func @transform_1(%arg0: i32, %arg1: i32) -> (i32, i32) {
    %c0_i32 = arith.constant 0 : i32
    %c0_i32_0 = arith.constant 0 : i32
    %c0_i32_1 = arith.constant 0 : i32
    return %c0_i32, %c0_i32_0 : i32, i32
  }
  func.func @transform_2(%arg0: i32, %arg1: i32) -> (i32, i32, i32) {
    %c0_i32 = arith.constant 0 : i32
    %c0_i32_0 = arith.constant 0 : i32
    %c0_i32_1 = arith.constant 0 : i32
    return %arg0, %c0_i32, %c0_i32_0 : i32, i32, i32
  }
  func.func @transform_3(%arg0: i32, %arg1: i32) -> (i32, i32) {
    %c0_i32 = arith.constant 0 : i32
    %c0_i32_0 = arith.constant 0 : i32
    %c0_i32_1 = arith.constant 0 : i32
    return %c0_i32, %c0_i32_0 : i32, i32
  }
  func.func @transform_4(%arg0: i32, %arg1: i32) -> (i32, i32, i32) {
    %c0_i32 = arith.constant 0 : i32
    %c0_i32_0 = arith.constant 0 : i32
    %c0_i32_1 = arith.constant 0 : i32
    %c0_i32_2 = arith.constant 0 : i32
    return %c0_i32, %c0_i32_0, %c0_i32_1 : i32, i32, i32
  }
  func.func @transform_5(%arg0: i32, %arg1: i32) -> (i32, i32) {
    %c0_i32 = arith.constant 0 : i32
    %c0_i32_0 = arith.constant 0 : i32
    %c0_i32_1 = arith.constant 0 : i32
    return %c0_i32, %c0_i32_0 : i32, i32
  }
  func.func @transform_6(%arg0: i32, %arg1: i32) -> (i32, i32, i32) {
    %c0_i32 = arith.constant 0 : i32
    %c0_i32_0 = arith.constant 0 : i32
    %c0_i32_1 = arith.constant 0 : i32
    %c0_i32_2 = arith.constant 0 : i32
    return %c0_i32, %c0_i32_0, %c0_i32_1 : i32, i32, i32
  }
  func.func @transform_7(%arg0: i32, %arg1: i32) -> (i32, i32, i32) {
    %c0_i32 = arith.constant 0 : i32
    %c0_i32_0 = arith.constant 0 : i32
    return %arg0, %arg1, %c0_i32 : i32, i32, i32
  }
}

</mosaic_0001>

<bundles_post_ra>
// kernel: gann_forward.10
= control target key start
LH: loop header
LB: loop body
LE: loop exit
PB: predicated region body
PF: predicated region fallthrough
CT: control target
= control target key end

     0   :  { %s834_s9 = smov 0   ;;  %s836_s10 = smov 0   ;;  %s1158_s0 = inlined_call_operand.vmem [shape: f32[2,128,8], index: 0, kind: input, shape index: {}, may-alias: {0,1}]   ;;  %s1159_s1 = inlined_call_operand.vmem [shape: f32[2,128,8], index: 1, kind: input, shape index: {}, may-alias: {0,1}]   ;;  %s1160_s2 = inlined_call_operand.vmem [shape: f32[2,128,128], index: 2, kind: output, shape index: {}]  }
   0x1   :  { %s838_s11 = smov 0  }
   0x2 LB: > { %s31_s12 = sadd.s32 1, %s813_s10  ;;  %p727_p0 = scmp.ge.s32.totalorder %s817_s11, 1  ;;  %s817_s11 = sphi %s838_s11, %s12_s11   ;;  %s813_s10 = sphi %s836_s10, %s1162_s10   ;;  %s809_s9 = sphi %s834_s9, %s1161_s9  }
   0x3   : > { %p33_p1 = scmp.ge.s32.totalorder %s31_s12, 2  ;;  %p159_p2 = scmp.lt.s32.totalorder %s817_s11, 3 }
   0x5   : > { %s1164_s12 = smov (%p33_p1, %s31_s12), 0  ;;  %p160_p3 = pnand %p727_p0, %p159_p2 }
   0x6   : > { %p202_p4 = scmp.lt.s32.totalorder (!%p160_p3), %s809_s9, 1 }
   0x7   : > { %163 = sbr.rel (%p160_p3) target bundleno = 351 (0x15f), region = 28 }
   0xc   : > { %s1166_s9 = smov (!%p202_p4, %s809_s9), 1  ;;  %vm282_vm0 = vcmask 64512  }
   0xd   : > { %s852_s13 = sshll.u32 %s1166_s9, 7 }
   0xe   : > { %s858_s16 = scalar_lea.vmem %s1159_s1, %s852_s13  ;;  %s870_s19 = scalar_lea.vmem %s1158_s0, %s852_s13 }
   0xf   : > { %v861_v0 = vld [vmem:[%s858_s16 + $0x70] sm:$0xff]  ;;  %v864_v1 = vld [vmem:[%s858_s16 + $0x78] sm:$0xff]  ;;  %v878_v4 = vld [vmem:[%s870_s19 + $0x20] sm:$0xff]  ;;  %s1118_s22 = scalar_lea.vmem %s1160_s2, %s852_s13 }
  0x10   : > { %v281_v2 = vpack.c.bf16 %v864_v1, %v861_v0  ;;  %v875_v3 = vld [vmem:[%s870_s19 + $0x10] sm:$0xff]  ;;  %v883_v6 = vld [vmem:[%s858_s16 + $0x60] sm:$0xff]  ;;  %v886_v7 = vld [vmem:[%s858_s16 + $0x68] sm:$0xff]  ;;  %v384_v8 = vmul.f32 %v878_v4, %v878_v4 }
  0x11   : > { %v382_v5 = vmul.f32 %v875_v3, %v875_v3  ;;  %v891_v9 = vld [vmem:[%s870_s19] sm:$0xff]  ;;  %v899_v14 = vld [vmem:[%s870_s19 + $0x18] sm:$0xff]  ;;  %v902_v15 = vld [vmem:[%s870_s19 + $0x28] sm:$0xff]  ;;  %v280_v16 = vpack.c.bf16 %v886_v7, %v883_v6 }
  0x12   : > { %v329_v10 = vsel %vm282_vm0, %v281_v2, 0  ;;  %v380_v11 = vmul.f32 %v891_v9, %v891_v9  ;;  %v408_v13 = vsel %vm282_vm0, %v384_v8, 0.0  ;;  %v908_v18 = vld [vmem:[%s870_s19 + $0x8] sm:$0xff]  ;;  %v383_v19 = vmul.f32 %v899_v14, %v899_v14  ;;  %v918_v23 = vld [vmem:[%s858_s16 + $0x50] sm:$0xff]  ;;  %v921_v24 = vld [vmem:[%s858_s16 + $0x58] sm:$0xff] }
  0x13   : > { %331 = vmatpush.bf16.xpose.msra.mxu0 %v329_v10  ;;  %747 = vmatpush.bf16.xpose.msra.mxu1 %v329_v10  ;;  %v402_v12 = vsel %vm282_vm0, %v382_v5, 0.0  ;;  %v385_v20 = vmul.f32 %v902_v15, %v902_v15  ;;  %v381_v21 = vmul.f32 %v908_v18, %v908_v18  ;;  %v326_v22 = vsel %vm282_vm0, %v280_v16, 0  ;;  %v926_v27 = vld [vmem:[%s870_s19 + $0x38] sm:$0xff]  ;;  %v930_v29 = vld [vmem:[%s870_s19 + $0x40] sm:$0xff]  ;;  %v935_v31 = vld [vmem:[%s870_s19 + $0x30] sm:$0xff] }
  0x14   : > { %748 = vmatpush.bf16.xpose.msra.mxu2 %v329_v10  ;;  %749 = vmatpush.bf16.xpose.msra.mxu3 %v329_v10  ;;  %v396_v17 = vsel %vm282_vm0, %v380_v11, 0.0  ;;  %v405_v25 = vsel %vm282_vm0, %v383_v19, 0.0  ;;  %v279_v30 = vpack.c.bf16 %v921_v24, %v918_v23  ;;  %v387_v32 = vmul.f32 %v926_v27, %v926_v27  ;;  %v945_v36 = vld [vmem:[%s858_s16 + $0x40] sm:$0xff]  ;;  %v948_v37 = vld [vmem:[%s858_s16 + $0x48] sm:$0xff]  ;;  %v953_v40 = vld [vmem:[%s870_s19 + $0x50] sm:$0xff] }
  0x15   : > { %403 = vadd.xlane.f32.xlu1 %v402_v12  ;;  %409 = vadd.xlane.f32.xlu2 %v408_v13  ;;  %v411_v26 = vsel %vm282_vm0, %v385_v20, 0.0  ;;  %v399_v28 = vsel %vm282_vm0, %v381_v21, 0.0  ;;  %v388_v33 = vmul.f32 %v930_v29, %v930_v29  ;;  %v386_v34 = vmul.f32 %v935_v31, %v935_v31  ;;  %v957_v42 = vld [vmem:[%s870_s19 + $0x58] sm:$0xff]  ;;  %v962_v44 = vld [vmem:[%s870_s19 + $0x48] sm:$0xff]  ;;  %v972_v49 = vld [vmem:[%s858_s16 + $0x30] sm:$0xff] }
  0x16   : > { %397 = vadd.xlane.f32.xlu0 %v396_v17  ;;  %v323_v35 = vsel %vm282_vm0, %v279_v30, 0  ;;  %v417_v38 = vsel %vm282_vm0, %v387_v32, 0.0  ;;  %v278_v43 = vpack.c.bf16 %v948_v37, %v945_v36  ;;  %v390_v45 = vmul.f32 %v953_v40, %v953_v40  ;;  %v975_v50 = vld [vmem:[%s858_s16 + $0x38] sm:$0xff]  ;;  %v980_v53 = vld [vmem:[%s870_s19 + $0x68] sm:$0xff]  ;;  %v984_v55 = vld [vmem:[%s870_s19 + $0x70] sm:$0xff] }
  0x17   : > { %v420_v39 = vsel %vm282_vm0, %v388_v33, 0.0  ;;  %v414_v41 = vsel %vm282_vm0, %v386_v34, 0.0  ;;  %v391_v46 = vmul.f32 %v957_v42, %v957_v42  ;;  %v389_v47 = vmul.f32 %v962_v44, %v962_v44  ;;  %v989_v57 = vld [vmem:[%s870_s19 + $0x60] sm:$0xff]  ;;  %v255_v63 = vld [vmem:[%s858_s16 + $0x28] sm:$0xff]  ;;  %v1008_v16 = vld [vmem:[%s870_s19 + $0x78] sm:$0xff] }
  0x18   : > { %v320_v48 = vsel %vm282_vm0, %v278_v43, 0  ;;  %v426_v51 = vsel %vm282_vm0, %v390_v45, 0.0  ;;  %v277_v56 = vpack.c.bf16 %v975_v50, %v972_v49  ;;  %v393_v58 = vmul.f32 %v980_v53, %v980_v53  ;;  %v254_v62 = vld [vmem:[%s858_s16 + $0x20] sm:$0xff]  ;;  %v251_v11 = vld [vmem:[%s858_s16 + $0x8] sm:$0xff] }
  0x19   : > { %v429_v52 = vsel %vm282_vm0, %v391_v46, 0.0  ;;  %v423_v54 = vsel %vm282_vm0, %v389_v47, 0.0  ;;  %v394_v59 = vmul.f32 %v984_v55, %v984_v55  ;;  %v392_v60 = vmul.f32 %v989_v57, %v989_v57  ;;  %v250_v8 = vld [vmem:[%s858_s16] sm:$0xff] }
  0x1a   : > { %v317_v61 = vsel %vm282_vm0, %v277_v56, 0  ;;  %v435_v2 = vsel %vm282_vm0, %v393_v58, 0.0  ;;  %v267_v12 = vpack.c.bf16 %v899_v14, %v875_v3  ;;  %v276_v13 = vpack.c.bf16 %v255_v63, %v254_v62 }
  0x1b   : > { %332 = vmatpush.bf16.xpose.msra.mxu0 %v326_v22  ;;  %750 = vmatpush.bf16.xpose.msra.mxu1 %v326_v22  ;;  %v438_v5 = vsel %vm282_vm0, %v394_v59, 0.0  ;;  %v432_v10 = vsel %vm282_vm0, %v392_v60, 0.0  ;;  %v444_v17 = vmul.f32 %v250_v8, %v250_v8  ;;  %v445_v19 = vmul.f32 %v251_v11, %v251_v11 }
  0x1c   : > { %751 = vmatpush.bf16.xpose.msra.mxu2 %v326_v22  ;;  %752 = vmatpush.bf16.xpose.msra.mxu3 %v326_v22  ;;  %v395_v20 = vmul.f32 %v1008_v16, %v1008_v16  ;;  %v314_v21 = vsel %vm282_vm0, %v276_v13, 0  ;;  %v252_v22 = vld [vmem:[%s858_s16 + $0x10] sm:$0xff]  ;;  %v448_v34 = vmul.f32 %v254_v62, %v254_v62  ;;  %v274_v45 = vpack.c.bf16 %v251_v11, %v250_v8 }
  0x1d   : > { %406 = vadd.xlane.f32.xlu1 %v405_v25  ;;  %412 = vadd.xlane.f32.xlu2 %v411_v26  ;;  %v253_v25 = vld [vmem:[%s858_s16 + $0x18] sm:$0xff]  ;;  %v460_v26 = vsel %vm282_vm0, %v444_v17, 0.0  ;;  %v450_v46 = vmul.f32 %v972_v49, %v972_v49  ;;  %v451_v47 = vmul.f32 %v975_v50, %v975_v50  ;;  %v266_v49 = vpack.c.bf16 %v908_v18, %v891_v9 }
  0x1e   : > { %400 = vadd.xlane.f32.xlu0 %v399_v28  ;;  %v463_v28 = vsel %vm282_vm0, %v445_v19, 0.0  ;;  %v441_v30 = vsel %vm282_vm0, %v395_v20, 0.0  ;;  %v275_v32 = vpack.c.bf16 %v253_v25, %v252_v22  ;;  %v447_v33 = vmul.f32 %v253_v25, %v253_v25 }
  0x1f   : > { %v268_v50 = vpack.c.bf16 %v902_v15, %v878_v4  ;;  %v454_v58 = vmul.f32 %v918_v23, %v918_v23  ;;  %v453_v59 = vmul.f32 %v948_v37, %v948_v37  ;;  %v270_v60 = vpack.c.bf16 %v962_v44, %v930_v29 }
  0x20   : > { %v452_v62 = vmul.f32 %v945_v36, %v945_v36  ;;  %v457_v18 = vmul.f32 %v886_v7, %v886_v7  ;;  %v269_v29 = vpack.c.bf16 %v926_v27, %v935_v31  ;;  %v271_v36 = vpack.c.bf16 %v957_v42, %v953_v40 }
  0x21   : > { %v490_v4 = vsel %vm282_vm0, %v454_v58, 0.0  ;;  %v487_v9 = vsel %vm282_vm0, %v453_v59, 0.0  ;;  %v273_v37 = vpack.c.bf16 %v1008_v16, %v984_v55  ;;  %v455_v7 = vmul.f32 %v921_v24, %v921_v24 }
  0x22   : > { %v484_v15 = vsel %vm282_vm0, %v452_v62, 0.0  ;;  %v499_v23 = vsel %vm282_vm0, %v457_v18, 0.0  ;;  %v456_v31 = vmul.f32 %v883_v6, %v883_v6  ;;  %v458_v42 = vmul.f32 %v861_v0, %v861_v0 }
  0x23   : > { %333 = vmatpush.bf16.xpose.msra.mxu0 %v323_v35  ;;  %753 = vmatpush.bf16.xpose.msra.mxu1 %v323_v35  ;;  %v493_v27 = vsel %vm282_vm0, %v455_v7, 0.0 }
  0x24   : > { %754 = vmatpush.bf16.xpose.msra.mxu2 %v323_v35  ;;  %755 = vmatpush.bf16.xpose.msra.mxu3 %v323_v35  ;;  %v446_v35 = vmul.f32 %v252_v22, %v252_v22  ;;  %v496_v40 = vsel %vm282_vm0, %v456_v31, 0.0  ;;  %v502_v24 = vsel %vm282_vm0, %v458_v42, 0.0 }
  0x25   : > { %418 = vadd.xlane.f32.xlu1 %v417_v38  ;;  %421 = vadd.xlane.f32.xlu2 %v420_v39  ;;  %v311_v38 = vsel %vm282_vm0, %v275_v32, 0  ;;  %v469_v39 = vsel %vm282_vm0, %v447_v33, 0.0 }
  0x26   : > { %415 = vadd.xlane.f32.xlu0 %v414_v41  ;;  %v472_v41 = vsel %vm282_vm0, %v448_v34, 0.0  ;;  %v466_v43 = vsel %vm282_vm0, %v446_v35, 0.0 }
  0x2b   : > { %334 = vmatpush.bf16.xpose.msra.mxu0 %v320_v48  ;;  %756 = vmatpush.bf16.xpose.msra.mxu1 %v320_v48 }
  0x2c   : > { %757 = vmatpush.bf16.xpose.msra.mxu2 %v320_v48  ;;  %758 = vmatpush.bf16.xpose.msra.mxu3 %v320_v48  ;;  %v449_v48 = vmul.f32 %v255_v63, %v255_v63 }
  0x2d   : > { %427 = vadd.xlane.f32.xlu1 %v426_v51  ;;  %430 = vadd.xlane.f32.xlu2 %v429_v52  ;;  %v308_v51 = vsel %vm282_vm0, %v274_v45, 0  ;;  %v478_v52 = vsel %vm282_vm0, %v450_v46, 0.0 }
  0x2e   : > { %424 = vadd.xlane.f32.xlu0 %v423_v54  ;;  %v481_v54 = vsel %vm282_vm0, %v451_v47, 0.0  ;;  %v475_v56 = vsel %vm282_vm0, %v449_v48, 0.0 }
  0x33   : > { %335 = vmatpush.bf16.xpose.msra.mxu0 %v317_v61  ;;  %759 = vmatpush.bf16.xpose.msra.mxu1 %v317_v61 }
  0x34   : > { %760 = vmatpush.bf16.xpose.msra.mxu2 %v317_v61  ;;  %761 = vmatpush.bf16.xpose.msra.mxu3 %v317_v61  ;;  %v272_v61 = vpack.c.bf16 %v980_v53, %v989_v57  ;;  %v459_v57 = vmul.f32 %v864_v1, %v864_v1 }
  0x35   : > { %436 = vadd.xlane.f32.xlu1 %v435_v2  ;;  %439 = vadd.xlane.f32.xlu2 %v438_v5 }
  0x36   : > { %433 = vadd.xlane.f32.xlu0 %v432_v10  ;;  %v505_v63 = vsel %vm282_vm0, %v459_v57, 0.0 }
  0x3b   : > { %336 = vmatpush.bf16.xpose.msra.mxu0 %v314_v21  ;;  %762 = vmatpush.bf16.xpose.msra.mxu1 %v314_v21 }
  0x3c   : > { %763 = vmatpush.bf16.xpose.msra.mxu2 %v314_v21  ;;  %764 = vmatpush.bf16.xpose.msra.mxu3 %v314_v21 }
  0x3d   : > { %461 = vadd.xlane.f32.xlu1 %v460_v26  ;;  %464 = vadd.xlane.f32.xlu2 %v463_v28 }
  0x3e   : > { %442 = vadd.xlane.f32.xlu0 %v441_v30 }
  0x43   : > { %337 = vmatpush.bf16.xpose.msra.mxu0 %v311_v38  ;;  %765 = vmatpush.bf16.xpose.msra.mxu1 %v311_v38 }
  0x44   : > { %766 = vmatpush.bf16.xpose.msra.mxu2 %v311_v38  ;;  %767 = vmatpush.bf16.xpose.msra.mxu3 %v311_v38 }
  0x45   : > { %470 = vadd.xlane.f32.xlu1 %v469_v39  ;;  %473 = vadd.xlane.f32.xlu2 %v472_v41 }
  0x46   : > { %467 = vadd.xlane.f32.xlu0 %v466_v43 }
  0x4b   : > { %338 = vmatpush.bf16.xpose.msra.mxu0 %v308_v51  ;;  %768 = vmatpush.bf16.xpose.msra.mxu1 %v308_v51 }
  0x4c   : > { %769 = vmatpush.bf16.xpose.msra.mxu2 %v308_v51  ;;  %770 = vmatpush.bf16.xpose.msra.mxu3 %v308_v51 }
  0x4d   : > { %479 = vadd.xlane.f32.xlu1 %v478_v52  ;;  %482 = vadd.xlane.f32.xlu2 %v481_v54 }
  0x4e   : > { %476 = vadd.xlane.f32.xlu0 %v475_v56 }
  0x52   : > { %734 = vmatmul.msk.bf16.vlgmr.msra.gmra.mxu0 %vm282_vm0, %v266_v49  ;;  %736 = vmatmul.msk.bf16.vlgmr.msra.gmra.mxu1 %vm282_vm0, %v268_v50 }
  0x53   : > { %738 = vmatmul.msk.bf16.vlgmr.msra.gmra.mxu2 %vm282_vm0, %v270_v60  ;;  %740 = vmatmul.msk.bf16.vlgmr.msra.gmra.mxu3 %vm282_vm0, %v272_v61 }
  0x55   : > { %491 = vadd.xlane.f32.xlu2 %v490_v4  ;;  %488 = vadd.xlane.f32.xlu1 %v487_v9 }
  0x56   : > { %485 = vadd.xlane.f32.xlu0 %v484_v15 }
  0x5d   : > { %500 = vadd.xlane.f32.xlu2 %v499_v23  ;;  %497 = vadd.xlane.f32.xlu1 %v496_v40 }
  0x5e   : > { %494 = vadd.xlane.f32.xlu0 %v493_v27 }
  0x62   : > { %735 = vmatmul.msk.bf16.gmra.mxu0 %vm282_vm0, %v267_v12  ;;  %737 = vmatmul.msk.bf16.gmra.mxu1 %vm282_vm0, %v269_v29 }
  0x63   : > { %739 = vmatmul.msk.bf16.gmra.mxu2 %vm282_vm0, %v271_v36  ;;  %741 = vmatmul.msk.bf16.gmra.mxu3 %vm282_vm0, %v273_v37 }
  0x65   : > { %506 = vadd.xlane.f32.xlu1 %v505_v63 }
  0x66   : > { %503 = vadd.xlane.f32.xlu0 %v502_v24 }
  0x88   : > { %v1073_v3 = vpop.xlane.xlu1 %403  ;;  %v1075_v14 = vpop.xlane.xlu2 %409 }
  0x89   : > { %v1079_v44 = vpop.xlane.xlu0 %397 }
  0x90   : > { %v1082_v53 = vpop.xlane.xlu1 %406  ;;  %v1084_v55 = vpop.xlane.xlu2 %412 }
  0x91   : > { %v1086_v6 = vpop.xlane.xlu0 %400 }
  0x98   : > { %v1091_v2 = vpop.xlane.xlu1 %418  ;;  %v1093_v0 = vpop.xlane.xlu2 %421 }
  0x99   : > { %v1095_v5 = vpop.xlane.xlu0 %415 }
  0xa0   : > { %v1097_v8 = vpop.xlane.xlu1 %427  ;;  %v1101_v11 = vpop.xlane.xlu2 %430 }
  0xa1   : > { %v1099_v10 = vpop.xlane.xlu0 %424 }
  0xa8   : > { %v1103_v12 = vpop.xlane.xlu1 %436  ;;  %v1107_v1 = vpop.xlane.xlu2 %439 }
  0xa9   : > { %v1105_v13 = vpop.xlane.xlu0 %433 }
  0xb0   : > { %v462_v16 = vpop.xlane.xlu1 %461  ;;  %v465_v19 = vpop.xlane.xlu2 %464 }
  0xb1   : > { %540 = vxpose.xlu2.b32.start [1/16] (narrow) %v462_v16, 8  ;;  %v1109_v17 = vpop.xlane.xlu0 %442 }
  0xb8   : > { %v471_v21 = vpop.xlane.xlu1 %470  ;;  %v474_v22 = vpop.xlane.xlu2 %473 }
  0xb9   : > { %541 = vxpose.xlu2.b32.cont [2/16] (narrow) %v465_v19, 8  ;;  %v468_v20 = vpop.xlane.xlu0 %467 }
  0xc0   : > { %v480_v26 = vpop.xlane.xlu1 %479  ;;  %v483_v28 = vpop.xlane.xlu2 %482 }
  0xc1   : > { %542 = vxpose.xlu2.b32.cont [3/16] (narrow) %v468_v20, 8  ;;  %v477_v25 = vpop.xlane.xlu0 %476 }
  0xc8   : > { %v489_v32 = vpop.xlane.xlu1 %488  ;;  %v492_v33 = vpop.xlane.xlu2 %491 }
  0xc9   : > { %543 = vxpose.xlu2.b32.cont [4/16] (narrow) %v471_v21, 8  ;;  %v486_v30 = vpop.xlane.xlu0 %485 }
  0xcf   : > { %v340_v43 = vpop.f32.mrf.mxu0  ;;  %v350_v45 = vpop.f32.mrf.mxu1 }
  0xd0   : > { %v498_v35 = vpop.xlane.xlu1 %497  ;;  %v501_v38 = vpop.xlane.xlu2 %500  ;;  %v508_v59 = vmul.f32 2.0, %v340_v43  ;;  %v512_v4 = vmul.f32 2.0, %v350_v45 }
  0xd1   : > { %544 = vxpose.xlu2.b32.cont [5/16] (narrow) %v474_v22, 8  ;;  %v495_v34 = vpop.xlane.xlu0 %494 }
  0xd2   : > { %v524_v18 = vsub.f32 %v508_v59, %v1079_v44  ;;  %v528_v31 = vsub.f32 %v512_v4, %v1075_v14 }
  0xd6   : > { %v360_v46 = vpop.f32.mrf.mxu2  ;;  %v370_v48 = vpop.f32.mrf.mxu3 }
  0xd7   : > { %v342_v47 = vpop.f32.mrf.mxu0  ;;  %v352_v51 = vpop.f32.mrf.mxu1  ;;  %v516_v44 = vmul.f32 2.0, %v360_v46 }
  0xd8   : > { %v507_v41 = vpop.xlane.xlu1 %506  ;;  %v509_v60 = vmul.f32 2.0, %v342_v47  ;;  %v513_v23 = vmul.f32 2.0, %v352_v51 }
  0xd9   : > { %545 = vxpose.xlu2.b32.cont [6/16] (narrow) %v477_v25, 8  ;;  %v504_v39 = vpop.xlane.xlu0 %503 }
  0xda   : > { %v525_v36 = vsub.f32 %v509_v60, %v1086_v6 }
  0xde   : > { %v362_v52 = vpop.f32.mrf.mxu2  ;;  %v372_v56 = vpop.f32.mrf.mxu3 }
  0xdf   : > { %v345_v54 = vpop.f32.mrf.mxu0  ;;  %v355_v49 = vpop.f32.mrf.mxu1  ;;  %v517_v16 = vmul.f32 2.0, %v362_v52 }
  0xe0   : > { %v510_v61 = vmul.f32 2.0, %v345_v54  ;;  %v514_v37 = vmul.f32 2.0, %v355_v49 }
  0xe1   : > { %546 = vxpose.xlu2.b32.cont [7/16] (narrow) %v480_v26, 8  ;;  %v532_v26 = vsub.f32 %v516_v44, %v1093_v0 }
  0xe2   : > { %v526_v7 = vsub.f32 %v510_v61, %v1073_v3  ;;  %v529_v3 = vsub.f32 %v513_v23, %v1084_v55  ;;  %v530_v20 = vsub.f32 %v514_v37, %v1095_v5  ;;  %v533_v5 = vsub.f32 %v517_v16, %v1099_v10 }
  0xe6   : > { %v365_v50 = vpop.f32.mrf.mxu2  ;;  %v375_v62 = vpop.f32.mrf.mxu3 }
  0xe7   : > { %v347_v58 = vpop.f32.mrf.mxu0  ;;  %v357_v15 = vpop.f32.mrf.mxu1  ;;  %v518_v21 = vmul.f32 2.0, %v365_v50 }
  0xe8   : > { %v511_v9 = vmul.f32 2.0, %v347_v58  ;;  %v515_v40 = vmul.f32 2.0, %v357_v15 }
  0xe9   : > { %547 = vxpose.xlu2.b32.cont [8/16] (narrow) %v483_v28, 8  ;;  %v520_v28 = vmul.f32 2.0, %v370_v48 }
  0xea   : > { %v527_v42 = vsub.f32 %v511_v9, %v1082_v53  ;;  %v531_v14 = vsub.f32 %v515_v40, %v1091_v2  ;;  %v534_v2 = vsub.f32 %v518_v21, %v1097_v8 }
  0xeb   : > { %v536_v10 = vsub.f32 %v520_v28, %v1105_v13 }
  0xee   : > { %v367_v24 = vpop.f32.mrf.mxu2 }
  0xef   : > { %v519_v53 = vmul.f32 2.0, %v367_v24 }
  0xf1   : > { %548 = vxpose.xlu2.b32.cont [9/16] (narrow) %v486_v30, 8  ;;  %v377_v30 = vpop.f32.mrf.mxu3  ;;  %v535_v0 = vsub.f32 %v519_v53, %v1101_v11 }
  0xf9   : > { %549 = vxpose.xlu2.b32.cont [10/16] (narrow) %v489_v32, 8  ;;  %v521_v32 = vmul.f32 2.0, %v372_v56 }
  0xfb   : > { %v537_v8 = vsub.f32 %v521_v32, %v1103_v12 }
 0x101   : > { %550 = vxpose.xlu2.b32.cont [11/16] (narrow) %v492_v33, 8 }
 0x109   : > { %551 = vxpose.xlu2.b32.cont [12/16] (narrow) %v495_v34, 8  ;;  %v522_v34 = vmul.f32 2.0, %v375_v62 }
 0x10b   : > { %v538_v45 = vsub.f32 %v522_v34, %v1107_v1 }
 0x111   : > { %552 = vxpose.xlu2.b32.cont [13/16] (narrow) %v498_v35, 8 }
 0x119   : > { %553 = vxpose.xlu2.b32.cont [14/16] (narrow) %v501_v38, 8  ;;  %v523_v38 = vmul.f32 2.0, %v377_v30 }
 0x11b   : > { %v539_v46 = vsub.f32 %v523_v38, %v1109_v17 }
 0x121   : > { %554 = vxpose.xlu2.b32.cont [15/16] (narrow) %v504_v39, 8 }
 0x129   : > { %555 = vxpose.xlu2.b32.end [16/16] (narrow) %v507_v41, 8 }
 0x14a   : > { %v556_v29 = vpop.trf.xlu2 }
 0x14b   : > { %v572_v27 = vperm.slane %v556_v29, 0 }
 0x14d   : > { %v573_v57 = vsub.f32 %v524_v18, %v572_v27  ;;  %v574_v6 = vsub.f32 %v525_v36, %v572_v27  ;;  %v575_v63 = vsub.f32 %v526_v7, %v572_v27  ;;  %v576_v19 = vsub.f32 %v527_v42, %v572_v27 }
 0x14e   : > { %v577_v22 = vsub.f32 %v528_v31, %v572_v27  ;;  %v578_v25 = vsub.f32 %v529_v3, %v572_v27  ;;  %v579_v55 = vsub.f32 %v530_v20, %v572_v27  ;;  %v580_v33 = vsub.f32 %v531_v14, %v572_v27 }
 0x14f   : > { %589 = vst [vmem:[%s1118_s22] sm:$0xff] %v573_v57  ;;  %v581_v35 = vsub.f32 %v532_v26, %v572_v27  ;;  %v582_v39 = vsub.f32 %v533_v5, %v572_v27  ;;  %v583_v41 = vsub.f32 %v534_v2, %v572_v27  ;;  %v584_v43 = vsub.f32 %v535_v0, %v572_v27 }
 0x150   : > { %590 = vst [vmem:[%s1118_s22 + $0x8] sm:$0xff] %v574_v6  ;;  %v585_v11 = vsub.f32 %v536_v10, %v572_v27  ;;  %v586_v47 = vsub.f32 %v537_v8, %v572_v27  ;;  %v587_v48 = vsub.f32 %v538_v45, %v572_v27  ;;  %v588_v13 = vsub.f32 %v539_v46, %v572_v27 }
 0x151   : > { %591 = vst [vmem:[%s1118_s22 + $0x10] sm:$0xff] %v575_v63 }
 0x152   : > { %592 = vst [vmem:[%s1118_s22 + $0x18] sm:$0xff] %v576_v19 }
 0x153   : > { %593 = vst [vmem:[%s1118_s22 + $0x20] sm:$0xff] %v577_v22 }
 0x154   : > { %594 = vst [vmem:[%s1118_s22 + $0x28] sm:$0xff] %v578_v25 }
 0x155   : > { %595 = vst [vmem:[%s1118_s22 + $0x30] sm:$0xff] %v579_v55 }
 0x156   : > { %596 = vst [vmem:[%s1118_s22 + $0x38] sm:$0xff] %v580_v33 }
 0x157   : > { %597 = vst [vmem:[%s1118_s22 + $0x40] sm:$0xff] %v581_v35 }
 0x158   : > { %598 = vst [vmem:[%s1118_s22 + $0x48] sm:$0xff] %v582_v39 }
 0x159   : > { %599 = vst [vmem:[%s1118_s22 + $0x50] sm:$0xff] %v583_v41 }
 0x15a   : > { %600 = vst [vmem:[%s1118_s22 + $0x58] sm:$0xff] %v584_v43 }
 0x15b   : > { %601 = vst [vmem:[%s1118_s22 + $0x60] sm:$0xff] %v585_v11 }
 0x15c   : > { %602 = vst [vmem:[%s1118_s22 + $0x68] sm:$0xff] %v586_v47 }
 0x15d   : > { %603 = vst [vmem:[%s1118_s22 + $0x70] sm:$0xff] %v587_v48 }
 0x15e   : > { %604 = vst [vmem:[%s1118_s22 + $0x78] sm:$0xff] %v588_v13 }
 0x15f PF: > { %s12_s11 = sadd.s32 1, %s817_s11   ;;  %s1161_s9 = smov %s813_s10 }
 0x160   : > { %p9_p5 = scmp.ge.s32.totalorder %s12_s11, 4   ;;  %s1162_s10 = smov %s1164_s12 }
 0x162   :  { %11 = sbr.rel (!%p9_p5) target bundleno = 2 (0x2), region = 61 }

// kernel: gann_forward.11
= control target key start
LH: loop header
LB: loop body
LE: loop exit
PB: predicated region body
PF: predicated region fallthrough
CT: control target
= control target key end

     0   :  { %s547_s12 = smov 0   ;;  %s549_s13 = smov 0   ;;  %s650_s0 = inlined_call_operand.vmem [shape: f32[2,128,8], index: 0, kind: input, shape index: {}]   ;;  %s651_s1 = inlined_call_operand.vmem [shape: bf16[8,64], index: 1, kind: input, shape index: {}]   ;;  %s652_s2 = inlined_call_operand.vmem [shape: f32[1,1,64], index: 2, kind: input, shape index: {}]   ;;  %s653_s3 = inlined_call_operand.vmem [shape: bf16[2,128,64], index: 3, kind: output, shape index: {}]  }
   0x1   :  { %s551_s14 = smov 0  }
   0x2 LB: > { %s25_s15 = sadd.s32 1, %s521_s13  ;;  %p458_p0 = scmp.ge.s32.totalorder %s525_s14, 1  ;;  %s525_s14 = sphi %s551_s14, %s13_s14   ;;  %s521_s13 = sphi %s549_s13, %s655_s13   ;;  %s517_s12 = sphi %s547_s12, %s654_s12  }
   0x3   : > { %p27_p1 = scmp.ge.s32.totalorder %s25_s15, 2  ;;  %p158_p2 = scmp.lt.s32.totalorder %s525_s14, 3 }
   0x5   : > { %s657_s15 = smov (%p27_p1, %s25_s15), 0  ;;  %p159_p3 = pnand %p458_p0, %p158_p2 }
   0x6   : > { %p191_p4 = scmp.lt.s32.totalorder (!%p159_p3), %s517_s12, 1 }
   0x7   : > { %162 = sbr.rel (%p159_p3) target bundleno = 184 (0xb8), region = 32 }
   0xc   : > { %v235_v0 = vld [vmem:[%s651_s1] sm:$0xf]  ;;  %vm265_vm0 = vcmask 1043456   ;;  %s659_s12 = smov (!%p191_p4, %s517_s12), 1  ;;  %vm240_vm1 = vcmask 64512   ;;  %vm350_vm2 = vcmask 519168  }
   0xd   : > { %v267_v1 = vsel %vm265_vm0, %v235_v0, 0  ;;  %s473_s18 = sshll.u32 %s659_s12, 7  ;;  %v585_v26 = vld [vmem:[%s652_s2] ss:$0 sm:$0xff]  ;;  %s474_s24 = sshll.u32 %s659_s12, 6 }
   0xe   : > { %276 = vmatpush.bf16.msra.mxu0 %v267_v1  ;;  %475 = vmatpush.bf16.msra.mxu1 %v267_v1  ;;  %s198_s21 = scalar_lea.vmem %s650_s0, %s473_s18  ;;  %s593_s27 = scalar_lea.vmem %s653_s3, %s474_s24 }
   0xf   : > { %476 = vmatpush.bf16.msra.mxu2 %v267_v1  ;;  %477 = vmatpush.bf16.msra.mxu3 %v267_v1  ;;  %v211_v2 = vld [vmem:[%s198_s21] sm:$0xff]  ;;  %v212_v3 = vld [vmem:[%s198_s21 + $0x8] sm:$0xff]  ;;  %v213_v14 = vld [vmem:[%s198_s21 + $0x10] sm:$0xff] }
  0x10   : > { %v215_v4 = vld [vmem:[%s198_s21 + $0x20] sm:$0xff]  ;;  %v227_v5 = vpack.c.bf16 %v212_v3, %v211_v2  ;;  %v216_v6 = vld [vmem:[%s198_s21 + $0x28] sm:$0xff]  ;;  %v214_v15 = vld [vmem:[%s198_s21 + $0x18] sm:$0xff] }
  0x11   : > { %v219_v7 = vld [vmem:[%s198_s21 + $0x40] sm:$0xff]  ;;  %v220_v8 = vld [vmem:[%s198_s21 + $0x48] sm:$0xff]  ;;  %v229_v9 = vpack.c.bf16 %v216_v6, %v215_v4  ;;  %v217_v16 = vld [vmem:[%s198_s21 + $0x30] sm:$0xff]  ;;  %v228_v22 = vpack.c.bf16 %v214_v15, %v213_v14 }
  0x12   : > { %v231_v10 = vpack.c.bf16 %v220_v8, %v219_v7  ;;  %v223_v11 = vld [vmem:[%s198_s21 + $0x60] sm:$0xff]  ;;  %v224_v12 = vld [vmem:[%s198_s21 + $0x68] sm:$0xff]  ;;  %463 = vmatmul.msk.bf16.vlgmr.msra.gmra.mxu0 %vm240_vm1, %v227_v5  ;;  %v218_v17 = vld [vmem:[%s198_s21 + $0x38] sm:$0xff] }
  0x13   : > { %v233_v13 = vpack.c.bf16 %v224_v12, %v223_v11  ;;  %465 = vmatmul.msk.bf16.vlgmr.msra.gmra.mxu1 %vm240_vm1, %v229_v9  ;;  %v221_v18 = vld [vmem:[%s198_s21 + $0x50] sm:$0xff]  ;;  %v222_v19 = vld [vmem:[%s198_s21 + $0x58] sm:$0xff]  ;;  %v230_v23 = vpack.c.bf16 %v218_v17, %v217_v16 }
  0x14   : > { %467 = vmatmul.msk.bf16.vlgmr.msra.gmra.mxu2 %vm240_vm1, %v231_v10  ;;  %v225_v20 = vld [vmem:[%s198_s21 + $0x70] sm:$0xff]  ;;  %v226_v21 = vld [vmem:[%s198_s21 + $0x78] sm:$0xff]  ;;  %v232_v24 = vpack.c.bf16 %v222_v19, %v221_v18 }
  0x15   : > { %469 = vmatmul.msk.bf16.vlgmr.msra.gmra.mxu3 %vm240_vm1, %v233_v13  ;;  %v234_v25 = vpack.c.bf16 %v226_v21, %v225_v20 }
  0x22   : > { %464 = vmatmul.msk.bf16.gmra.mxu0 %vm240_vm1, %v228_v22 }
  0x23   : > { %466 = vmatmul.msk.bf16.gmra.mxu1 %vm240_vm1, %v230_v23 }
  0x24   : > { %468 = vmatmul.msk.bf16.gmra.mxu2 %vm240_vm1, %v232_v24 }
  0x25   : > { %470 = vmatmul.msk.bf16.gmra.mxu3 %vm240_vm1, %v234_v25 }
  0x8f   : > { %v278_v27 = vpop.f32.mrf.mxu0 }
  0x90   : > { %v279_v28 = vadd.f32 %v585_v26, %v278_v27  ;;  %v288_v29 = vpop.f32.mrf.mxu1 }
  0x91   : > { %v289_v30 = vadd.f32 %v585_v26, %v288_v29 }
  0x92   : > { %v318_v31 = vmax.f32 %v279_v28, 0.0 }
  0x93   : > { %v322_v32 = vmax.f32 %v289_v30, 0.0 }
  0x94   : > { %v334_v33 = vpack.c.bf16 %v318_v31, %v318_v31 }
  0x95   : > { %v338_v34 = vpack.c.bf16 %v322_v32, %v322_v32 }
  0x96   : > { %351 = vst.msk [vmem:[%s593_s27] sm:$0xf] %vm350_vm2, %v334_v33 }
  0x97   : > { %v298_v35 = vpop.f32.mrf.mxu2  ;;  %355 = vst.msk [vmem:[%s593_s27 + $0x10] sm:$0xf] %vm350_vm2, %v338_v34  ;;  %v280_v38 = vpop.f32.mrf.mxu0 }
  0x98   : > { %v299_v36 = vadd.f32 %v585_v26, %v298_v35  ;;  %v308_v37 = vpop.f32.mrf.mxu3  ;;  %v281_v40 = vadd.f32 %v585_v26, %v280_v38  ;;  %v290_v41 = vpop.f32.mrf.mxu1 }
  0x99   : > { %v309_v39 = vadd.f32 %v585_v26, %v308_v37  ;;  %v291_v43 = vadd.f32 %v585_v26, %v290_v41 }
  0x9a   : > { %v326_v42 = vmax.f32 %v299_v36, 0.0  ;;  %v319_v45 = vmax.f32 %v281_v40, 0.0 }
  0x9b   : > { %v330_v44 = vmax.f32 %v309_v39, 0.0  ;;  %v323_v47 = vmax.f32 %v291_v43, 0.0 }
  0x9c   : > { %v342_v46 = vpack.c.bf16 %v326_v42, %v326_v42  ;;  %v335_v49 = vpack.c.bf16 %v319_v45, %v319_v45 }
  0x9d   : > { %v346_v48 = vpack.c.bf16 %v330_v44, %v330_v44  ;;  %v339_v50 = vpack.c.bf16 %v323_v47, %v323_v47 }
  0x9e   : > { %359 = vst.msk [vmem:[%s593_s27 + $0x20] sm:$0xf] %vm350_vm2, %v342_v46 }
  0x9f   : > { %363 = vst.msk [vmem:[%s593_s27 + $0x30] sm:$0xf] %vm350_vm2, %v346_v48  ;;  %v300_v51 = vpop.f32.mrf.mxu2  ;;  %v283_v54 = vpop.f32.mrf.mxu0 }
  0xa0   : > { %352 = vst.msk [vmem:[%s593_s27 + $0x4] sm:$0xf] %vm350_vm2, %v335_v49  ;;  %v301_v52 = vadd.f32 %v585_v26, %v300_v51  ;;  %v310_v53 = vpop.f32.mrf.mxu3  ;;  %v284_v56 = vadd.f32 %v585_v26, %v283_v54  ;;  %v293_v57 = vpop.f32.mrf.mxu1 }
  0xa1   : > { %356 = vst.msk [vmem:[%s593_s27 + $0x14] sm:$0xf] %vm350_vm2, %v339_v50  ;;  %v311_v55 = vadd.f32 %v585_v26, %v310_v53  ;;  %v294_v59 = vadd.f32 %v585_v26, %v293_v57 }
  0xa2   : > { %v327_v58 = vmax.f32 %v301_v52, 0.0  ;;  %v320_v61 = vmax.f32 %v284_v56, 0.0 }
  0xa3   : > { %v331_v60 = vmax.f32 %v311_v55, 0.0  ;;  %v324_v63 = vmax.f32 %v294_v59, 0.0 }
  0xa4   : > { %v343_v62 = vpack.c.bf16 %v327_v58, %v327_v58  ;;  %v336_v1 = vpack.c.bf16 %v320_v61, %v320_v61 }
  0xa5   : > { %v347_v0 = vpack.c.bf16 %v331_v60, %v331_v60  ;;  %v340_v2 = vpack.c.bf16 %v324_v63, %v324_v63 }
  0xa6   : > { %360 = vst.msk [vmem:[%s593_s27 + $0x24] sm:$0xf] %vm350_vm2, %v343_v62 }
  0xa7   : > { %364 = vst.msk [vmem:[%s593_s27 + $0x34] sm:$0xf] %vm350_vm2, %v347_v0  ;;  %v303_v3 = vpop.f32.mrf.mxu2  ;;  %v285_v6 = vpop.f32.mrf.mxu0 }
  0xa8   : > { %353 = vst.msk [vmem:[%s593_s27 + $0x8] sm:$0xf] %vm350_vm2, %v336_v1  ;;  %v304_v4 = vadd.f32 %v585_v26, %v303_v3  ;;  %v313_v5 = vpop.f32.mrf.mxu3  ;;  %v286_v8 = vadd.f32 %v585_v26, %v285_v6  ;;  %v295_v9 = vpop.f32.mrf.mxu1 }
  0xa9   : > { %357 = vst.msk [vmem:[%s593_s27 + $0x18] sm:$0xf] %vm350_vm2, %v340_v2  ;;  %v314_v7 = vadd.f32 %v585_v26, %v313_v5  ;;  %v296_v11 = vadd.f32 %v585_v26, %v295_v9 }
  0xaa   : > { %v328_v10 = vmax.f32 %v304_v4, 0.0  ;;  %v321_v13 = vmax.f32 %v286_v8, 0.0 }
  0xab   : > { %v332_v12 = vmax.f32 %v314_v7, 0.0  ;;  %v325_v15 = vmax.f32 %v296_v11, 0.0 }
  0xac   : > { %v344_v14 = vpack.c.bf16 %v328_v10, %v328_v10  ;;  %v337_v17 = vpack.c.bf16 %v321_v13, %v321_v13 }
  0xad   : > { %v348_v16 = vpack.c.bf16 %v332_v12, %v332_v12  ;;  %v341_v18 = vpack.c.bf16 %v325_v15, %v325_v15 }
  0xae   : > { %361 = vst.msk [vmem:[%s593_s27 + $0x28] sm:$0xf] %vm350_vm2, %v344_v14 }
  0xaf   : > { %365 = vst.msk [vmem:[%s593_s27 + $0x38] sm:$0xf] %vm350_vm2, %v348_v16  ;;  %v305_v19 = vpop.f32.mrf.mxu2 }
  0xb0   : > { %354 = vst.msk [vmem:[%s593_s27 + $0xc] sm:$0xf] %vm350_vm2, %v337_v17  ;;  %v306_v20 = vadd.f32 %v585_v26, %v305_v19  ;;  %v315_v21 = vpop.f32.mrf.mxu3 }
  0xb1   : > { %358 = vst.msk [vmem:[%s593_s27 + $0x1c] sm:$0xf] %vm350_vm2, %v341_v18  ;;  %v316_v22 = vadd.f32 %v585_v26, %v315_v21 }
  0xb2   : > { %v329_v23 = vmax.f32 %v306_v20, 0.0 }
  0xb3   : > { %v333_v24 = vmax.f32 %v316_v22, 0.0 }
  0xb4   : > { %v345_v25 = vpack.c.bf16 %v329_v23, %v329_v23 }
  0xb5   : > { %v349_v27 = vpack.c.bf16 %v333_v24, %v333_v24 }
  0xb6   : > { %362 = vst.msk [vmem:[%s593_s27 + $0x2c] sm:$0xf] %vm350_vm2, %v345_v25 }
  0xb7   : > { %366 = vst.msk [vmem:[%s593_s27 + $0x3c] sm:$0xf] %vm350_vm2, %v349_v27 }
  0xb8 PF: > { %s13_s14 = sadd.s32 1, %s525_s14   ;;  %s654_s12 = smov %s521_s13 }
  0xb9   : > { %p10_p5 = scmp.ge.s32.totalorder %s13_s14, 4   ;;  %s655_s13 = smov %s657_s15 }
  0xbb   :  { %12 = sbr.rel (!%p10_p5) target bundleno = 2 (0x2), region = 62 }

// kernel: gann_forward.12
= control target key start
LH: loop header
LB: loop body
LE: loop exit
PB: predicated region body
PF: predicated region fallthrough
CT: control target
= control target key end

     0   :  { %s1010_s9 = smov 0   ;;  %s1012_s10 = smov 0   ;;  %s1203_s0 = inlined_call_operand.vmem [shape: bf16[2,128,64], index: 0, kind: input, shape index: {}, may-alias: {0,1}]   ;;  %s1204_s1 = inlined_call_operand.vmem [shape: bf16[2,128,64], index: 1, kind: input, shape index: {}, may-alias: {0,1}]   ;;  %s1205_s2 = inlined_call_operand.vmem [shape: f32[2,128,128], index: 2, kind: output, shape index: {}]  }
   0x1   :  { %s1014_s11 = smov 0  }
   0x2 LB: > { %s31_s12 = sadd.s32 1, %s989_s10  ;;  %p823_p0 = scmp.ge.s32.totalorder %s993_s11, 1  ;;  %s993_s11 = sphi %s1014_s11, %s12_s11   ;;  %s989_s10 = sphi %s1012_s10, %s1207_s10   ;;  %s985_s9 = sphi %s1010_s9, %s1206_s9  }
   0x3   : > { %p33_p1 = scmp.ge.s32.totalorder %s31_s12, 2  ;;  %p159_p2 = scmp.lt.s32.totalorder %s993_s11, 3 }
   0x5   : > { %s1209_s12 = smov (%p33_p1, %s31_s12), 0  ;;  %p160_p3 = pnand %p823_p0, %p159_p2 }
   0x6   : > { %p202_p4 = scmp.lt.s32.totalorder (!%p160_p3), %s985_s9, 1 }
   0x7   : > { %163 = sbr.rel (%p160_p3) target bundleno = 351 (0x15f), region = 28 }
   0xc   : > { %s1211_s9 = smov (!%p202_p4, %s985_s9), 1  ;;  %vm346_vm0 = vcmask 523264  }
   0xd   : > { %s904_s13 = sshll.u32 %s1211_s9, 6  ;;  %s906_s20 = sshll.u32 %s1211_s9, 7 }
   0xe   : > { %s1034_s16 = scalar_lea.vmem %s1204_s1, %s904_s13  ;;  %s1039_s19 = scalar_lea.vmem %s1203_s0, %s904_s13 }
   0xf   : > { %v922_v0 = vld [vmem:[%s1034_s16 + $0x38] sm:$0xff]  ;;  %v236_v1 = vld [vmem:[%s1039_s19 + $0x8] sm:$0xff]   ;;  %v238_v3 = vld [vmem:[%s1039_s19 + $0x10] sm:$0xff]   ;;  %s1165_s23 = scalar_lea.vmem %s1205_s2, %s906_s20 }
  0x10   : > { %v446_v2 = vunpack.c.l.bf16 %v236_v1  ;;  %v234_v4 = vld [vmem:[%s1039_s19] sm:$0xff]   ;;  %v393_v5 = vsel %vm346_vm0, %v922_v0, 0  ;;  %v448_v6 = vunpack.c.l.bf16 %v238_v3  ;;  %v447_v9 = vunpack.c.h.bf16 %v236_v1  ;;  %v921_v10 = vld [vmem:[%s1034_s16 + $0x30] sm:$0xff]  ;;  %v240_v23 = vld [vmem:[%s1039_s19 + $0x18] sm:$0xf] }
  0x11   : > { %v444_v7 = vunpack.c.l.bf16 %v234_v4  ;;  %395 = vmatpush.bf16.xpose.msra.mxu0 %v393_v5  ;;  %923 = vmatpush.bf16.xpose.msra.mxu1 %v393_v5  ;;  %v449_v13 = vunpack.c.h.bf16 %v238_v3  ;;  %v445_v14 = vunpack.c.h.bf16 %v234_v4  ;;  %v390_v19 = vsel %vm346_vm0, %v921_v10, 0  ;;  %v241_v21 = vld [vmem:[%s1039_s19 + $0x1c] sm:$0xff]   ;;  %v920_v26 = vld [vmem:[%s1034_s16 + $0x28] sm:$0xff]  ;;  %v243_v36 = vld [vmem:[%s1039_s19 + $0x24] sm:$0xf] }
  0x12   : > { %v478_v8 = vmul.f32 %v446_v2, %v446_v2  ;;  %924 = vmatpush.bf16.xpose.msra.mxu2 %v393_v5  ;;  %925 = vmatpush.bf16.xpose.msra.mxu3 %v393_v5  ;;  %v480_v11 = vmul.f32 %v448_v6, %v448_v6  ;;  %v479_v18 = vmul.f32 %v447_v9, %v447_v9  ;;  %v451_v25 = vunpack.c.l.bf16 %v241_v21  ;;  %v244_v34 = vld [vmem:[%s1039_s19 + $0x28] sm:$0xff]   ;;  %v919_v39 = vld [vmem:[%s1034_s16 + $0x20] sm:$0xff]  ;;  %v247_v47 = vld [vmem:[%s1039_s19 + $0x34] sm:$0xff]  }
  0x13   : > { %v476_v12 = vmul.f32 %v444_v7, %v444_v7  ;;  %v481_v20 = vmul.f32 %v449_v13, %v449_v13  ;;  %v477_v22 = vmul.f32 %v445_v14, %v445_v14  ;;  %v452_v29 = vunpack.c.h.bf16 %v241_v21  ;;  %v246_v49 = vld [vmem:[%s1039_s19 + $0x30] sm:$0xf]  ;;  %v918_v52 = vld [vmem:[%s1034_s16 + $0x18] sm:$0xff]  ;;  %v250_v60 = vld [vmem:[%s1034_s16] sm:$0xff]  }
  0x14   : > { %v498_v15 = vsel %vm346_vm0, %v478_v8, 0.0  ;;  %v504_v16 = vsel %vm346_vm0, %v480_v11, 0.0  ;;  %v501_v24 = vsel %vm346_vm0, %v479_v18, 0.0  ;;  %v450_v30 = vunpack.c.l.bf16 %v240_v23  ;;  %v249_v62 = vld [vmem:[%s1039_s19 + $0x3c] sm:$0xf]  ;;  %v917_v1 = vld [vmem:[%s1034_s16 + $0x10] sm:$0xff] }
  0x15   : > { %499 = vadd.xlane.f32.xlu1 %v498_v15  ;;  %v492_v17 = vsel %vm346_vm0, %v476_v12, 0.0  ;;  %505 = vadd.xlane.f32.xlu2 %v504_v16  ;;  %v507_v27 = vsel %vm346_vm0, %v481_v20, 0.0  ;;  %v495_v28 = vsel %vm346_vm0, %v477_v22, 0.0  ;;  %v483_v31 = vmul.f32 %v451_v25, %v451_v25  ;;  %v252_v10 = vld [vmem:[%s1034_s16 + $0x8] sm:$0xff]   ;;  %v254_v11 = vld [vmem:[%s1034_s16 + $0x10] sm:$0xff]   ;;  %v256_v25 = vld [vmem:[%s1034_s16 + $0x18] sm:$0xff]  }
  0x16   : > { %493 = vadd.xlane.f32.xlu0 %v492_v17  ;;  %v387_v32 = vsel %vm346_vm0, %v920_v26, 0  ;;  %v484_v33 = vmul.f32 %v452_v29, %v452_v29  ;;  %v482_v35 = vmul.f32 %v450_v30, %v450_v30  ;;  %v454_v38 = vunpack.c.l.bf16 %v244_v34  ;;  %v916_v15 = vld [vmem:[%s1034_s16 + $0x8] sm:$0xff]  ;;  %v915_v26 = vld [vmem:[%s1034_s16] sm:$0xff] }
  0x17   : > { %v513_v37 = vsel %vm346_vm0, %v483_v31, 0.0  ;;  %v455_v42 = vunpack.c.h.bf16 %v244_v34  ;;  %v453_v43 = vunpack.c.l.bf16 %v243_v36  ;;  %v384_v45 = vsel %vm346_vm0, %v919_v39, 0  ;;  %v260_v36 = vld [vmem:[%s1034_s16 + $0x28] sm:$0xff]  }
  0x18   : > { %v516_v40 = vsel %vm346_vm0, %v484_v33, 0.0  ;;  %v510_v41 = vsel %vm346_vm0, %v482_v35, 0.0  ;;  %v486_v44 = vmul.f32 %v454_v38, %v454_v38  ;;  %v457_v51 = vunpack.c.l.bf16 %v247_v47  ;;  %v258_v35 = vld [vmem:[%s1034_s16 + $0x20] sm:$0xff]  }
  0x19   : > { %396 = vmatpush.bf16.xpose.msra.mxu0 %v390_v19  ;;  %926 = vmatpush.bf16.xpose.msra.mxu1 %v390_v19  ;;  %v487_v46 = vmul.f32 %v455_v42, %v455_v42  ;;  %v485_v48 = vmul.f32 %v453_v43, %v453_v43  ;;  %v458_v55 = vunpack.c.h.bf16 %v247_v47  ;;  %v456_v56 = vunpack.c.l.bf16 %v246_v49  ;;  %v907_v43 = vld [vmem:[%s1039_s19] sm:$0xff] }
  0x1a   : > { %927 = vmatpush.bf16.xpose.msra.mxu2 %v390_v19  ;;  %928 = vmatpush.bf16.xpose.msra.mxu3 %v390_v19  ;;  %v522_v50 = vsel %vm346_vm0, %v486_v44, 0.0  ;;  %v489_v57 = vmul.f32 %v457_v51, %v457_v51  ;;  %v381_v58 = vsel %vm346_vm0, %v918_v52, 0  ;;  %v460_v0 = vunpack.c.l.bf16 %v250_v60  ;;  %v909_v44 = vld [vmem:[%s1039_s19 + $0x10] sm:$0xff] }
  0x1b   : > { %v525_v53 = vsel %vm346_vm0, %v487_v46, 0.0  ;;  %v519_v54 = vsel %vm346_vm0, %v485_v48, 0.0  ;;  %v490_v59 = vmul.f32 %v458_v55, %v458_v55  ;;  %v488_v61 = vmul.f32 %v456_v56, %v456_v56  ;;  %v913_v46 = vld [vmem:[%s1039_s19 + $0x30] sm:$0xff] }
  0x1c   : > { %v531_v63 = vsel %vm346_vm0, %v489_v57, 0.0  ;;  %v461_v4 = vunpack.c.h.bf16 %v250_v60  ;;  %v459_v5 = vunpack.c.l.bf16 %v249_v62  ;;  %v540_v6 = vmul.f32 %v460_v0, %v460_v0  ;;  %v908_v57 = vld [vmem:[%s1039_s19 + $0x8] sm:$0xff]  ;;  %v914_v60 = vld [vmem:[%s1039_s19 + $0x38] sm:$0xff]  ;;  %v262_v0 = vld [vmem:[%s1034_s16 + $0x30] sm:$0xf] }
  0x1d   : > { %502 = vadd.xlane.f32.xlu1 %v501_v24  ;;  %508 = vadd.xlane.f32.xlu2 %v507_v27  ;;  %v534_v2 = vsel %vm346_vm0, %v490_v59, 0.0  ;;  %v528_v3 = vsel %vm346_vm0, %v488_v61, 0.0  ;;  %v378_v7 = vsel %vm346_vm0, %v917_v1, 0  ;;  %v462_v13 = vunpack.c.l.bf16 %v252_v10  ;;  %v912_v59 = vld [vmem:[%s1039_s19 + $0x28] sm:$0xff] }
  0x1e   : > { %496 = vadd.xlane.f32.xlu0 %v495_v28  ;;  %v541_v8 = vmul.f32 %v461_v4, %v461_v4  ;;  %v491_v9 = vmul.f32 %v459_v5, %v459_v5  ;;  %v556_v12 = vsel %vm346_vm0, %v540_v6, 0.0  ;;  %v463_v14 = vunpack.c.h.bf16 %v252_v10 }
  0x1f   : > { %v464_v18 = vunpack.c.l.bf16 %v254_v11  ;;  %v542_v19 = vmul.f32 %v462_v13, %v462_v13  ;;  %v375_v21 = vsel %vm346_vm0, %v916_v15, 0  ;;  %v465_v28 = vunpack.c.h.bf16 %v254_v11  ;;  %v265_v11 = vld [vmem:[%s1034_s16 + $0x3c] sm:$0xf] }
  0x20   : > { %v559_v16 = vsel %vm346_vm0, %v541_v8, 0.0  ;;  %v537_v17 = vsel %vm346_vm0, %v491_v9, 0.0  ;;  %v543_v20 = vmul.f32 %v463_v14, %v463_v14  ;;  %v466_v29 = vunpack.c.l.bf16 %v256_v25 }
  0x21   : > { %397 = vmatpush.bf16.xpose.msra.mxu0 %v387_v32  ;;  %929 = vmatpush.bf16.xpose.msra.mxu1 %v387_v32  ;;  %v544_v22 = vmul.f32 %v464_v18, %v464_v18  ;;  %v562_v23 = vsel %vm346_vm0, %v542_v19, 0.0  ;;  %v467_v30 = vunpack.c.h.bf16 %v256_v25  ;;  %v545_v33 = vmul.f32 %v465_v28, %v465_v28 }
  0x22   : > { %930 = vmatpush.bf16.xpose.msra.mxu2 %v387_v32  ;;  %931 = vmatpush.bf16.xpose.msra.mxu3 %v387_v32  ;;  %v565_v24 = vsel %vm346_vm0, %v543_v20, 0.0  ;;  %v546_v31 = vmul.f32 %v466_v29, %v466_v29  ;;  %v372_v32 = vsel %vm346_vm0, %v915_v26, 0  ;;  %v469_v38 = vunpack.c.h.bf16 %v258_v35 }
  0x23   : > { %v568_v27 = vsel %vm346_vm0, %v544_v22, 0.0  ;;  %v547_v34 = vmul.f32 %v467_v30, %v467_v30  ;;  %v571_v39 = vsel %vm346_vm0, %v545_v33, 0.0  ;;  %v470_v42 = vunpack.c.l.bf16 %v260_v36 }
  0x24   : > { %v549_v47 = vmul.f32 %v469_v38, %v469_v38  ;;  %v471_v61 = vunpack.c.h.bf16 %v260_v36  ;;  %v472_v1 = vunpack.c.l.bf16 %v262_v0  ;;  %v475_v14 = vunpack.c.l.bf16 %v265_v11 }
  0x25   : > { %514 = vadd.xlane.f32.xlu1 %v513_v37  ;;  %517 = vadd.xlane.f32.xlu2 %v516_v40  ;;  %v574_v37 = vsel %vm346_vm0, %v546_v31, 0.0  ;;  %v577_v40 = vsel %vm346_vm0, %v547_v34, 0.0  ;;  %v550_v49 = vmul.f32 %v470_v42, %v470_v42 }
  0x26   : > { %511 = vadd.xlane.f32.xlu0 %v510_v41  ;;  %v468_v41 = vunpack.c.l.bf16 %v258_v35  ;;  %v583_v51 = vsel %vm346_vm0, %v549_v47, 0.0  ;;  %v551_v62 = vmul.f32 %v471_v61, %v471_v61  ;;  %v555_v15 = vmul.f32 %v475_v14, %v475_v14 }
  0x28   : > { %v548_v48 = vmul.f32 %v468_v41, %v468_v41 }
  0x29   : > { %398 = vmatpush.bf16.xpose.msra.mxu0 %v384_v45  ;;  %932 = vmatpush.bf16.xpose.msra.mxu1 %v384_v45 }
  0x2a   : > { %933 = vmatpush.bf16.xpose.msra.mxu2 %v384_v45  ;;  %934 = vmatpush.bf16.xpose.msra.mxu3 %v384_v45  ;;  %v911_v45 = vld [vmem:[%s1039_s19 + $0x20] sm:$0xff]  ;;  %v580_v52 = vsel %vm346_vm0, %v548_v48, 0.0 }
  0x2d   : > { %523 = vadd.xlane.f32.xlu1 %v522_v50  ;;  %526 = vadd.xlane.f32.xlu2 %v525_v53  ;;  %v263_v50 = vld [vmem:[%s1034_s16 + $0x34] sm:$0xff]   ;;  %v586_v53 = vsel %vm346_vm0, %v550_v49, 0.0 }
  0x2e   : > { %520 = vadd.xlane.f32.xlu0 %v519_v54  ;;  %v473_v54 = vunpack.c.l.bf16 %v263_v50  ;;  %v474_v5 = vunpack.c.h.bf16 %v263_v50 }
  0x30   : > { %v553_v55 = vmul.f32 %v473_v54, %v473_v54  ;;  %v554_v8 = vmul.f32 %v474_v5, %v474_v5 }
  0x31   : > { %399 = vmatpush.bf16.xpose.msra.mxu0 %v381_v58  ;;  %935 = vmatpush.bf16.xpose.msra.mxu1 %v381_v58 }
  0x32   : > { %936 = vmatpush.bf16.xpose.msra.mxu2 %v381_v58  ;;  %937 = vmatpush.bf16.xpose.msra.mxu3 %v381_v58  ;;  %v595_v56 = vsel %vm346_vm0, %v553_v55, 0.0  ;;  %v910_v58 = vld [vmem:[%s1039_s19 + $0x18] sm:$0xff]  ;;  %v598_v9 = vsel %vm346_vm0, %v554_v8, 0.0 }
  0x35   : > { %532 = vadd.xlane.f32.xlu1 %v531_v63  ;;  %535 = vadd.xlane.f32.xlu2 %v534_v2  ;;  %v589_v63 = vsel %vm346_vm0, %v551_v62, 0.0  ;;  %v552_v2 = vmul.f32 %v472_v1, %v472_v1 }
  0x36   : > { %529 = vadd.xlane.f32.xlu0 %v528_v3 }
  0x37   : > { %v592_v3 = vsel %vm346_vm0, %v552_v2, 0.0 }
  0x39   : > { %400 = vmatpush.bf16.xpose.msra.mxu0 %v378_v7  ;;  %938 = vmatpush.bf16.xpose.msra.mxu1 %v378_v7 }
  0x3a   : > { %939 = vmatpush.bf16.xpose.msra.mxu2 %v378_v7  ;;  %940 = vmatpush.bf16.xpose.msra.mxu3 %v378_v7 }
  0x3d   : > { %557 = vadd.xlane.f32.xlu1 %v556_v12  ;;  %560 = vadd.xlane.f32.xlu2 %v559_v16  ;;  %v601_v16 = vsel %vm346_vm0, %v555_v15, 0.0 }
  0x3e   : > { %538 = vadd.xlane.f32.xlu0 %v537_v17 }
  0x41   : > { %401 = vmatpush.bf16.xpose.msra.mxu0 %v375_v21  ;;  %941 = vmatpush.bf16.xpose.msra.mxu1 %v375_v21 }
  0x42   : > { %942 = vmatpush.bf16.xpose.msra.mxu2 %v375_v21  ;;  %943 = vmatpush.bf16.xpose.msra.mxu3 %v375_v21 }
  0x45   : > { %566 = vadd.xlane.f32.xlu1 %v565_v24  ;;  %569 = vadd.xlane.f32.xlu2 %v568_v27 }
  0x46   : > { %563 = vadd.xlane.f32.xlu0 %v562_v23 }
  0x49   : > { %402 = vmatpush.bf16.xpose.msra.mxu0 %v372_v32  ;;  %944 = vmatpush.bf16.xpose.msra.mxu1 %v372_v32 }
  0x4a   : > { %945 = vmatpush.bf16.xpose.msra.mxu2 %v372_v32  ;;  %946 = vmatpush.bf16.xpose.msra.mxu3 %v372_v32 }
  0x4d   : > { %575 = vadd.xlane.f32.xlu1 %v574_v37  ;;  %578 = vadd.xlane.f32.xlu2 %v577_v40 }
  0x4e   : > { %572 = vadd.xlane.f32.xlu0 %v571_v39 }
  0x50   : > { %894 = vmatmul.msk.bf16.vlgmr.msra.gmra.mxu0 %vm346_vm0, %v907_v43  ;;  %896 = vmatmul.msk.bf16.vlgmr.msra.gmra.mxu1 %vm346_vm0, %v909_v44 }
  0x51   : > { %898 = vmatmul.msk.bf16.vlgmr.msra.gmra.mxu2 %vm346_vm0, %v911_v45  ;;  %900 = vmatmul.msk.bf16.vlgmr.msra.gmra.mxu3 %vm346_vm0, %v913_v46 }
  0x55   : > { %584 = vadd.xlane.f32.xlu1 %v583_v51  ;;  %587 = vadd.xlane.f32.xlu2 %v586_v53 }
  0x56   : > { %581 = vadd.xlane.f32.xlu0 %v580_v52 }
  0x5d   : > { %596 = vadd.xlane.f32.xlu2 %v595_v56  ;;  %593 = vadd.xlane.f32.xlu1 %v592_v3 }
  0x5e   : > { %590 = vadd.xlane.f32.xlu0 %v589_v63 }
  0x60   : > { %895 = vmatmul.msk.bf16.gmra.mxu0 %vm346_vm0, %v908_v57  ;;  %897 = vmatmul.msk.bf16.gmra.mxu1 %vm346_vm0, %v910_v58 }
  0x61   : > { %899 = vmatmul.msk.bf16.gmra.mxu2 %vm346_vm0, %v912_v59  ;;  %901 = vmatmul.msk.bf16.gmra.mxu3 %vm346_vm0, %v914_v60 }
  0x65   : > { %602 = vadd.xlane.f32.xlu1 %v601_v16 }
  0x66   : > { %599 = vadd.xlane.f32.xlu0 %v598_v9 }
  0x88   : > { %v1121_v4 = vpop.xlane.xlu1 %499  ;;  %v1123_v6 = vpop.xlane.xlu2 %505 }
  0x89   : > { %v1125_v7 = vpop.xlane.xlu0 %493 }
  0x90   : > { %v1128_v10 = vpop.xlane.xlu1 %502  ;;  %v1131_v12 = vpop.xlane.xlu2 %508 }
  0x91   : > { %v1133_v13 = vpop.xlane.xlu0 %496 }
  0x98   : > { %v1136_v17 = vpop.xlane.xlu1 %514  ;;  %v1138_v18 = vpop.xlane.xlu2 %517 }
  0x99   : > { %v1140_v19 = vpop.xlane.xlu0 %511 }
  0xa0   : > { %v1142_v20 = vpop.xlane.xlu1 %523  ;;  %v1146_v22 = vpop.xlane.xlu2 %526 }
  0xa1   : > { %v1144_v21 = vpop.xlane.xlu0 %520 }
  0xa8   : > { %v1148_v23 = vpop.xlane.xlu1 %532  ;;  %v1152_v25 = vpop.xlane.xlu2 %535 }
  0xa9   : > { %v1150_v24 = vpop.xlane.xlu0 %529 }
  0xb0   : > { %v558_v26 = vpop.xlane.xlu1 %557  ;;  %v561_v28 = vpop.xlane.xlu2 %560 }
  0xb1   : > { %636 = vxpose.xlu2.b32.start [1/16] (narrow) %v558_v26, 8  ;;  %v1154_v27 = vpop.xlane.xlu0 %538 }
  0xb8   : > { %v567_v30 = vpop.xlane.xlu1 %566  ;;  %v570_v31 = vpop.xlane.xlu2 %569 }
  0xb9   : > { %637 = vxpose.xlu2.b32.cont [2/16] (narrow) %v561_v28, 8  ;;  %v564_v29 = vpop.xlane.xlu0 %563 }
  0xc0   : > { %v576_v33 = vpop.xlane.xlu1 %575  ;;  %v579_v34 = vpop.xlane.xlu2 %578 }
  0xc1   : > { %638 = vxpose.xlu2.b32.cont [3/16] (narrow) %v564_v29, 8  ;;  %v573_v32 = vpop.xlane.xlu0 %572 }
  0xc8   : > { %v585_v36 = vpop.xlane.xlu1 %584  ;;  %v588_v37 = vpop.xlane.xlu2 %587 }
  0xc9   : > { %639 = vxpose.xlu2.b32.cont [4/16] (narrow) %v567_v30, 8  ;;  %v582_v35 = vpop.xlane.xlu0 %581 }
  0xcd   : > { %v404_v43 = vpop.f32.mrf.mxu0  ;;  %v414_v44 = vpop.f32.mrf.mxu1 }
  0xce   : > { %v604_v55 = vmul.f32 2.0, %v404_v43  ;;  %v608_v59 = vmul.f32 2.0, %v414_v44 }
  0xd0   : > { %v594_v39 = vpop.xlane.xlu1 %593  ;;  %v597_v40 = vpop.xlane.xlu2 %596  ;;  %v620_v62 = vsub.f32 %v604_v55, %v1125_v7  ;;  %v624_v8 = vsub.f32 %v608_v59, %v1123_v6 }
  0xd1   : > { %640 = vxpose.xlu2.b32.cont [5/16] (narrow) %v570_v31, 8  ;;  %v591_v38 = vpop.xlane.xlu0 %590 }
  0xd4   : > { %v424_v45 = vpop.f32.mrf.mxu2  ;;  %v434_v47 = vpop.f32.mrf.mxu3 }
  0xd5   : > { %v406_v46 = vpop.f32.mrf.mxu0  ;;  %v416_v48 = vpop.f32.mrf.mxu1  ;;  %v612_v7 = vmul.f32 2.0, %v424_v45 }
  0xd6   : > { %v605_v56 = vmul.f32 2.0, %v406_v46  ;;  %v609_v63 = vmul.f32 2.0, %v416_v48 }
  0xd8   : > { %v603_v42 = vpop.xlane.xlu1 %602  ;;  %v621_v1 = vsub.f32 %v605_v56, %v1133_v13 }
  0xd9   : > { %641 = vxpose.xlu2.b32.cont [6/16] (narrow) %v573_v32, 8  ;;  %v600_v41 = vpop.xlane.xlu0 %599 }
  0xdc   : > { %v426_v49 = vpop.f32.mrf.mxu2  ;;  %v436_v51 = vpop.f32.mrf.mxu3 }
  0xdd   : > { %v409_v50 = vpop.f32.mrf.mxu0  ;;  %v419_v52 = vpop.f32.mrf.mxu1  ;;  %v613_v26 = vmul.f32 2.0, %v426_v49 }
  0xde   : > { %v606_v57 = vmul.f32 2.0, %v409_v50  ;;  %v610_v3 = vmul.f32 2.0, %v419_v52 }
  0xe0   : > { %v622_v2 = vsub.f32 %v606_v57, %v1121_v4  ;;  %v625_v4 = vsub.f32 %v609_v63, %v1131_v12 }
  0xe1   : > { %642 = vxpose.xlu2.b32.cont [7/16] (narrow) %v576_v33, 8  ;;  %v628_v33 = vsub.f32 %v612_v7, %v1138_v18 }
  0xe4   : > { %v429_v53 = vpop.f32.mrf.mxu2  ;;  %v439_v58 = vpop.f32.mrf.mxu3 }
  0xe5   : > { %v411_v54 = vpop.f32.mrf.mxu0  ;;  %v421_v61 = vpop.f32.mrf.mxu1  ;;  %v614_v28 = vmul.f32 2.0, %v429_v53 }
  0xe6   : > { %v607_v60 = vmul.f32 2.0, %v411_v54  ;;  %v611_v11 = vmul.f32 2.0, %v421_v61 }
  0xe8   : > { %v623_v9 = vsub.f32 %v607_v60, %v1128_v10  ;;  %v626_v10 = vsub.f32 %v610_v3, %v1140_v19  ;;  %v627_v30 = vsub.f32 %v611_v11, %v1136_v17  ;;  %v629_v19 = vsub.f32 %v613_v26, %v1144_v21 }
  0xe9   : > { %643 = vxpose.xlu2.b32.cont [8/16] (narrow) %v579_v34, 8  ;;  %v616_v34 = vmul.f32 2.0, %v434_v47  ;;  %v630_v17 = vsub.f32 %v614_v28, %v1142_v20 }
  0xeb   : > { %v632_v21 = vsub.f32 %v616_v34, %v1150_v24 }
  0xec   : > { %v431_v14 = vpop.f32.mrf.mxu2 }
  0xed   : > { %v615_v31 = vmul.f32 2.0, %v431_v14 }
  0xef   : > { %v631_v18 = vsub.f32 %v615_v31, %v1146_v22 }
  0xf1   : > { %644 = vxpose.xlu2.b32.cont [9/16] (narrow) %v582_v35, 8  ;;  %v441_v35 = vpop.f32.mrf.mxu3 }
  0xf9   : > { %645 = vxpose.xlu2.b32.cont [10/16] (narrow) %v585_v36, 8  ;;  %v617_v36 = vmul.f32 2.0, %v436_v51 }
  0xfb   : > { %v633_v20 = vsub.f32 %v617_v36, %v1148_v23 }
 0x101   : > { %646 = vxpose.xlu2.b32.cont [11/16] (narrow) %v588_v37, 8 }
 0x109   : > { %647 = vxpose.xlu2.b32.cont [12/16] (narrow) %v591_v38, 8  ;;  %v618_v38 = vmul.f32 2.0, %v439_v58 }
 0x10b   : > { %v634_v44 = vsub.f32 %v618_v38, %v1152_v25 }
 0x111   : > { %648 = vxpose.xlu2.b32.cont [13/16] (narrow) %v594_v39, 8 }
 0x119   : > { %649 = vxpose.xlu2.b32.cont [14/16] (narrow) %v597_v40, 8  ;;  %v619_v40 = vmul.f32 2.0, %v441_v35 }
 0x11b   : > { %v635_v45 = vsub.f32 %v619_v40, %v1154_v27 }
 0x121   : > { %650 = vxpose.xlu2.b32.cont [15/16] (narrow) %v600_v41, 8 }
 0x129   : > { %651 = vxpose.xlu2.b32.end [16/16] (narrow) %v603_v42, 8 }
 0x14a   : > { %v652_v0 = vpop.trf.xlu2 }
 0x14b   : > { %v668_v5 = vperm.slane %v652_v0, 0 }
 0x14d   : > { %v669_v15 = vsub.f32 %v620_v62, %v668_v5  ;;  %v670_v13 = vsub.f32 %v621_v1, %v668_v5  ;;  %v671_v16 = vsub.f32 %v622_v2, %v668_v5  ;;  %v672_v6 = vsub.f32 %v623_v9, %v668_v5 }
 0x14e   : > { %v673_v29 = vsub.f32 %v624_v8, %v668_v5  ;;  %v674_v32 = vsub.f32 %v625_v4, %v668_v5  ;;  %v675_v12 = vsub.f32 %v626_v10, %v668_v5  ;;  %v676_v37 = vsub.f32 %v627_v30, %v668_v5 }
 0x14f   : > { %685 = vst [vmem:[%s1165_s23] sm:$0xff] %v669_v15  ;;  %v677_v39 = vsub.f32 %v628_v33, %v668_v5  ;;  %v678_v41 = vsub.f32 %v629_v19, %v668_v5  ;;  %v679_v42 = vsub.f32 %v630_v17, %v668_v5  ;;  %v680_v43 = vsub.f32 %v631_v18, %v668_v5 }
 0x150   : > { %686 = vst [vmem:[%s1165_s23 + $0x8] sm:$0xff] %v670_v13  ;;  %v681_v22 = vsub.f32 %v632_v21, %v668_v5  ;;  %v682_v46 = vsub.f32 %v633_v20, %v668_v5  ;;  %v683_v47 = vsub.f32 %v634_v44, %v668_v5  ;;  %v684_v24 = vsub.f32 %v635_v45, %v668_v5 }
 0x151   : > { %687 = vst [vmem:[%s1165_s23 + $0x10] sm:$0xff] %v671_v16 }
 0x152   : > { %688 = vst [vmem:[%s1165_s23 + $0x18] sm:$0xff] %v672_v6 }
 0x153   : > { %689 = vst [vmem:[%s1165_s23 + $0x20] sm:$0xff] %v673_v29 }
 0x154   : > { %690 = vst [vmem:[%s1165_s23 + $0x28] sm:$0xff] %v674_v32 }
 0x155   : > { %691 = vst [vmem:[%s1165_s23 + $0x30] sm:$0xff] %v675_v12 }
 0x156   : > { %692 = vst [vmem:[%s1165_s23 + $0x38] sm:$0xff] %v676_v37 }
 0x157   : > { %693 = vst [vmem:[%s1165_s23 + $0x40] sm:$0xff] %v677_v39 }
 0x158   : > { %694 = vst [vmem:[%s1165_s23 + $0x48] sm:$0xff] %v678_v41 }
 0x159   : > { %695 = vst [vmem:[%s1165_s23 + $0x50] sm:$0xff] %v679_v42 }
 0x15a   : > { %696 = vst [vmem:[%s1165_s23 + $0x58] sm:$0xff] %v680_v43 }
 0x15b   : > { %697 = vst [vmem:[%s1165_s23 + $0x60] sm:$0xff] %v681_v22 }
 0x15c   : > { %698 = vst [vmem:[%s1165_s23 + $0x68] sm:$0xff] %v682_v46 }
 0x15d   : > { %699 = vst [vmem:[%s1165_s23 + $0x70] sm:$0xff] %v683_v47 }
 0x15e   : > { %700 = vst [vmem:[%s1165_s23 + $0x78] sm:$0xff] %v684_v24 }
 0x15f PF: > { %s12_s11 = sadd.s32 1, %s993_s11   ;;  %s1206_s9 = smov %s989_s10 }
 0x160   : > { %p9_p5 = scmp.ge.s32.totalorder %s12_s11, 4   ;;  %s1207_s10 = smov %s1209_s12 }
 0x162   :  { %11 = sbr.rel (!%p9_p5) target bundleno = 2 (0x2), region = 61 }

// kernel: gann_forward.13
= control target key start
LH: loop header
LB: loop body
LE: loop exit
PB: predicated region body
PF: predicated region fallthrough
CT: control target
= control target key end

     0   :  { %s675_s12 = smov 0   ;;  %s677_s13 = smov 0   ;;  %s790_s0 = inlined_call_operand.vmem [shape: bf16[2,128,64], index: 0, kind: input, shape index: {}]   ;;  %s791_s1 = inlined_call_operand.vmem [shape: bf16[64,64], index: 1, kind: input, shape index: {}]   ;;  %s792_s2 = inlined_call_operand.vmem [shape: f32[1,1,64], index: 2, kind: input, shape index: {}]   ;;  %s793_s3 = inlined_call_operand.vmem [shape: bf16[2,128,64], index: 3, kind: output, shape index: {}]  }
   0x1   :  { %s679_s14 = smov 0  }
   0x2 LB: > { %s25_s15 = sadd.s32 1, %s649_s13  ;;  %p517_p0 = scmp.ge.s32.totalorder %s653_s14, 1  ;;  %s653_s14 = sphi %s679_s14, %s13_s14   ;;  %s649_s13 = sphi %s677_s13, %s795_s13   ;;  %s645_s12 = sphi %s675_s12, %s794_s12  }
   0x3   : > { %p27_p1 = scmp.ge.s32.totalorder %s25_s15, 2  ;;  %p158_p2 = scmp.lt.s32.totalorder %s653_s14, 3 }
   0x5   : > { %s797_s15 = smov (%p27_p1, %s25_s15), 0  ;;  %p159_p3 = pnand %p517_p0, %p158_p2 }
   0x6   : > { %p191_p4 = scmp.lt.s32.totalorder (!%p159_p3), %s645_s12, 1 }
   0x7   : > { %162 = sbr.rel (%p159_p3) target bundleno = 193 (0xc1), region = 32 }
   0xc   : > { %v593_v0 = vld [vmem:[%s791_s1 + $0x18] sm:$0xff]  ;;  %v592_v1 = vld [vmem:[%s791_s1 + $0x10] sm:$0xff]  ;;  %s799_s12 = smov (!%p191_p4, %s645_s12), 1  ;;  %v591_v2 = vld [vmem:[%s791_s1 + $0x8] sm:$0xff]  ;;  %vm303_vm0 = vcmask 523264   ;;  %vm409_vm1 = vcmask 519168  }
   0xd   : > { %332 = vmatpush.bf16.msra.mxu0 %v593_v0  ;;  %594 = vmatpush.bf16.msra.mxu1 %v593_v0  ;;  %s580_s22 = sshll.u32 %s799_s12, 6  ;;  %v590_v3 = vld [vmem:[%s791_s1] sm:$0xff] }
   0xe   : > { %595 = vmatpush.bf16.msra.mxu2 %v593_v0  ;;  %596 = vmatpush.bf16.msra.mxu3 %v593_v0  ;;  %s198_s27 = scalar_lea.vmem %s790_s0, %s580_s22  ;;  %v724_v12 = vld [vmem:[%s792_s2] ss:$0 sm:$0xff]  ;;  %s733_s5 = scalar_lea.vmem %s793_s3, %s580_s22 }
   0xf   : > { %v582_v4 = vld [vmem:[%s198_s27] sm:$0xff]  ;;  %v584_v5 = vld [vmem:[%s198_s27 + $0x10] sm:$0xff]  ;;  %v583_v8 = vld [vmem:[%s198_s27 + $0x8] sm:$0xff] }
  0x10   : > { %v586_v6 = vld [vmem:[%s198_s27 + $0x20] sm:$0xff]  ;;  %v588_v7 = vld [vmem:[%s198_s27 + $0x30] sm:$0xff]  ;;  %v585_v9 = vld [vmem:[%s198_s27 + $0x18] sm:$0xff] }
  0x11   : > { %333 = vmatpush.bf16.msra.mxu0 %v592_v1  ;;  %597 = vmatpush.bf16.msra.mxu1 %v592_v1  ;;  %v587_v10 = vld [vmem:[%s198_s27 + $0x28] sm:$0xff]  ;;  %v589_v11 = vld [vmem:[%s198_s27 + $0x38] sm:$0xff] }
  0x12   : > { %598 = vmatpush.bf16.msra.mxu2 %v592_v1  ;;  %599 = vmatpush.bf16.msra.mxu3 %v592_v1 }
  0x15   : > { %334 = vmatpush.bf16.msra.mxu0 %v591_v2  ;;  %600 = vmatpush.bf16.msra.mxu1 %v591_v2 }
  0x16   : > { %601 = vmatpush.bf16.msra.mxu2 %v591_v2  ;;  %602 = vmatpush.bf16.msra.mxu3 %v591_v2 }
  0x19   : > { %335 = vmatpush.bf16.msra.mxu0 %v590_v3  ;;  %603 = vmatpush.bf16.msra.mxu1 %v590_v3 }
  0x1a   : > { %604 = vmatpush.bf16.msra.mxu2 %v590_v3  ;;  %605 = vmatpush.bf16.msra.mxu3 %v590_v3 }
  0x1c   : > { %570 = vmatmul.msk.bf16.vlgmr.msra.gmra.mxu0 %vm303_vm0, %v582_v4  ;;  %572 = vmatmul.msk.bf16.vlgmr.msra.gmra.mxu1 %vm303_vm0, %v584_v5 }
  0x1d   : > { %574 = vmatmul.msk.bf16.vlgmr.msra.gmra.mxu2 %vm303_vm0, %v586_v6  ;;  %576 = vmatmul.msk.bf16.vlgmr.msra.gmra.mxu3 %vm303_vm0, %v588_v7 }
  0x2c   : > { %571 = vmatmul.msk.bf16.gmra.mxu0 %vm303_vm0, %v583_v8  ;;  %573 = vmatmul.msk.bf16.gmra.mxu1 %vm303_vm0, %v585_v9 }
  0x2d   : > { %575 = vmatmul.msk.bf16.gmra.mxu2 %vm303_vm0, %v587_v10  ;;  %577 = vmatmul.msk.bf16.gmra.mxu3 %vm303_vm0, %v589_v11 }
  0x99   : > { %v337_v13 = vpop.f32.mrf.mxu0  ;;  %v347_v14 = vpop.f32.mrf.mxu1 }
  0x9a   : > { %v338_v15 = vadd.f32 %v724_v12, %v337_v13  ;;  %v348_v16 = vadd.f32 %v724_v12, %v347_v14 }
  0x9c   : > { %v377_v17 = vmax.f32 %v338_v15, 0.0  ;;  %v381_v18 = vmax.f32 %v348_v16, 0.0 }
  0x9e   : > { %v393_v19 = vpack.c.bf16 %v377_v17, %v377_v17  ;;  %v397_v20 = vpack.c.bf16 %v381_v18, %v381_v18 }
  0xa0   : > { %410 = vst.msk [vmem:[%s733_s5] sm:$0xf] %vm409_vm1, %v393_v19  ;;  %v357_v21 = vpop.f32.mrf.mxu2  ;;  %v367_v22 = vpop.f32.mrf.mxu3 }
  0xa1   : > { %414 = vst.msk [vmem:[%s733_s5 + $0x10] sm:$0xf] %vm409_vm1, %v397_v20  ;;  %v358_v23 = vadd.f32 %v724_v12, %v357_v21  ;;  %v368_v24 = vadd.f32 %v724_v12, %v367_v22  ;;  %v339_v25 = vpop.f32.mrf.mxu0  ;;  %v349_v26 = vpop.f32.mrf.mxu1 }
  0xa2   : > { %v340_v27 = vadd.f32 %v724_v12, %v339_v25  ;;  %v350_v28 = vadd.f32 %v724_v12, %v349_v26 }
  0xa3   : > { %v385_v29 = vmax.f32 %v358_v23, 0.0  ;;  %v389_v30 = vmax.f32 %v368_v24, 0.0 }
  0xa4   : > { %v378_v31 = vmax.f32 %v340_v27, 0.0  ;;  %v382_v32 = vmax.f32 %v350_v28, 0.0 }
  0xa5   : > { %v401_v33 = vpack.c.bf16 %v385_v29, %v385_v29  ;;  %v405_v34 = vpack.c.bf16 %v389_v30, %v389_v30 }
  0xa6   : > { %v394_v35 = vpack.c.bf16 %v378_v31, %v378_v31  ;;  %v398_v36 = vpack.c.bf16 %v382_v32, %v382_v32 }
  0xa7   : > { %418 = vst.msk [vmem:[%s733_s5 + $0x20] sm:$0xf] %vm409_vm1, %v401_v33 }
  0xa8   : > { %422 = vst.msk [vmem:[%s733_s5 + $0x30] sm:$0xf] %vm409_vm1, %v405_v34  ;;  %v359_v37 = vpop.f32.mrf.mxu2  ;;  %v369_v38 = vpop.f32.mrf.mxu3 }
  0xa9   : > { %411 = vst.msk [vmem:[%s733_s5 + $0x4] sm:$0xf] %vm409_vm1, %v394_v35  ;;  %v360_v39 = vadd.f32 %v724_v12, %v359_v37  ;;  %v370_v40 = vadd.f32 %v724_v12, %v369_v38  ;;  %v342_v41 = vpop.f32.mrf.mxu0  ;;  %v352_v42 = vpop.f32.mrf.mxu1 }
  0xaa   : > { %415 = vst.msk [vmem:[%s733_s5 + $0x14] sm:$0xf] %vm409_vm1, %v398_v36  ;;  %v343_v43 = vadd.f32 %v724_v12, %v342_v41  ;;  %v353_v44 = vadd.f32 %v724_v12, %v352_v42 }
  0xab   : > { %v386_v45 = vmax.f32 %v360_v39, 0.0  ;;  %v390_v46 = vmax.f32 %v370_v40, 0.0 }
  0xac   : > { %v379_v47 = vmax.f32 %v343_v43, 0.0  ;;  %v383_v48 = vmax.f32 %v353_v44, 0.0 }
  0xad   : > { %v402_v49 = vpack.c.bf16 %v386_v45, %v386_v45  ;;  %v406_v50 = vpack.c.bf16 %v390_v46, %v390_v46 }
  0xae   : > { %v395_v51 = vpack.c.bf16 %v379_v47, %v379_v47  ;;  %v399_v52 = vpack.c.bf16 %v383_v48, %v383_v48 }
  0xaf   : > { %419 = vst.msk [vmem:[%s733_s5 + $0x24] sm:$0xf] %vm409_vm1, %v402_v49 }
  0xb0   : > { %423 = vst.msk [vmem:[%s733_s5 + $0x34] sm:$0xf] %vm409_vm1, %v406_v50  ;;  %v362_v53 = vpop.f32.mrf.mxu2  ;;  %v372_v54 = vpop.f32.mrf.mxu3 }
  0xb1   : > { %412 = vst.msk [vmem:[%s733_s5 + $0x8] sm:$0xf] %vm409_vm1, %v395_v51  ;;  %v363_v55 = vadd.f32 %v724_v12, %v362_v53  ;;  %v373_v56 = vadd.f32 %v724_v12, %v372_v54  ;;  %v344_v57 = vpop.f32.mrf.mxu0  ;;  %v354_v58 = vpop.f32.mrf.mxu1 }
  0xb2   : > { %416 = vst.msk [vmem:[%s733_s5 + $0x18] sm:$0xf] %vm409_vm1, %v399_v52  ;;  %v345_v59 = vadd.f32 %v724_v12, %v344_v57  ;;  %v355_v60 = vadd.f32 %v724_v12, %v354_v58 }
  0xb3   : > { %v387_v61 = vmax.f32 %v363_v55, 0.0  ;;  %v391_v62 = vmax.f32 %v373_v56, 0.0 }
  0xb4   : > { %v380_v63 = vmax.f32 %v345_v59, 0.0  ;;  %v384_v0 = vmax.f32 %v355_v60, 0.0 }
  0xb5   : > { %v403_v1 = vpack.c.bf16 %v387_v61, %v387_v61  ;;  %v407_v2 = vpack.c.bf16 %v391_v62, %v391_v62 }
  0xb6   : > { %v396_v3 = vpack.c.bf16 %v380_v63, %v380_v63  ;;  %v400_v4 = vpack.c.bf16 %v384_v0, %v384_v0 }
  0xb7   : > { %420 = vst.msk [vmem:[%s733_s5 + $0x28] sm:$0xf] %vm409_vm1, %v403_v1 }
  0xb8   : > { %424 = vst.msk [vmem:[%s733_s5 + $0x38] sm:$0xf] %vm409_vm1, %v407_v2  ;;  %v364_v5 = vpop.f32.mrf.mxu2  ;;  %v374_v6 = vpop.f32.mrf.mxu3 }
  0xb9   : > { %413 = vst.msk [vmem:[%s733_s5 + $0xc] sm:$0xf] %vm409_vm1, %v396_v3  ;;  %v365_v7 = vadd.f32 %v724_v12, %v364_v5  ;;  %v375_v8 = vadd.f32 %v724_v12, %v374_v6 }
  0xba   : > { %417 = vst.msk [vmem:[%s733_s5 + $0x1c] sm:$0xf] %vm409_vm1, %v400_v4 }
  0xbb   : > { %v388_v9 = vmax.f32 %v365_v7, 0.0  ;;  %v392_v10 = vmax.f32 %v375_v8, 0.0 }
  0xbd   : > { %v404_v11 = vpack.c.bf16 %v388_v9, %v388_v9  ;;  %v408_v13 = vpack.c.bf16 %v392_v10, %v392_v10 }
  0xbf   : > { %421 = vst.msk [vmem:[%s733_s5 + $0x2c] sm:$0xf] %vm409_vm1, %v404_v11 }
  0xc0   : > { %425 = vst.msk [vmem:[%s733_s5 + $0x3c] sm:$0xf] %vm409_vm1, %v408_v13 }
  0xc1 PF: > { %s13_s14 = sadd.s32 1, %s653_s14   ;;  %s794_s12 = smov %s649_s13 }
  0xc2   : > { %p10_p5 = scmp.ge.s32.totalorder %s13_s14, 4   ;;  %s795_s13 = smov %s797_s15 }
  0xc4   :  { %12 = sbr.rel (!%p10_p5) target bundleno = 2 (0x2), region = 62 }

// kernel: gann_forward.18
= control target key start
LH: loop header
LB: loop body
LE: loop exit
PB: predicated region body
PF: predicated region fallthrough
CT: control target
= control target key end

     0   :  { %s1027_s12 = smov 0   ;;  %s1029_s13 = smov 0   ;;  %s1212_s0 = inlined_call_operand.vmem [shape: bf16[2,128,64], index: 0, kind: input, shape index: {}]   ;;  %s1213_s1 = inlined_call_operand.vmem [shape: bf16[64,1024], index: 1, kind: input, shape index: {}]   ;;  %s1214_s2 = inlined_call_operand.vmem [shape: f32[1,1,1024], index: 2, kind: input, shape index: {}]   ;;  %s1215_s3 = inlined_call_operand.vmem [shape: f32[2,1,1024], index: 3, kind: output, shape index: {}]  }
   0x1   :  { %s1031_s14 = smov 0   ;;  %s1033_s15 = smov 0  }
   0x2   :  { %s1035_s16 = smov 0   ;;  %s1037_s17 = smov 0  }
   0x3   :  { %s1039_s18 = smov 0  }
   0x4 LB: > { %s28_s19 = sadd.s32 1, %s997_s16  ;;  %s32_s20 = sadd.s32 1, %s1001_s17  ;;  %s1005_s18 = sphi %s1039_s18, %s13_s18   ;;  %s1001_s17 = sphi %s1037_s17, %s1221_s17   ;;  %s997_s16 = sphi %s1035_s16, %s1220_s16   ;;  %s993_s15 = sphi %s1033_s15, %s1219_s15   ;;  %s989_s14 = sphi %s1031_s14, %s1218_s14   ;;  %s985_s13 = sphi %s1029_s13, %s1217_s13   ;;  %s981_s12 = sphi %s1027_s12, %s1216_s12  }
   0x5   : > { %p30_p0 = scmp.ge.s32.totalorder %s28_s19, 4  ;;  %s67_s21 = sadd.s32 1, %s985_s13 }
   0x6   : > { %p74_p1 = scmp.ne.s32.totalorder %s985_s13, %s981_s12  ;;  %p75_p2 = scmp.eq.s32.totalorder %s1005_s18, 0 }
   0x7   : > { %s1223_s19 = smov (%p30_p0, %s28_s19), 0  ;;  %s1225_s20 = smov (!%p30_p0, %s32_s20), %s1001_s17 }
   0x8   : > { %s64_s22 = ssub.s32 %s997_s16, %s1223_s19  ;;  %p76_p3 = por %p75_p2, %p74_p1 }
   0x9   : > { %p34_p4 = scmp.ge.s32.totalorder %s1225_s20, 2  ;;  %p65_p5 = scmp.eq.s32.totalorder %s64_s22, 0 }
   0xa   : > { %p776_p6 = scmp.ge.s32.totalorder %s1005_s18, 8 }
   0xb   : > { %s1227_s20 = smov (%p34_p4, %s1225_s20), 0 }
   0xc   : > { %s1076_s23 = scalar_select %p65_p5, %s985_s13, %s67_s21  }
   0xd   : > { %154 = sbr.rel (%p776_p6) target bundleno = 30 (0x1e), region = 16 }
  0x12   : > { %170 = sbr.rel (!%p76_p3) target bundleno = 30 (0x1e), region = 24  ;;  %s172_s24 = sand.u32 (%p76_p3), 1, %s985_s13  }
  0x13   : > { %s869_s25 = sshll.u32 (%p76_p3), %s997_s16, 3  ;;  %s777_s26 = sshll.u32 (%p76_p3), %s172_s24, 6 }
  0x14   : > { %s177_s29 = scalar_lea.vmem (%p76_p3), %s1213_s1, %s869_s25  ;;  %s174_s30 = scalar_lea.vmem (%p76_p3), [#allocation2], %s777_s26 }
  0x15   : > { %v220_v0 = vld [vmem:[%s177_s29] sm:$0xff] (%p76_p3) }
  0x16   : > { %v222_v1 = vld [vmem:[%s177_s29 + $0x20] sm:$0xff] (%p76_p3)  ;;  %221 = vst [vmem:[%s174_s30] sm:$0xff] (%p76_p3), %v220_v0 }
  0x17   : > { %v224_v2 = vld [vmem:[%s177_s29 + $0x40] sm:$0xff]  ;;  %223 = vst [vmem:[%s174_s30 + $0x8] sm:$0xff] %v222_v1 }
  0x18   : > { %v226_v3 = vld [vmem:[%s177_s29 + $0x60] sm:$0xff]  ;;  %225 = vst [vmem:[%s174_s30 + $0x10] sm:$0xff] %v224_v2 }
  0x19   : > { %v228_v4 = vld [vmem:[%s177_s29 + $0x80] sm:$0xff]  ;;  %227 = vst [vmem:[%s174_s30 + $0x18] sm:$0xff] %v226_v3 }
  0x1a   : > { %v230_v5 = vld [vmem:[%s177_s29 + $0xa0] sm:$0xff]  ;;  %229 = vst [vmem:[%s174_s30 + $0x20] sm:$0xff] %v228_v4 }
  0x1b   : > { %v232_v6 = vld [vmem:[%s177_s29 + $0xc0] sm:$0xff]  ;;  %231 = vst [vmem:[%s174_s30 + $0x28] sm:$0xff] %v230_v5 }
  0x1c   : > { %v234_v7 = vld [vmem:[%s177_s29 + $0xe0] sm:$0xff]  ;;  %233 = vst [vmem:[%s174_s30 + $0x30] sm:$0xff] %v232_v6 }
  0x1d   : > { %235 = vst [vmem:[%s174_s30 + $0x38] sm:$0xff] %v234_v7 }
  0x1e PF: > { %p780_p7 = scmp.ge.s32.totalorder %s1005_s18, 1  ;;  %p248_p8 = scmp.lt.s32.totalorder %s1005_s18, 9 }
  0x20   : > { %p249_p9 = pnand %p780_p7, %p248_p8 }
  0x21   : > { %s255_s4 = sand.u32 (!%p249_p9), 1, %s981_s12   ;;  %p295_p10 = scmp.lt.s32.totalorder (!%p249_p9), %s993_s15, 1 }
  0x22   : > { %252 = sbr.rel (%p249_p9) target bundleno = 272 (0x110), region = 66  ;;  %s781_s5 = sshll.u32 (!%p249_p9), %s255_s4, 6 }
  0x23   : > { %s1088_s6 = scalar_lea.vmem (!%p249_p9), [#allocation2], %s781_s5  ;;  %s784_s11 = sshll.u32 (!%p249_p9), %s989_s14, 1 }
  0x24   : > { %p306_p11 = scmp.lt.s32.totalorder (!%p249_p9), %s784_s11, 7 }
  0x27   : > { %v845_v8 = vld [vmem:[%s1088_s6 + $0x30] sm:$0xf]  ;;  %v886_v9 = vld [vmem:[%s1088_s6 + $0x34] sm:$0xf0]  ;;  %v885_v10 = vld [vmem:[%s1088_s6 + $0x34] sm:$0xf] }
  0x28   : > { %v846_v11 = vor.u32 %v886_v9, %v845_v8  ;;  %v847_v12 = vld [vmem:[%s1088_s6 + $0x38] sm:$0xf0]  ;;  %v837_v13 = vld [vmem:[%s1088_s6 + $0x20] sm:$0xf]  ;;  %v884_v14 = vld [vmem:[%s1088_s6 + $0x24] sm:$0xf0] }
  0x29   : > { %v850_v15 = vor.u32 %v885_v10, %v847_v12  ;;  %v883_v16 = vld [vmem:[%s1088_s6 + $0x24] sm:$0xf]  ;;  %v839_v17 = vld [vmem:[%s1088_s6 + $0x28] sm:$0xf0]  ;;  %v838_v18 = vor.u32 %v884_v14, %v837_v13  ;;  %v829_v20 = vld [vmem:[%s1088_s6 + $0x10] sm:$0xf] }
  0x2a   : > { %459 = vmatpush.bf16.msra.mxu0 %v846_v11  ;;  %887 = vmatpush.bf16.msra.mxu2 %v846_v11  ;;  %v842_v19 = vor.u32 %v883_v16, %v839_v17  ;;  %v882_v21 = vld [vmem:[%s1088_s6 + $0x14] sm:$0xf0]  ;;  %v881_v22 = vld [vmem:[%s1088_s6 + $0x14] sm:$0xf]  ;;  %v831_v23 = vld [vmem:[%s1088_s6 + $0x18] sm:$0xf0] }
  0x2b   : > { %508 = vmatpush.bf16.msra.mxu1 %v850_v15  ;;  %891 = vmatpush.bf16.msra.mxu3 %v850_v15  ;;  %s1229_s15 = smov (!%p295_p10, %s993_s15), 1  ;;  %v830_v24 = vor.u32 %v882_v21, %v829_v20  ;;  %v834_v25 = vor.u32 %v881_v22, %v831_v23  ;;  %v821_v26 = vld [vmem:[%s1088_s6] sm:$0xf]  ;;  %v880_v27 = vld [vmem:[%s1088_s6 + $0x4] sm:$0xf0]  ;;  %vm430_vm0 = vcmask 523264  }
  0x2c   : > { %s870_s7 = sshll.u32 %s1229_s15, 6  ;;  %v879_v28 = vld [vmem:[%s1088_s6 + $0x4] sm:$0xf]  ;;  %v823_v29 = vld [vmem:[%s1088_s6 + $0x8] sm:$0xf0]  ;;  %v822_v30 = vor.u32 %v880_v27, %v821_v26  ;;  %s1231_s11 = smov (!%p306_p11, %s784_s11), 7 }
  0x2d   : > { %s302_s10 = scalar_lea.vmem %s1212_s0, %s870_s7  ;;  %v826_v31 = vor.u32 %v879_v28, %v823_v29  ;;  %s308_s22 = scalar_lea.vmem %s1214_s2, %s1231_s11  ;;  %vm634_vm1 = vcmask 1040384  }
  0x2e   : > { %460 = vmatpush.bf16.msra.mxu0 %v838_v18  ;;  %888 = vmatpush.bf16.msra.mxu2 %v838_v18  ;;  %v871_v32 = vld [vmem:[%s302_s10] sm:$0xff]  ;;  %v872_v34 = vld [vmem:[%s302_s10 + $0x8] sm:$0xff]  ;;  %v873_v36 = vld [vmem:[%s302_s10 + $0x10] sm:$0xff]  ;;  %s786_s14 = sshll.u32 %s1229_s15, 3 }
  0x2f   : > { %509 = vmatpush.bf16.msra.mxu1 %v842_v19  ;;  %892 = vmatpush.bf16.msra.mxu3 %v842_v19  ;;  %v875_v33 = vld [vmem:[%s302_s10 + $0x20] sm:$0xff]  ;;  %v876_v35 = vld [vmem:[%s302_s10 + $0x28] sm:$0xff]  ;;  %v877_v37 = vld [vmem:[%s302_s10 + $0x30] sm:$0xff]  ;;  %s316_s24 = sadd.s32 %s786_s14, %s1231_s11 }
  0x30   : > { %v874_v38 = vld [vmem:[%s302_s10 + $0x18] sm:$0xff]  ;;  %v344_v58 = vld [vmem:[%s308_s22] sm:$0x3]  ;;  %s317_s27 = scalar_lea.vmem %s1215_s3, %s316_s24 }
  0x31   : > { %v878_v39 = vld [vmem:[%s302_s10 + $0x38] sm:$0xff]  ;;  %v1144_v60 = vperm.slane %v344_v58, 0  ;;  %v1148_v62 = vperm.slane %v344_v58, 1 }
  0x32   : > { %461 = vmatpush.bf16.msra.mxu0 %v830_v24  ;;  %889 = vmatpush.bf16.msra.mxu2 %v830_v24 }
  0x33   : > { %510 = vmatpush.bf16.msra.mxu1 %v834_v25  ;;  %893 = vmatpush.bf16.msra.mxu3 %v834_v25 }
  0x36   : > { %462 = vmatpush.bf16.msra.mxu0 %v822_v30  ;;  %890 = vmatpush.bf16.msra.mxu2 %v822_v30 }
  0x37   : > { %511 = vmatpush.bf16.msra.mxu1 %v826_v31  ;;  %894 = vmatpush.bf16.msra.mxu3 %v826_v31 }
  0x39   : > { %851 = vmatmul.msk.bf16.vlgmr.msra.gmra.mxu0 %vm430_vm0, %v871_v32  ;;  %855 = vmatmul.msk.bf16.vlgmr.msra.gmra.mxu2 %vm430_vm0, %v875_v33 }
  0x3a   : > { %859 = vmatmul.msk.bf16.vlgmr.msra.gmra.mxu1 %vm430_vm0, %v871_v32  ;;  %863 = vmatmul.msk.bf16.vlgmr.msra.gmra.mxu3 %vm430_vm0, %v875_v33 }
  0x49   : > { %852 = vmatmul.msk.bf16.gmra.mxu0 %vm430_vm0, %v872_v34  ;;  %856 = vmatmul.msk.bf16.gmra.mxu2 %vm430_vm0, %v876_v35 }
  0x4a   : > { %860 = vmatmul.msk.bf16.gmra.mxu1 %vm430_vm0, %v872_v34  ;;  %864 = vmatmul.msk.bf16.gmra.mxu3 %vm430_vm0, %v876_v35 }
  0x59   : > { %853 = vmatmul.msk.bf16.gmra.mxu0 %vm430_vm0, %v873_v36  ;;  %857 = vmatmul.msk.bf16.gmra.mxu2 %vm430_vm0, %v877_v37 }
  0x5a   : > { %861 = vmatmul.msk.bf16.gmra.mxu1 %vm430_vm0, %v873_v36  ;;  %865 = vmatmul.msk.bf16.gmra.mxu3 %vm430_vm0, %v877_v37 }
  0x69   : > { %854 = vmatmul.msk.bf16.gmra.mxu0 %vm430_vm0, %v874_v38  ;;  %858 = vmatmul.msk.bf16.gmra.mxu2 %vm430_vm0, %v878_v39 }
  0x6a   : > { %862 = vmatmul.msk.bf16.gmra.mxu1 %vm430_vm0, %v874_v38  ;;  %866 = vmatmul.msk.bf16.gmra.mxu3 %vm430_vm0, %v878_v39 }
  0xb6   : > { %v464_v40 = vpop.f32.mrf.mxu0 }
  0xb7   : > { %v513_v41 = vpop.f32.mrf.mxu1  ;;  %v465_v3 = vadd.f32 %v464_v40, %v1144_v60 }
  0xb8   : > { %v514_v5 = vadd.f32 %v513_v41, %v1148_v62 }
  0xb9   : > { %v553_v10 = vmax.f32 %v465_v3, 0.0 }
  0xba   : > { %v554_v13 = vmax.f32 %v514_v5, 0.0 }
  0xbc   : > { %v484_v42 = vpop.f32.mrf.mxu2 }
  0xbd   : > { %v533_v43 = vpop.f32.mrf.mxu3  ;;  %v485_v14 = vadd.f32 %v484_v42, %v1144_v60 }
  0xbe   : > { %v466_v44 = vpop.f32.mrf.mxu0  ;;  %v534_v15 = vadd.f32 %v533_v43, %v1148_v62 }
  0xbf   : > { %v515_v45 = vpop.f32.mrf.mxu1  ;;  %v467_v18 = vadd.f32 %v466_v44, %v1144_v60  ;;  %v569_v42 = vmax.f32 %v485_v14, 0.0 }
  0xc0   : > { %v516_v23 = vadd.f32 %v515_v45, %v1148_v62  ;;  %v570_v43 = vmax.f32 %v534_v15, 0.0 }
  0xc1   : > { %v555_v44 = vmax.f32 %v467_v18, 0.0 }
  0xc4   : > { %v486_v46 = vpop.f32.mrf.mxu2 }
  0xc5   : > { %v535_v47 = vpop.f32.mrf.mxu3  ;;  %v487_v27 = vadd.f32 %v486_v46, %v1144_v60 }
  0xc6   : > { %v469_v48 = vpop.f32.mrf.mxu0  ;;  %v536_v31 = vadd.f32 %v535_v47, %v1148_v62 }
  0xc7   : > { %v518_v49 = vpop.f32.mrf.mxu1  ;;  %v470_v0 = vadd.f32 %v469_v48, %v1144_v60  ;;  %v556_v48 = vmax.f32 %v516_v23, 0.0  ;;  %v571_v47 = vmax.f32 %v487_v27, 0.0 }
  0xc8   : > { %v519_v2 = vadd.f32 %v518_v49, %v1148_v62  ;;  %v572_v49 = vmax.f32 %v536_v31, 0.0 }
  0xc9   : > { %v557_v7 = vmax.f32 %v470_v0, 0.0 }
  0xca   : > { %v558_v8 = vmax.f32 %v519_v2, 0.0 }
  0xcb   : > { %v585_v19 = vmax.f32 %v553_v10, %v557_v7 }
  0xcc   : > { %v489_v50 = vpop.f32.mrf.mxu2  ;;  %v606_v24 = vmax.f32 %v554_v13, %v558_v8 }
  0xcd   : > { %v538_v51 = vpop.f32.mrf.mxu3  ;;  %v490_v35 = vadd.f32 %v489_v50, %v1144_v60 }
  0xce   : > { %v471_v52 = vpop.f32.mrf.mxu0  ;;  %v539_v38 = vadd.f32 %v538_v51, %v1148_v62 }
  0xcf   : > { %v520_v53 = vpop.f32.mrf.mxu1  ;;  %v472_v20 = vadd.f32 %v471_v52, %v1144_v60 }
  0xd0   : > { %v521_v25 = vadd.f32 %v520_v53, %v1148_v62  ;;  %v574_v51 = vmax.f32 %v539_v38, 0.0 }
  0xd1   : > { %v559_v36 = vmax.f32 %v472_v20, 0.0 }
  0xd2   : > { %v560_v39 = vmax.f32 %v521_v25, 0.0 }
  0xd4   : > { %v1134_v54 = vpop.f32.mrf.mxu2  ;;  %v607_v0 = vmax.f32 %v556_v48, %v560_v39 }
  0xd5   : > { %v1136_v55 = vpop.f32.mrf.mxu3  ;;  %v492_v3 = vadd.f32 %v1134_v54, %v1144_v60 }
  0xd6   : > { %v474_v56 = vpop.f32.mrf.mxu0  ;;  %v541_v7 = vadd.f32 %v1136_v55, %v1148_v62 }
  0xd7   : > { %v523_v57 = vpop.f32.mrf.mxu1  ;;  %v475_v4 = vadd.f32 %v474_v56, %v1144_v60  ;;  %v573_v56 = vmax.f32 %v490_v35, 0.0  ;;  %v575_v20 = vmax.f32 %v492_v3, 0.0 }
  0xd8   : > { %v524_v6 = vadd.f32 %v523_v57, %v1148_v62  ;;  %v586_v57 = vmax.f32 %v555_v44, %v559_v36  ;;  %v576_v23 = vmax.f32 %v541_v7, 0.0 }
  0xd9   : > { %v561_v11 = vmax.f32 %v475_v4, 0.0 }
  0xda   : > { %v562_v16 = vmax.f32 %v524_v6, 0.0 }
  0xdb   : > { %v587_v28 = vmax.f32 %v585_v19, %v561_v11 }
  0xdc   : > { %v1142_v59 = vpop.f32.mrf.mxu2  ;;  %v608_v32 = vmax.f32 %v606_v24, %v562_v16 }
  0xdd   : > { %v1146_v61 = vpop.f32.mrf.mxu3  ;;  %v495_v4 = vadd.f32 %v1142_v59, %v1144_v60 }
  0xde   : > { %v476_v63 = vpop.f32.mrf.mxu0  ;;  %v544_v8 = vadd.f32 %v1146_v61, %v1148_v62 }
  0xdf   : > { %v525_v1 = vpop.f32.mrf.mxu1  ;;  %v477_v29 = vadd.f32 %v476_v63, %v1144_v60  ;;  %v577_v55 = vmax.f32 %v495_v4, 0.0 }
  0xe0   : > { %v526_v33 = vadd.f32 %v525_v1, %v1148_v62  ;;  %v578_v24 = vmax.f32 %v544_v8, 0.0 }
  0xe1   : > { %v563_v45 = vmax.f32 %v477_v29, 0.0 }
  0xe2   : > { %v564_v52 = vmax.f32 %v526_v33, 0.0 }
  0xe3   : > { %v588_v5 = vmax.f32 %v586_v57, %v563_v45 }
  0xe4   : > { %v496_v9 = vpop.f32.mrf.mxu2  ;;  %v609_v10 = vmax.f32 %v607_v0, %v564_v52 }
  0xe5   : > { %v545_v12 = vpop.f32.mrf.mxu3  ;;  %v497_v13 = vadd.f32 %v496_v9, %v1144_v60 }
  0xe6   : > { %v479_v17 = vpop.f32.mrf.mxu0  ;;  %v546_v54 = vadd.f32 %v545_v12, %v1148_v62 }
  0xe7   : > { %v480_v21 = vadd.f32 %v479_v17, %v1144_v60  ;;  %v528_v22 = vpop.f32.mrf.mxu1 }
  0xe8   : > { %v529_v26 = vadd.f32 %v528_v22, %v1148_v62  ;;  %v580_v29 = vmax.f32 %v546_v54, 0.0 }
  0xe9   : > { %v565_v30 = vmax.f32 %v480_v21, 0.0 }
  0xea   : > { %v566_v34 = vmax.f32 %v529_v26, 0.0  ;;  %v579_v26 = vmax.f32 %v497_v13, 0.0 }
  0xeb   : > { %v589_v37 = vmax.f32 %v587_v28, %v565_v30 }
  0xec   : > { %v610_v40 = vmax.f32 %v608_v32, %v566_v34  ;;  %v499_v41 = vpop.f32.mrf.mxu2 }
  0xed   : > { %v548_v46 = vpop.f32.mrf.mxu3  ;;  %v591_v50 = vmax.f32 %v589_v37, %v569_v42  ;;  %v500_v14 = vadd.f32 %v499_v41, %v1144_v60 }
  0xee   : > { %v481_v53 = vpop.f32.mrf.mxu0  ;;  %v612_v1 = vmax.f32 %v610_v40, %v570_v43  ;;  %v549_v59 = vadd.f32 %v548_v46, %v1148_v62 }
  0xef   : > { %v482_v58 = vadd.f32 %v481_v53, %v1144_v60  ;;  %v530_v63 = vpop.f32.mrf.mxu1  ;;  %v593_v15 = vmax.f32 %v591_v50, %v573_v56  ;;  %v581_v27 = vmax.f32 %v500_v14, 0.0  ;;  %v637_v53 = vlaneseq }
  0xf0   : > { %v531_v2 = vadd.f32 %v530_v63, %v1148_v62  ;;  %v614_v17 = vmax.f32 %v612_v1, %v574_v51  ;;  %v582_v30 = vmax.f32 %v549_v59, 0.0 }
  0xf1   : > { %v567_v6 = vmax.f32 %v482_v58, 0.0  ;;  %v595_v28 = vmax.f32 %v593_v15, %v577_v55  ;;  %vm639_vm2 = vcmp.lt.s32.totalorder %v637_v53, 256 }
  0xf2   : > { %v568_v11 = vmax.f32 %v531_v2, 0.0  ;;  %v616_v31 = vmax.f32 %v614_v17, %v578_v24 }
  0xf3   : > { %v590_v16 = vmax.f32 %v588_v5, %v567_v6 }
  0xf4   : > { %v611_v18 = vmax.f32 %v609_v10, %v568_v11  ;;  %v501_v19 = vpop.f32.mrf.mxu2  ;;  %v618_v38 = vmax.f32 %v616_v31, %v582_v30 }
  0xf5   : > { %v592_v21 = vmax.f32 %v590_v16, %v571_v47  ;;  %v502_v61 = vadd.f32 %v501_v19, %v1144_v60  ;;  %v550_v22 = vpop.f32.mrf.mxu3  ;;  %v597_v60 = vmax.f32 %v595_v28, %v581_v27 }
  0xf6   : > { %v613_v9 = vmax.f32 %v611_v18, %v572_v49  ;;  %v551_v25 = vadd.f32 %v550_v22, %v1148_v62 }
  0xf7   : > { %v594_v12 = vmax.f32 %v592_v21, %v575_v20  ;;  %v583_v33 = vmax.f32 %v502_v61, 0.0 }
  0xf8   : > { %v615_v32 = vmax.f32 %v613_v9, %v576_v23  ;;  %v584_v35 = vmax.f32 %v551_v25, 0.0 }
  0xf9   : > { %v596_v34 = vmax.f32 %v594_v12, %v579_v26 }
  0xfa   : > { %v617_v36 = vmax.f32 %v615_v32, %v580_v29 }
  0xfb   : > { %v598_v37 = vmax.f32 %v596_v34, %v583_v33 }
  0xfc   : > { %v619_v39 = vmax.f32 %v617_v36, %v584_v35 }
  0xfd   : > { %v599_v40 = vmax.f32 %v597_v60, %v598_v37 }
  0xfe   : > { %v620_v62 = vmax.f32 %v618_v38, %v619_v39 }
  0xff   : > { %v600_v41 = vrot.slane %v599_v40, 4 }
 0x100   : > { %v621_v42 = vrot.slane %v620_v62, 4 }
 0x101   : > { %v601_v43 = vmax.f32 %v599_v40, %v600_v41 }
 0x102   : > { %v622_v44 = vmax.f32 %v620_v62, %v621_v42 }
 0x103   : > { %v602_v45 = vrot.slane %v601_v43, 2 }
 0x104   : > { %v623_v46 = vrot.slane %v622_v44, 2 }
 0x105   : > { %v603_v48 = vmax.f32 %v601_v43, %v602_v45 }
 0x106   : > { %v624_v47 = vmax.f32 %v622_v44, %v623_v46 }
 0x107   : > { %v604_v49 = vrot.slane %v603_v48, 1 }
 0x108   : > { %v625_v52 = vrot.slane %v624_v47, 1 }
 0x109   : > { %v605_v57 = vmax.f32 %v603_v48, %v604_v49 }
 0x10a   : > { %v626_v56 = vmax.f32 %v624_v47, %v625_v52 }
 0x10c   : > { %v633_v50 = vrot.slane %v626_v56, 7 }
 0x10e   : > { %v635_v58 = vsel %vm634_vm1, %v605_v57, %v633_v50 }
 0x10f   : > { %641 = vst.msk [vmem:[%s317_s27] sm:$0x3] %vm639_vm2, %v635_v58 }
 0x110 PF: > { %s13_s18 = sadd.s32 1, %s1005_s18   ;;  %s1216_s12 = smov %s985_s13 }
 0x111   : > { %p10_p12 = scmp.ge.s32.totalorder %s13_s18, 10   ;;  %s1217_s13 = smov %s1076_s23 }
 0x112   : > { %s1218_s14 = smov %s997_s16  ;;  %s1219_s15 = smov %s1001_s17 }
 0x113   : > { %s1220_s16 = smov %s1223_s19  ;;  %s1221_s17 = smov %s1227_s20 }
 0x114   :  { %12 = sbr.rel (!%p10_p12) target bundleno = 4 (0x4), region = 119 }

// kernel: gann_forward.19
= control target key start
LH: loop header
LB: loop body
LE: loop exit
PB: predicated region body
PF: predicated region fallthrough
CT: control target
= control target key end

     0   :  { %s2012_s24 = smov 0   ;;  %s2014_s25 = smov 0   ;;  %s2516_s0 = inlined_call_operand.vmem [shape: bf16[2,128,64], index: 0, kind: input, shape index: {}]   ;;  %s2517_s1 = inlined_call_operand.vmem [shape: bf16[64,512], index: 1, kind: input, shape index: {}]   ;;  %s2518_s2 = inlined_call_operand.vmem [shape: f32[2,1,512], index: 2, kind: input, shape index: {}]   ;;  %s2519_s3 = inlined_call_operand.vmem [shape: bf16[512,128], index: 3, kind: input, shape index: {}]   ;;  %s2520_s4 = inlined_call_operand.vmem [shape: f32[1,1,128], index: 4, kind: input, shape index: {}]   ;;  %s2521_s5 = inlined_call_operand.vmem [shape: bf16[128,16], index: 5, kind: input, shape index: {}]   ;;  %s2522_s6 = inlined_call_operand.vmem [shape: f32[1,1,16], index: 6, kind: input, shape index: {}]   ;;  %s2523_s7 = inlined_call_operand.vmem [shape: f32[2,128,16], index: 7, kind: output, shape index: {}]  }
   0x1   :  { %s2016_s26 = smov 0  }
   0x2 LB: > { %s29_s27 = sadd.s32 1, %s1966_s25  ;;  %p1548_p0 = scmp.ge.s32.totalorder %s1970_s26, 1  ;;  %s1970_s26 = sphi %s2016_s26, %s17_s26   ;;  %s1966_s25 = sphi %s2014_s25, %s2525_s25   ;;  %s1962_s24 = sphi %s2012_s24, %s2524_s24  }
   0x3   : > { %p31_p1 = scmp.ge.s32.totalorder %s29_s27, 2  ;;  %p267_p2 = scmp.lt.s32.totalorder %s1970_s26, 3 }
   0x5   : > { %s2527_s27 = smov (%p31_p1, %s29_s27), 0  ;;  %p268_p3 = pnand %p1548_p0, %p267_p2 }
   0x6   : > { %p312_p4 = scmp.lt.s32.totalorder (!%p268_p3), %s1962_s24, 1 }
   0x7   : > { %271 = sbr.rel (%p268_p3) target bundleno = 608 (0x260), region = 48 }
   0xc   : > { %v1636_v0 = vld [vmem:[%s2517_s1 + $0x60] sm:$0xf]  ;;  %v1868_v1 = vld [vmem:[%s2517_s1 + $0x6c] sm:$0xf0]  ;;  %s2529_s24 = smov (!%p312_p4, %s1962_s24), 1  ;;  %vm498_vm0 = vcmask 523264  }
   0xd   : > { %v1620_v2 = vld [vmem:[%s2517_s1 + $0x40] sm:$0xf]  ;;  %v1637_v3 = vor.u32 %v1868_v1, %v1636_v0  ;;  %v1864_v4 = vld [vmem:[%s2517_s1 + $0x4c] sm:$0xf0]  ;;  %s1844_s21 = sshll.u32 %s2529_s24, 6  ;;  %v1893_v56 = vld [vmem:[%s2519_s3 + $0xb8] sm:$0xff] }
   0xe   : > { %v1621_v5 = vor.u32 %v1864_v4, %v1620_v2  ;;  %v1604_v6 = vld [vmem:[%s2517_s1 + $0x20] sm:$0xf]  ;;  %v1860_v7 = vld [vmem:[%s2517_s1 + $0x2c] sm:$0xf0]  ;;  %v1644_v11 = vld [vmem:[%s2517_s1 + $0x68] sm:$0xf]  ;;  %s2072_s13 = scalar_lea.vmem %s2516_s0, %s1844_s21 }
   0xf   : > { %527 = vmatpush.bf16.msra.mxu0 %v1637_v3  ;;  %1910 = vmatpush.bf16.msra.mxu1 %v1637_v3  ;;  %v1605_v8 = vor.u32 %v1860_v7, %v1604_v6  ;;  %v1588_v9 = vld [vmem:[%s2517_s1] sm:$0xf]  ;;  %v1856_v10 = vld [vmem:[%s2517_s1 + $0xc] sm:$0xf0]  ;;  %v1869_v12 = vld [vmem:[%s2517_s1 + $0x74] sm:$0xf0] }
  0x10   : > { %1911 = vmatpush.bf16.msra.mxu2 %v1637_v3  ;;  %1912 = vmatpush.bf16.msra.mxu3 %v1637_v3  ;;  %v1867_v13 = vld [vmem:[%s2517_s1 + $0x6c] sm:$0xf]  ;;  %v1646_v14 = vld [vmem:[%s2517_s1 + $0x78] sm:$0xf0]  ;;  %v1589_v15 = vor.u32 %v1856_v10, %v1588_v9  ;;  %v1628_v16 = vld [vmem:[%s2517_s1 + $0x48] sm:$0xf]  ;;  %v1645_v19 = vor.u32 %v1869_v12, %v1644_v11 }
  0x11   : > { %v1865_v17 = vld [vmem:[%s2517_s1 + $0x54] sm:$0xf0]  ;;  %v1866_v18 = vld [vmem:[%s2517_s1 + $0x64] sm:$0xf]  ;;  %v1649_v20 = vor.u32 %v1867_v13, %v1646_v14  ;;  %v1638_v21 = vld [vmem:[%s2517_s1 + $0x70] sm:$0xf0] }
  0x12   : > { %v1863_v22 = vld [vmem:[%s2517_s1 + $0x4c] sm:$0xf]  ;;  %v1630_v23 = vld [vmem:[%s2517_s1 + $0x58] sm:$0xf0]  ;;  %v2093_v24 = vld [vmem:[%s2072_s13] sm:$0xff]  ;;  %v1641_v28 = vor.u32 %v1866_v18, %v1638_v21  ;;  %v1629_v29 = vor.u32 %v1865_v17, %v1628_v16  ;;  %s1551_s15 = sshll.u32 %s2529_s24, 2 }
  0x13   : > { %528 = vmatpush.bf16.msra.mxu0 %v1621_v5  ;;  %1913 = vmatpush.bf16.msra.mxu1 %v1621_v5  ;;  %v2096_v25 = vld [vmem:[%s2072_s13 + $0x10] sm:$0xff]  ;;  %v2099_v26 = vld [vmem:[%s2072_s13 + $0x20] sm:$0xff]  ;;  %v1633_v30 = vor.u32 %v1863_v22, %v1630_v23  ;;  %v1612_v31 = vld [vmem:[%s2517_s1 + $0x28] sm:$0xf]  ;;  %s1845_s10 = sshll.u32 %s2529_s24, 7  ;;  %vm1428_vm1 = vcmask 130048  }
  0x14   : > { %1914 = vmatpush.bf16.msra.mxu2 %v1621_v5  ;;  %1915 = vmatpush.bf16.msra.mxu3 %v1621_v5  ;;  %v2102_v27 = vld [vmem:[%s2072_s13 + $0x30] sm:$0xff]  ;;  %v1862_v32 = vld [vmem:[%s2517_s1 + $0x44] sm:$0xf]  ;;  %v1861_v34 = vld [vmem:[%s2517_s1 + $0x34] sm:$0xf0]  ;;  %s2458_s14 = scalar_lea.vmem %s2523_s7, %s1845_s10 }
  0x15   : > { %v1622_v33 = vld [vmem:[%s2517_s1 + $0x50] sm:$0xf0]  ;;  %v1859_v35 = vld [vmem:[%s2517_s1 + $0x2c] sm:$0xf]  ;;  %v1614_v36 = vld [vmem:[%s2517_s1 + $0x38] sm:$0xf0]  ;;  %v1613_v38 = vor.u32 %v1861_v34, %v1612_v31 }
  0x16   : > { %v1625_v37 = vor.u32 %v1862_v32, %v1622_v33  ;;  %v1617_v39 = vor.u32 %v1859_v35, %v1614_v36  ;;  %v1596_v40 = vld [vmem:[%s2517_s1 + $0x8] sm:$0xf]  ;;  %v1858_v41 = vld [vmem:[%s2517_s1 + $0x24] sm:$0xf]  ;;  %v1606_v42 = vld [vmem:[%s2517_s1 + $0x30] sm:$0xf0] }
  0x17   : > { %529 = vmatpush.bf16.msra.mxu0 %v1605_v8  ;;  %1916 = vmatpush.bf16.msra.mxu1 %v1605_v8  ;;  %v1857_v43 = vld [vmem:[%s2517_s1 + $0x14] sm:$0xf0]  ;;  %v1855_v44 = vld [vmem:[%s2517_s1 + $0xc] sm:$0xf]  ;;  %v1598_v45 = vld [vmem:[%s2517_s1 + $0x18] sm:$0xf0]  ;;  %v1609_v46 = vor.u32 %v1858_v41, %v1606_v42 }
  0x18   : > { %1917 = vmatpush.bf16.msra.mxu2 %v1605_v8  ;;  %1918 = vmatpush.bf16.msra.mxu3 %v1605_v8  ;;  %v1597_v47 = vor.u32 %v1857_v43, %v1596_v40  ;;  %v1601_v48 = vor.u32 %v1855_v44, %v1598_v45  ;;  %v1854_v49 = vld [vmem:[%s2517_s1 + $0x4] sm:$0xf]  ;;  %v1590_v50 = vld [vmem:[%s2517_s1 + $0x10] sm:$0xf0]  ;;  %v1847_v52 = vld [vmem:[%s2072_s13 + $0x8] sm:$0xff] }
  0x19   : > { %v1593_v51 = vor.u32 %v1854_v49, %v1590_v50  ;;  %v1849_v53 = vld [vmem:[%s2072_s13 + $0x18] sm:$0xff]  ;;  %v2157_v54 = vld [vmem:[%s2072_s13 + $0x28] sm:$0xff]  ;;  %v1892_v59 = vld [vmem:[%s2519_s3 + $0xb0] sm:$0xff] }
  0x1a   : > { %v2160_v55 = vld [vmem:[%s2072_s13 + $0x38] sm:$0xff]  ;;  %v1900_v60 = vld [vmem:[%s2519_s3 + $0xf0] sm:$0xff]  ;;  %v1891_v62 = vld [vmem:[%s2519_s3 + $0xa8] sm:$0xff]  ;;  %s324_s13 = scalar_lea.vmem %s2518_s2, %s1551_s15 }
  0x1b   : > { %530 = vmatpush.bf16.msra.mxu0 %v1589_v15  ;;  %1919 = vmatpush.bf16.msra.mxu1 %v1589_v15  ;;  %v1901_v57 = vld [vmem:[%s2519_s3 + $0xf8] sm:$0xff]  ;;  %v1884_v61 = vld [vmem:[%s2519_s3 + $0x70] sm:$0xff]  ;;  %v1899_v63 = vld [vmem:[%s2519_s3 + $0xe8] sm:$0xff] }
  0x1c   : > { %1920 = vmatpush.bf16.msra.mxu2 %v1589_v15  ;;  %1921 = vmatpush.bf16.msra.mxu3 %v1589_v15  ;;  %v1885_v58 = vld [vmem:[%s2519_s3 + $0x78] sm:$0xff]  ;;  %v1883_v0 = vld [vmem:[%s2519_s3 + $0x68] sm:$0xff]  ;;  %v1890_v1 = vld [vmem:[%s2519_s3 + $0xa0] sm:$0xff] }
  0x1d   : > { %v1898_v2 = vld [vmem:[%s2519_s3 + $0xe0] sm:$0xff]  ;;  %v1877_v4 = vld [vmem:[%s2519_s3 + $0x38] sm:$0xff]  ;;  %v1876_v5 = vld [vmem:[%s2519_s3 + $0x30] sm:$0xff] }
  0x1e   : > { %1650 = vmatmul.msk.bf16.vlgmr.msra.gmra.mxu0 %vm498_vm0, %v2093_v24  ;;  %1652 = vmatmul.msk.bf16.vlgmr.msra.gmra.mxu1 %vm498_vm0, %v2096_v25  ;;  %v1882_v3 = vld [vmem:[%s2519_s3 + $0x60] sm:$0xff]  ;;  %v1889_v6 = vld [vmem:[%s2519_s3 + $0x98] sm:$0xff]  ;;  %v1875_v8 = vld [vmem:[%s2519_s3 + $0x28] sm:$0xff] }
  0x1f   : > { %1654 = vmatmul.msk.bf16.vlgmr.msra.gmra.mxu2 %vm498_vm0, %v2099_v26  ;;  %1656 = vmatmul.msk.bf16.vlgmr.msra.gmra.mxu3 %vm498_vm0, %v2102_v27  ;;  %v1897_v7 = vld [vmem:[%s2519_s3 + $0xd8] sm:$0xff]  ;;  %v1874_v10 = vld [vmem:[%s2519_s3 + $0x20] sm:$0xff]  ;;  %v1872_v12 = vld [vmem:[%s2519_s3 + $0x10] sm:$0xff] }
  0x20   : > { %625 = vmatpush.bf16.msrb.mxu2 %v1645_v19  ;;  %674 = vmatpush.bf16.msrb.mxu3 %v1649_v20  ;;  %v1881_v9 = vld [vmem:[%s2519_s3 + $0x58] sm:$0xff]  ;;  %v1888_v13 = vld [vmem:[%s2519_s3 + $0x90] sm:$0xff]  ;;  %v1871_v14 = vld [vmem:[%s2519_s3 + $0x8] sm:$0xff] }
  0x21   : > { %576 = vmatpush.bf16.msrb.mxu1 %v1641_v28  ;;  %1075 = vmatpush.bf16.msrb.mxu0 %v1877_v4  ;;  %v1873_v11 = vld [vmem:[%s2519_s3 + $0x18] sm:$0xff]  ;;  %v1896_v15 = vld [vmem:[%s2519_s3 + $0xd0] sm:$0xff]  ;;  %v1870_v17 = vld [vmem:[%s2519_s3] sm:$0xff] }
  0x22   : > { %v1880_v16 = vld [vmem:[%s2519_s3 + $0x50] sm:$0xff]  ;;  %v1887_v18 = vld [vmem:[%s2519_s3 + $0x88] sm:$0xff]  ;;  %v2289_v21 = vld [vmem:[%s324_s13] sm:$0xf] }
  0x23   : > { %v1895_v19 = vld [vmem:[%s2519_s3 + $0xc8] sm:$0xff]  ;;  %v1894_v36 = vld [vmem:[%s2519_s3 + $0xc0] sm:$0xff] }
  0x24   : > { %626 = vmatpush.bf16.msrb.mxu2 %v1629_v29  ;;  %675 = vmatpush.bf16.msrb.mxu3 %v1633_v30  ;;  %v1879_v20 = vld [vmem:[%s2519_s3 + $0x48] sm:$0xff] }
  0x25   : > { %577 = vmatpush.bf16.msrb.mxu1 %v1625_v37  ;;  %1076 = vmatpush.bf16.msrb.mxu0 %v1876_v5 }
  0x28   : > { %627 = vmatpush.bf16.msrb.mxu2 %v1613_v38  ;;  %676 = vmatpush.bf16.msrb.mxu3 %v1617_v39 }
  0x29   : > { %578 = vmatpush.bf16.msrb.mxu1 %v1609_v46  ;;  %1077 = vmatpush.bf16.msrb.mxu0 %v1875_v8 }
  0x2c   : > { %628 = vmatpush.bf16.msrb.mxu2 %v1597_v47  ;;  %677 = vmatpush.bf16.msrb.mxu3 %v1601_v48 }
  0x2d   : > { %579 = vmatpush.bf16.msrb.mxu1 %v1593_v51  ;;  %1078 = vmatpush.bf16.msrb.mxu0 %v1874_v10 }
  0x2e   : > { %1651 = vmatmul.msk.bf16.gmra.mxu0 %vm498_vm0, %v1847_v52  ;;  %1653 = vmatmul.msk.bf16.gmra.mxu1 %vm498_vm0, %v1849_v53 }
  0x2f   : > { %1655 = vmatmul.msk.bf16.gmra.mxu2 %vm498_vm0, %v2157_v54  ;;  %1657 = vmatmul.msk.bf16.gmra.mxu3 %vm498_vm0, %v2160_v55 }
  0x30   : > { %1173 = vmatpush.bf16.msra.mxu2 %v1893_v56  ;;  %1222 = vmatpush.bf16.msra.mxu3 %v1901_v57 }
  0x31   : > { %1124 = vmatpush.bf16.msra.mxu1 %v1885_v58  ;;  %1079 = vmatpush.bf16.msrb.mxu0 %v1873_v11 }
  0x34   : > { %1174 = vmatpush.bf16.msra.mxu2 %v1892_v59  ;;  %1223 = vmatpush.bf16.msra.mxu3 %v1900_v60 }
  0x35   : > { %1125 = vmatpush.bf16.msra.mxu1 %v1884_v61  ;;  %1080 = vmatpush.bf16.msrb.mxu0 %v1872_v12 }
  0x38   : > { %1175 = vmatpush.bf16.msra.mxu2 %v1891_v62  ;;  %1224 = vmatpush.bf16.msra.mxu3 %v1899_v63 }
  0x39   : > { %1126 = vmatpush.bf16.msra.mxu1 %v1883_v0  ;;  %1081 = vmatpush.bf16.msrb.mxu0 %v1871_v14 }
  0x3c   : > { %1176 = vmatpush.bf16.msra.mxu2 %v1890_v1  ;;  %1225 = vmatpush.bf16.msra.mxu3 %v1898_v2 }
  0x3d   : > { %1127 = vmatpush.bf16.msra.mxu1 %v1882_v3  ;;  %1082 = vmatpush.bf16.msrb.mxu0 %v1870_v17  ;;  %v2334_v3 = vperm.slane %v2289_v21, 1 }
  0x3e   : > { %1658 = vmatmul.msk.bf16.vlgmr.msrb.gmra.mxu1 %vm498_vm0, %v2093_v24 }
  0x3f   : > { %1666 = vmatmul.msk.bf16.vlgmr.msrb.gmra.mxu2 %vm498_vm0, %v2093_v24  ;;  %1674 = vmatmul.msk.bf16.vlgmr.msrb.gmra.mxu3 %vm498_vm0, %v2093_v24  ;;  %v2292_v24 = vperm.slane %v2289_v21, 0 }
  0x40   : > { %1177 = vmatpush.bf16.msra.mxu2 %v1889_v6  ;;  %1226 = vmatpush.bf16.msra.mxu3 %v1897_v7 }
  0x41   : > { %1128 = vmatpush.bf16.msra.mxu1 %v1881_v9 }
  0x44   : > { %1178 = vmatpush.bf16.msra.mxu2 %v1888_v13  ;;  %1227 = vmatpush.bf16.msra.mxu3 %v1896_v15 }
  0x45   : > { %1129 = vmatpush.bf16.msra.mxu1 %v1880_v16 }
  0x48   : > { %1179 = vmatpush.bf16.msra.mxu2 %v1887_v18  ;;  %1228 = vmatpush.bf16.msra.mxu3 %v1895_v19 }
  0x49   : > { %1130 = vmatpush.bf16.msra.mxu1 %v1879_v20  ;;  %v2345_v20 = vperm.slane %v2289_v21, 2 }
  0x4c   : > { %1229 = vmatpush.bf16.msra.mxu3 %v1894_v36 }
  0x4e   : > { %1659 = vmatmul.msk.bf16.gmra.mxu1 %vm498_vm0, %v1847_v52 }
  0x4f   : > { %1667 = vmatmul.msk.bf16.gmra.mxu2 %vm498_vm0, %v1847_v52  ;;  %1675 = vmatmul.msk.bf16.gmra.mxu3 %vm498_vm0, %v1847_v52 }
  0x5e   : > { %1660 = vmatmul.msk.bf16.gmra.mxu1 %vm498_vm0, %v2096_v25 }
  0x5f   : > { %1668 = vmatmul.msk.bf16.gmra.mxu2 %vm498_vm0, %v2096_v25  ;;  %1676 = vmatmul.msk.bf16.gmra.mxu3 %vm498_vm0, %v2096_v25  ;;  %v1886_v25 = vld [vmem:[%s2519_s3 + $0x80] sm:$0xff] }
  0x60   : > { %1180 = vmatpush.bf16.msra.mxu2 %v1886_v25 }
  0x6e   : > { %1661 = vmatmul.msk.bf16.gmra.mxu1 %vm498_vm0, %v1849_v53 }
  0x6f   : > { %1669 = vmatmul.msk.bf16.gmra.mxu2 %vm498_vm0, %v1849_v53  ;;  %1677 = vmatmul.msk.bf16.gmra.mxu3 %vm498_vm0, %v1849_v53 }
  0x7e   : > { %1662 = vmatmul.msk.bf16.gmra.mxu1 %vm498_vm0, %v2099_v26 }
  0x7f   : > { %1670 = vmatmul.msk.bf16.gmra.mxu2 %vm498_vm0, %v2099_v26  ;;  %1678 = vmatmul.msk.bf16.gmra.mxu3 %vm498_vm0, %v2099_v26 }
  0x8e   : > { %1663 = vmatmul.msk.bf16.gmra.mxu1 %vm498_vm0, %v2157_v54 }
  0x8f   : > { %1671 = vmatmul.msk.bf16.gmra.mxu2 %vm498_vm0, %v2157_v54  ;;  %1679 = vmatmul.msk.bf16.gmra.mxu3 %vm498_vm0, %v2157_v54 }
  0x9b   : > { %v532_v22 = vpop.f32.mrf.mxu0  ;;  %v542_v23 = vpop.f32.mrf.mxu1 }
  0x9c   : > { %v533_v26 = vadd.f32 %v532_v22, %v2292_v24  ;;  %v543_v10 = vadd.f32 %v542_v23, %v2292_v24  ;;  %v2348_v22 = vperm.slane %v2289_v21, 3  ;;  %v1909_v23 = vld [vmem:[%s2521_s5 + $0x38] sm:$0xff] }
  0x9d   : > { %1363 = vmatpush.bf16.msra.mxu0 %v1909_v23 }
  0x9e   : > { %1664 = vmatmul.msk.bf16.gmra.mxu1 %vm498_vm0, %v2102_v27  ;;  %v719_v34 = vmax.f32 %v533_v26, 0.0  ;;  %v735_v16 = vmax.f32 %v543_v10, 0.0 }
  0x9f   : > { %1672 = vmatmul.msk.bf16.gmra.mxu2 %vm498_vm0, %v2102_v27  ;;  %1680 = vmatmul.msk.bf16.gmra.mxu3 %vm498_vm0, %v2102_v27  ;;  %v1878_v27 = vld [vmem:[%s2519_s3 + $0x40] sm:$0xff] }
  0xa0   : > { %1131 = vmatpush.bf16.msra.mxu1 %v1878_v27 }
  0xa2   : > { %v552_v28 = vpop.f32.mrf.mxu2  ;;  %v562_v29 = vpop.f32.mrf.mxu3 }
  0xa3   : > { %v553_v30 = vadd.f32 %v552_v28, %v2292_v24  ;;  %v563_v31 = vadd.f32 %v562_v29, %v2292_v24  ;;  %v534_v32 = vpop.f32.mrf.mxu0  ;;  %v544_v33 = vpop.f32.mrf.mxu1 }
  0xa4   : > { %v535_v35 = vadd.f32 %v534_v32, %v2292_v24  ;;  %v545_v11 = vadd.f32 %v544_v33, %v2292_v24 }
  0xa5   : > { %v751_v45 = vmax.f32 %v553_v30, 0.0  ;;  %v767_v46 = vmax.f32 %v563_v31, 0.0 }
  0xa6   : > { %v723_v37 = vmax.f32 %v535_v35, 0.0  ;;  %v739_v17 = vmax.f32 %v545_v11, 0.0 }
  0xa8   : > { %v783_v38 = vpack.c.bf16 %v723_v37, %v719_v34  ;;  %v791_v28 = vpack.c.bf16 %v739_v17, %v735_v16 }
  0xaa   : > { %v554_v39 = vpop.f32.mrf.mxu2  ;;  %v564_v40 = vpop.f32.mrf.mxu3  ;;  %1083 = vmatmul.bf16.vlgmr.msrb.gmra.mxu0 %v783_v38 }
  0xab   : > { %v555_v41 = vadd.f32 %v554_v39, %v2292_v24  ;;  %v565_v42 = vadd.f32 %v564_v40, %v2292_v24  ;;  %v537_v43 = vpop.f32.mrf.mxu0  ;;  %v2315_v44 = vpop.f32.mrf.mxu1 }
  0xac   : > { %v538_v51 = vadd.f32 %v537_v43, %v2292_v24  ;;  %v548_v40 = vadd.f32 %v2315_v44, %v2292_v24 }
  0xad   : > { %v755_v47 = vmax.f32 %v555_v41, 0.0  ;;  %v771_v48 = vmax.f32 %v565_v42, 0.0 }
  0xae   : > { %1665 = vmatmul.msk.bf16.gmra.mxu1 %vm498_vm0, %v2160_v55  ;;  %v727_v59 = vmax.f32 %v538_v51, 0.0 }
  0xaf   : > { %1673 = vmatmul.msk.bf16.gmra.mxu2 %vm498_vm0, %v2160_v55  ;;  %1681 = vmatmul.msk.bf16.gmra.mxu3 %vm498_vm0, %v2160_v55  ;;  %v2323_v49 = vpack.c.bf16 %v755_v47, %v751_v45  ;;  %v2325_v50 = vpack.c.bf16 %v771_v48, %v767_v46  ;;  %v743_v47 = vmax.f32 %v548_v40, 0.0 }
  0xb2   : > { %v557_v52 = vpop.f32.mrf.mxu2  ;;  %v567_v53 = vpop.f32.mrf.mxu3 }
  0xb3   : > { %v558_v54 = vadd.f32 %v557_v52, %v2292_v24  ;;  %v568_v56 = vadd.f32 %v567_v53, %v2292_v24  ;;  %v539_v57 = vpop.f32.mrf.mxu0  ;;  %v549_v58 = vpop.f32.mrf.mxu1 }
  0xb4   : > { %v540_v60 = vadd.f32 %v539_v57, %v2292_v24  ;;  %v550_v41 = vadd.f32 %v549_v58, %v2292_v24 }
  0xb5   : > { %v759_v4 = vmax.f32 %v558_v54, 0.0  ;;  %v775_v5 = vmax.f32 %v568_v56, 0.0  ;;  %v1908_v54 = vld [vmem:[%s2521_s5 + $0x30] sm:$0xff] }
  0xb6   : > { %v731_v61 = vmax.f32 %v540_v60, 0.0  ;;  %v747_v48 = vmax.f32 %v550_v41, 0.0  ;;  %1364 = vmatpush.bf16.msra.mxu0 %v1908_v54 }
  0xb8   : > { %v787_v62 = vpack.c.bf16 %v731_v61, %v727_v59  ;;  %v795_v44 = vpack.c.bf16 %v747_v48, %v743_v47 }
  0xba   : > { %v559_v55 = vpop.f32.mrf.mxu2  ;;  %v569_v63 = vpop.f32.mrf.mxu3  ;;  %1088 = vmatmul.bf16.gmra.mxu0 %v787_v62 }
  0xbb   : > { %v560_v0 = vadd.f32 %v559_v55, %v2292_v24  ;;  %v570_v1 = vadd.f32 %v569_v63, %v2292_v24  ;;  %v581_v2 = vpop.f32.mrf.mxu1 }
  0xbc   : > { %v582_v12 = vadd.f32 %v581_v2, %v2334_v3 }
  0xbd   : > { %v763_v6 = vmax.f32 %v560_v0, 0.0  ;;  %v779_v7 = vmax.f32 %v570_v1, 0.0 }
  0xbe   : > { %v720_v18 = vmax.f32 %v582_v12, 0.0 }
  0xbf   : > { %v2336_v8 = vpack.c.bf16 %v763_v6, %v759_v4  ;;  %v2338_v9 = vpack.c.bf16 %v779_v7, %v775_v5 }
  0xc2   : > { %v630_v13 = vpop.f32.mrf.mxu2  ;;  %v679_v14 = vpop.f32.mrf.mxu3 }
  0xc3   : > { %v583_v15 = vpop.f32.mrf.mxu1  ;;  %v631_v29 = vadd.f32 %v630_v13, %v2345_v20  ;;  %v680_v30 = vadd.f32 %v679_v14, %v2348_v22 }
  0xc4   : > { %v584_v19 = vadd.f32 %v583_v15, %v2334_v3  ;;  %v1907_v15 = vld [vmem:[%s2521_s5 + $0x28] sm:$0xff] }
  0xc5   : > { %v721_v35 = vmax.f32 %v631_v29, 0.0  ;;  %v722_v36 = vmax.f32 %v680_v30, 0.0  ;;  %1365 = vmatpush.bf16.msra.mxu0 %v1907_v15 }
  0xc6   : > { %v724_v25 = vmax.f32 %v584_v19, 0.0 }
  0xc8   : > { %v784_v26 = vpack.c.bf16 %v724_v25, %v720_v18 }
  0xca   : > { %v632_v31 = vpop.f32.mrf.mxu2  ;;  %v681_v32 = vpop.f32.mrf.mxu3  ;;  %1093 = vmatmul.bf16.gmra.mxu0 %v791_v28  ;;  %1132 = vmatmul.bf16.vlgmr.msra.gmra.mxu1 %v784_v26 }
  0xcb   : > { %v633_v33 = vadd.f32 %v632_v31, %v2345_v20  ;;  %v682_v21 = vadd.f32 %v681_v32, %v2348_v22  ;;  %v586_v34 = vpop.f32.mrf.mxu1 }
  0xcc   : > { %v587_v42 = vadd.f32 %v586_v34, %v2334_v3 }
  0xcd   : > { %v725_v37 = vmax.f32 %v633_v33, 0.0  ;;  %v726_v27 = vmax.f32 %v682_v21, 0.0 }
  0xce   : > { %v728_v51 = vmax.f32 %v587_v42, 0.0 }
  0xcf   : > { %v785_v38 = vpack.c.bf16 %v725_v37, %v721_v35  ;;  %v786_v39 = vpack.c.bf16 %v726_v27, %v722_v36 }
  0xd1   : > { %1181 = vmatmul.bf16.vlgmr.msra.gmra.mxu2 %v785_v38  ;;  %1230 = vmatmul.bf16.vlgmr.msra.gmra.mxu3 %v786_v39  ;;  %v1906_v39 = vld [vmem:[%s2521_s5 + $0x20] sm:$0xff] }
  0xd2   : > { %v635_v43 = vpop.f32.mrf.mxu2  ;;  %v684_v45 = vpop.f32.mrf.mxu3  ;;  %1366 = vmatpush.bf16.msra.mxu0 %v1906_v39 }
  0xd3   : > { %v588_v46 = vpop.f32.mrf.mxu1  ;;  %v636_v24 = vadd.f32 %v635_v43, %v2345_v20  ;;  %v685_v57 = vadd.f32 %v684_v45, %v2348_v22 }
  0xd4   : > { %v589_v52 = vadd.f32 %v588_v46, %v2334_v3 }
  0xd5   : > { %v729_v55 = vmax.f32 %v636_v24, 0.0  ;;  %v730_v63 = vmax.f32 %v685_v57, 0.0 }
  0xd6   : > { %v732_v53 = vmax.f32 %v589_v52, 0.0 }
  0xd8   : > { %v788_v56 = vpack.c.bf16 %v732_v53, %v728_v51 }
  0xda   : > { %v637_v58 = vpop.f32.mrf.mxu2  ;;  %v686_v59 = vpop.f32.mrf.mxu3  ;;  %1098 = vmatmul.bf16.gmra.mxu0 %v795_v44  ;;  %1137 = vmatmul.bf16.gmra.mxu1 %v788_v56 }
  0xdb   : > { %v638_v60 = vadd.f32 %v637_v58, %v2345_v20  ;;  %v687_v61 = vadd.f32 %v686_v59, %v2348_v22  ;;  %v591_v62 = vpop.f32.mrf.mxu1 }
  0xdc   : > { %v592_v5 = vadd.f32 %v591_v62, %v2334_v3  ;;  %v1905_v62 = vld [vmem:[%s2521_s5 + $0x18] sm:$0xff] }
  0xdd   : > { %v733_v0 = vmax.f32 %v638_v60, 0.0  ;;  %v734_v1 = vmax.f32 %v687_v61, 0.0  ;;  %1367 = vmatpush.bf16.msra.mxu0 %v1905_v62 }
  0xde   : > { %v736_v11 = vmax.f32 %v592_v5, 0.0 }
  0xdf   : > { %v789_v2 = vpack.c.bf16 %v733_v0, %v729_v55  ;;  %v790_v4 = vpack.c.bf16 %v734_v1, %v730_v63 }
  0xe1   : > { %1186 = vmatmul.bf16.gmra.mxu2 %v789_v2  ;;  %1235 = vmatmul.bf16.gmra.mxu3 %v790_v4 }
  0xe2   : > { %v640_v6 = vpop.f32.mrf.mxu2  ;;  %v689_v7 = vpop.f32.mrf.mxu3 }
  0xe3   : > { %v593_v10 = vpop.f32.mrf.mxu1  ;;  %v641_v16 = vadd.f32 %v640_v6, %v2345_v20  ;;  %v690_v17 = vadd.f32 %v689_v7, %v2348_v22 }
  0xe4   : > { %v594_v12 = vadd.f32 %v593_v10, %v2334_v3 }
  0xe5   : > { %v737_v28 = vmax.f32 %v641_v16, 0.0  ;;  %v738_v29 = vmax.f32 %v690_v17, 0.0 }
  0xe6   : > { %v740_v13 = vmax.f32 %v594_v12, 0.0 }
  0xe8   : > { %v792_v14 = vpack.c.bf16 %v740_v13, %v736_v11 }
  0xea   : > { %v642_v18 = vpop.f32.mrf.mxu2  ;;  %v691_v19 = vpop.f32.mrf.mxu3  ;;  %1103 = vmatmul.bf16.gmra.mxu0 %v2323_v49  ;;  %1142 = vmatmul.bf16.gmra.mxu1 %v792_v14 }
  0xeb   : > { %v643_v25 = vadd.f32 %v642_v18, %v2345_v20  ;;  %v692_v23 = vadd.f32 %v691_v19, %v2348_v22  ;;  %v596_v26 = vpop.f32.mrf.mxu1 }
  0xec   : > { %v597_v21 = vadd.f32 %v596_v26, %v2334_v3 }
  0xed   : > { %v741_v30 = vmax.f32 %v643_v25, 0.0  ;;  %v742_v31 = vmax.f32 %v692_v23, 0.0  ;;  %v1904_v23 = vld [vmem:[%s2521_s5 + $0x10] sm:$0xff] }
  0xee   : > { %v744_v36 = vmax.f32 %v597_v21, 0.0  ;;  %1368 = vmatpush.bf16.msra.mxu0 %v1904_v23  ;;  %v2430_v23 = vld [vmem:[%s2520_s4] ss:$0 sm:$0xff] }
  0xef   : > { %v793_v32 = vpack.c.bf16 %v741_v30, %v737_v28  ;;  %v794_v33 = vpack.c.bf16 %v742_v31, %v738_v29 }
  0xf1   : > { %1191 = vmatmul.bf16.gmra.mxu2 %v793_v32  ;;  %1240 = vmatmul.bf16.gmra.mxu3 %v794_v33 }
  0xf2   : > { %v645_v34 = vpop.f32.mrf.mxu2  ;;  %v694_v35 = vpop.f32.mrf.mxu3 }
  0xf3   : > { %v598_v49 = vpop.f32.mrf.mxu1  ;;  %v646_v40 = vadd.f32 %v645_v34, %v2345_v20  ;;  %v695_v41 = vadd.f32 %v694_v35, %v2348_v22 }
  0xf4   : > { %v599_v37 = vadd.f32 %v598_v49, %v2334_v3 }
  0xf5   : > { %v745_v48 = vmax.f32 %v646_v40, 0.0  ;;  %v746_v51 = vmax.f32 %v695_v41, 0.0 }
  0xf6   : > { %v748_v27 = vmax.f32 %v599_v37, 0.0 }
  0xf8   : > { %v796_v38 = vpack.c.bf16 %v748_v27, %v744_v36 }
  0xfa   : > { %v647_v42 = vpop.f32.mrf.mxu2  ;;  %v696_v43 = vpop.f32.mrf.mxu3  ;;  %1108 = vmatmul.bf16.gmra.mxu0 %v2336_v8  ;;  %1147 = vmatmul.bf16.gmra.mxu1 %v796_v38 }
  0xfb   : > { %v648_v45 = vadd.f32 %v647_v42, %v2345_v20  ;;  %v697_v46 = vadd.f32 %v696_v43, %v2348_v22  ;;  %v601_v47 = vpop.f32.mrf.mxu1 }
  0xfc   : > { %v602_v56 = vadd.f32 %v601_v47, %v2334_v3 }
  0xfd   : > { %v749_v52 = vmax.f32 %v648_v45, 0.0  ;;  %v750_v53 = vmax.f32 %v697_v46, 0.0 }
  0xfe   : > { %v752_v58 = vmax.f32 %v602_v56, 0.0 }
  0xff   : > { %v797_v54 = vpack.c.bf16 %v749_v52, %v745_v48  ;;  %v798_v44 = vpack.c.bf16 %v750_v53, %v746_v51 }
 0x101   : > { %1196 = vmatmul.bf16.gmra.mxu2 %v797_v54  ;;  %1245 = vmatmul.bf16.gmra.mxu3 %v798_v44 }
 0x102   : > { %v650_v24 = vpop.f32.mrf.mxu2  ;;  %v699_v57 = vpop.f32.mrf.mxu3 }
 0x103   : > { %v603_v8 = vpop.f32.mrf.mxu1  ;;  %v651_v55 = vadd.f32 %v650_v24, %v2345_v20  ;;  %v700_v63 = vadd.f32 %v699_v57, %v2348_v22 }
 0x104   : > { %v604_v59 = vadd.f32 %v603_v8, %v2334_v3 }
 0x105   : > { %v753_v6 = vmax.f32 %v651_v55, 0.0  ;;  %v754_v7 = vmax.f32 %v700_v63, 0.0 }
 0x106   : > { %v756_v60 = vmax.f32 %v604_v59, 0.0 }
 0x108   : > { %v800_v61 = vpack.c.bf16 %v756_v60, %v752_v58 }
 0x10a   : > { %v652_v0 = vpop.f32.mrf.mxu2  ;;  %v701_v1 = vpop.f32.mrf.mxu3  ;;  %1113 = vmatmul.bf16.gmra.mxu0 %v2325_v50  ;;  %1152 = vmatmul.bf16.gmra.mxu1 %v800_v61 }
 0x10b   : > { %v653_v2 = vadd.f32 %v652_v0, %v2345_v20  ;;  %v702_v4 = vadd.f32 %v701_v1, %v2348_v22  ;;  %v606_v5 = vpop.f32.mrf.mxu1 }
 0x10c   : > { %v607_v14 = vadd.f32 %v606_v5, %v2334_v3 }
 0x10d   : > { %v757_v10 = vmax.f32 %v653_v2, 0.0  ;;  %v758_v11 = vmax.f32 %v702_v4, 0.0 }
 0x10e   : > { %v760_v17 = vmax.f32 %v607_v14, 0.0 }
 0x10f   : > { %v801_v12 = vpack.c.bf16 %v757_v10, %v753_v6  ;;  %v802_v13 = vpack.c.bf16 %v758_v11, %v754_v7  ;;  %v1902_v7 = vld [vmem:[%s2521_s5] sm:$0xff] }
 0x111   : > { %1201 = vmatmul.bf16.gmra.mxu2 %v801_v12  ;;  %1250 = vmatmul.bf16.gmra.mxu3 %v802_v13 }
 0x112   : > { %v655_v15 = vpop.f32.mrf.mxu2  ;;  %v704_v16 = vpop.f32.mrf.mxu3 }
 0x113   : > { %v608_v50 = vpop.f32.mrf.mxu1  ;;  %v656_v26 = vadd.f32 %v655_v15, %v2345_v20  ;;  %v705_v28 = vadd.f32 %v704_v16, %v2348_v22 }
 0x114   : > { %v609_v18 = vadd.f32 %v608_v50, %v2334_v3 }
 0x115   : > { %v761_v21 = vmax.f32 %v656_v26, 0.0  ;;  %v762_v34 = vmax.f32 %v705_v28, 0.0 }
 0x116   : > { %v764_v19 = vmax.f32 %v609_v18, 0.0 }
 0x118   : > { %v804_v25 = vpack.c.bf16 %v764_v19, %v760_v17 }
 0x11a   : > { %v657_v29 = vpop.f32.mrf.mxu2  ;;  %v706_v30 = vpop.f32.mrf.mxu3  ;;  %1118 = vmatmul.bf16.gmra.mxu0 %v2338_v9  ;;  %1157 = vmatmul.bf16.gmra.mxu1 %v804_v25  ;;  %v1903_v9 = vld [vmem:[%s2521_s5 + $0x8] sm:$0xff] }
 0x11b   : > { %v658_v31 = vadd.f32 %v657_v29, %v2345_v20  ;;  %v707_v32 = vadd.f32 %v706_v30, %v2348_v22  ;;  %v611_v33 = vpop.f32.mrf.mxu1  ;;  %1369 = vmatpush.bf16.msra.mxu0 %v1903_v9 }
 0x11c   : > { %v612_v27 = vadd.f32 %v611_v33, %v2334_v3 }
 0x11d   : > { %v765_v35 = vmax.f32 %v658_v31, 0.0  ;;  %v766_v49 = vmax.f32 %v707_v32, 0.0 }
 0x11e   : > { %v768_v41 = vmax.f32 %v612_v27, 0.0 }
 0x11f   : > { %v805_v36 = vpack.c.bf16 %v765_v35, %v761_v21  ;;  %v806_v37 = vpack.c.bf16 %v766_v49, %v762_v34  ;;  %1370 = vmatpush.bf16.msra.mxu0 %v1902_v7 }
 0x121   : > { %1206 = vmatmul.bf16.gmra.mxu2 %v805_v36  ;;  %1255 = vmatmul.bf16.gmra.mxu3 %v806_v37 }
 0x122   : > { %v660_v38 = vpop.f32.mrf.mxu2  ;;  %v709_v39 = vpop.f32.mrf.mxu3 }
 0x123   : > { %v613_v40 = vpop.f32.mrf.mxu1  ;;  %v661_v46 = vadd.f32 %v660_v38, %v2345_v20  ;;  %v710_v47 = vadd.f32 %v709_v39, %v2348_v22 }
 0x124   : > { %v614_v42 = vadd.f32 %v613_v40, %v2334_v3 }
 0x125   : > { %v769_v44 = vmax.f32 %v661_v46, 0.0  ;;  %v770_v56 = vmax.f32 %v710_v47, 0.0 }
 0x126   : > { %v772_v43 = vmax.f32 %v614_v42, 0.0 }
 0x127   : > { %v1084_v8 = vpop.f32.mrf.mxu0 }
 0x128   : > { %v808_v45 = vpack.c.bf16 %v772_v43, %v768_v41 }
 0x12a   : > { %v662_v48 = vpop.f32.mrf.mxu2  ;;  %v711_v51 = vpop.f32.mrf.mxu3  ;;  %1162 = vmatmul.bf16.gmra.mxu1 %v808_v45 }
 0x12b   : > { %v663_v52 = vadd.f32 %v662_v48, %v2345_v20  ;;  %v712_v53 = vadd.f32 %v711_v51, %v2348_v22  ;;  %v616_v54 = vpop.f32.mrf.mxu1 }
 0x12c   : > { %v617_v60 = vadd.f32 %v616_v54, %v2334_v3 }
 0x12d   : > { %v773_v24 = vmax.f32 %v663_v52, 0.0  ;;  %v774_v57 = vmax.f32 %v712_v53, 0.0 }
 0x12e   : > { %v776_v63 = vmax.f32 %v617_v60, 0.0 }
 0x12f   : > { %v809_v58 = vpack.c.bf16 %v773_v24, %v769_v44  ;;  %v810_v59 = vpack.c.bf16 %v774_v57, %v770_v56  ;;  %v1086_v4 = vpop.f32.mrf.mxu0 }
 0x130   : > { %v1087_v32 = vadd.f32 %v2430_v23, %v1086_v4 }
 0x131   : > { %1211 = vmatmul.bf16.gmra.mxu2 %v809_v58  ;;  %1260 = vmatmul.bf16.gmra.mxu3 %v810_v59 }
 0x132   : > { %v665_v61 = vpop.f32.mrf.mxu2  ;;  %v714_v62 = vpop.f32.mrf.mxu3 }
 0x133   : > { %v618_v55 = vpop.f32.mrf.mxu1  ;;  %v666_v5 = vadd.f32 %v665_v61, %v2345_v20  ;;  %v715_v6 = vadd.f32 %v714_v62, %v2348_v22 }
 0x134   : > { %v619_v0 = vadd.f32 %v618_v55, %v2334_v3 }
 0x135   : > { %v777_v3 = vmax.f32 %v666_v5, 0.0  ;;  %v778_v14 = vmax.f32 %v715_v6, 0.0 }
 0x136   : > { %v780_v1 = vmax.f32 %v619_v0, 0.0 }
 0x137   : > { %v1089_v18 = vpop.f32.mrf.mxu0 }
 0x138   : > { %v812_v2 = vpack.c.bf16 %v780_v1, %v776_v63  ;;  %v1090_v40 = vadd.f32 %v2430_v23, %v1089_v18 }
 0x13a   : > { %v667_v10 = vpop.f32.mrf.mxu2  ;;  %v716_v11 = vpop.f32.mrf.mxu3  ;;  %1167 = vmatmul.bf16.gmra.mxu1 %v812_v2 }
 0x13b   : > { %v668_v12 = vadd.f32 %v667_v10, %v2345_v20  ;;  %v717_v13 = vadd.f32 %v716_v11, %v2348_v22  ;;  %v1085_v22 = vadd.f32 %v2430_v23, %v1084_v8 }
 0x13d   : > { %v781_v15 = vmax.f32 %v668_v12, 0.0  ;;  %v782_v16 = vmax.f32 %v717_v13, 0.0 }
 0x13f   : > { %v813_v50 = vpack.c.bf16 %v781_v15, %v777_v3  ;;  %v814_v17 = vpack.c.bf16 %v782_v16, %v778_v14  ;;  %v1091_v25 = vpop.f32.mrf.mxu0 }
 0x140   : > { %v1092_v47 = vadd.f32 %v2430_v23, %v1091_v25 }
 0x141   : > { %1216 = vmatmul.bf16.gmra.mxu2 %v813_v50  ;;  %1265 = vmatmul.bf16.gmra.mxu3 %v814_v17 }
 0x147   : > { %v1133_v19 = vpop.f32.mrf.mxu1  ;;  %v1094_v29 = vpop.f32.mrf.mxu0 }
 0x148   : > { %v1134_v30 = vadd.f32 %v1133_v19, %v1085_v22  ;;  %v1095_v62 = vadd.f32 %v2430_v23, %v1094_v29 }
 0x14f   : > { %v1135_v20 = vpop.f32.mrf.mxu1  ;;  %v1096_v9 = vpop.f32.mrf.mxu0 }
 0x150   : > { %v1136_v21 = vadd.f32 %v1135_v20, %v1087_v32  ;;  %v1097_v1 = vadd.f32 %v2430_v23, %v1096_v9 }
 0x154   : > { %v1182_v26 = vpop.f32.mrf.mxu2  ;;  %v1231_v28 = vpop.f32.mrf.mxu3 }
 0x155   : > { %v1183_v33 = vadd.f32 %v1182_v26, %v1134_v30 }
 0x157   : > { %v1138_v31 = vpop.f32.mrf.mxu1  ;;  %v1232_v49 = vadd.f32 %v1231_v28, %v1183_v33  ;;  %v1099_v51 = vpop.f32.mrf.mxu0 }
 0x158   : > { %v1139_v45 = vadd.f32 %v1138_v31, %v1090_v40  ;;  %v1100_v17 = vadd.f32 %v2430_v23, %v1099_v51 }
 0x159   : > { %v1271_v38 = vmax.f32 %v1232_v49, 0.0 }
 0x15c   : > { %v1184_v34 = vpop.f32.mrf.mxu2  ;;  %v1233_v35 = vpop.f32.mrf.mxu3 }
 0x15d   : > { %v1185_v36 = vadd.f32 %v1184_v34, %v1136_v21 }
 0x15f   : > { %v1234_v37 = vadd.f32 %v1233_v35, %v1185_v36  ;;  %v1140_v27 = vpop.f32.mrf.mxu1  ;;  %v1101_v55 = vpop.f32.mrf.mxu0 }
 0x160   : > { %v1141_v52 = vadd.f32 %v1140_v27, %v1092_v47  ;;  %v1102_v25 = vadd.f32 %v2430_v23, %v1101_v55 }
 0x161   : > { %v1272_v39 = vmax.f32 %v1234_v37, 0.0 }
 0x163   : > { %v1287_v41 = vpack.c.bf16 %v1272_v39, %v1271_v38 }
 0x164   : > { %v1187_v42 = vpop.f32.mrf.mxu2  ;;  %v1236_v43 = vpop.f32.mrf.mxu3 }
 0x165   : > { %1371 = vmatmul.bf16.vlgmr.msra.gmra.mxu0 %v1287_v41  ;;  %v1188_v48 = vadd.f32 %v1187_v42, %v1139_v45 }
 0x167   : > { %v1143_v46 = vpop.f32.mrf.mxu1  ;;  %v1237_v44 = vadd.f32 %v1236_v43, %v1188_v48  ;;  %v1104_v11 = vpop.f32.mrf.mxu0 }
 0x168   : > { %v1144_v63 = vadd.f32 %v1143_v46, %v1095_v62  ;;  %v1105_v27 = vadd.f32 %v2430_v23, %v1104_v11 }
 0x169   : > { %v1273_v8 = vmax.f32 %v1237_v44, 0.0 }
 0x16c   : > { %v1189_v53 = vpop.f32.mrf.mxu2  ;;  %v1238_v54 = vpop.f32.mrf.mxu3 }
 0x16d   : > { %v1190_v56 = vadd.f32 %v1189_v53, %v1141_v52 }
 0x16f   : > { %v1239_v24 = vadd.f32 %v1238_v54, %v1190_v56  ;;  %v1145_v57 = vpop.f32.mrf.mxu1  ;;  %v1106_v20 = vpop.f32.mrf.mxu0 }
 0x170   : > { %v1146_v4 = vadd.f32 %v1145_v57, %v1097_v1  ;;  %v1107_v39 = vadd.f32 %v2430_v23, %v1106_v20 }
 0x171   : > { %v1274_v58 = vmax.f32 %v1239_v24, 0.0 }
 0x173   : > { %v1288_v59 = vpack.c.bf16 %v1274_v58, %v1273_v8 }
 0x174   : > { %v1192_v60 = vpop.f32.mrf.mxu2  ;;  %v1241_v61 = vpop.f32.mrf.mxu3 }
 0x175   : > { %1376 = vmatmul.bf16.gmra.mxu0 %v1288_v59  ;;  %v1193_v2 = vadd.f32 %v1192_v60, %v1144_v63 }
 0x177   : > { %v1148_v0 = vpop.f32.mrf.mxu1  ;;  %v1242_v7 = vadd.f32 %v1241_v61, %v1193_v2  ;;  %v1109_v35 = vpop.f32.mrf.mxu0 }
 0x178   : > { %v1149_v18 = vadd.f32 %v1148_v0, %v1100_v17  ;;  %v1110_v24 = vadd.f32 %v2430_v23, %v1109_v35 }
 0x179   : > { %v1275_v3 = vmax.f32 %v1242_v7, 0.0 }
 0x17c   : > { %v1194_v5 = vpop.f32.mrf.mxu2  ;;  %v1243_v6 = vpop.f32.mrf.mxu3 }
 0x17d   : > { %v1195_v10 = vadd.f32 %v1194_v5, %v1146_v4 }
 0x17f   : > { %v1244_v12 = vadd.f32 %v1243_v6, %v1195_v10  ;;  %v1150_v13 = vpop.f32.mrf.mxu1  ;;  %v1111_v45 = vpop.f32.mrf.mxu0 }
 0x180   : > { %v1151_v26 = vadd.f32 %v1150_v13, %v1102_v25  ;;  %v1112_v58 = vadd.f32 %v2430_v23, %v1111_v45 }
 0x181   : > { %v1276_v14 = vmax.f32 %v1244_v12, 0.0 }
 0x183   : > { %v1289_v15 = vpack.c.bf16 %v1276_v14, %v1275_v3 }
 0x184   : > { %v1197_v16 = vpop.f32.mrf.mxu2  ;;  %v1246_v50 = vpop.f32.mrf.mxu3 }
 0x185   : > { %1381 = vmatmul.bf16.gmra.mxu0 %v1289_v15  ;;  %v1198_v22 = vadd.f32 %v1197_v16, %v1149_v18 }
 0x187   : > { %v1153_v19 = vpop.f32.mrf.mxu1  ;;  %v1247_v30 = vadd.f32 %v1246_v50, %v1198_v22  ;;  %v1114_v57 = vpop.f32.mrf.mxu0 }
 0x188   : > { %v1154_v9 = vadd.f32 %v1153_v19, %v1105_v27  ;;  %v1115_v12 = vadd.f32 %v2430_v23, %v1114_v57 }
 0x189   : > { %v1277_v21 = vmax.f32 %v1247_v30, 0.0 }
 0x18c   : > { %v1199_v28 = vpop.f32.mrf.mxu2  ;;  %v1248_v29 = vpop.f32.mrf.mxu3 }
 0x18d   : > { %v1200_v31 = vadd.f32 %v1199_v28, %v1151_v26 }
 0x18f   : > { %v1249_v32 = vadd.f32 %v1248_v29, %v1200_v31  ;;  %v1155_v33 = vpop.f32.mrf.mxu1  ;;  %v1116_v2 = vpop.f32.mrf.mxu0 }
 0x190   : > { %v1156_v41 = vadd.f32 %v1155_v33, %v1107_v39  ;;  %v1117_v3 = vadd.f32 %v2430_v23, %v1116_v2 }
 0x191   : > { %v1278_v34 = vmax.f32 %v1249_v32, 0.0 }
 0x193   : > { %v1290_v49 = vpack.c.bf16 %v1278_v34, %v1277_v21 }
 0x194   : > { %v1202_v36 = vpop.f32.mrf.mxu2  ;;  %v1251_v37 = vpop.f32.mrf.mxu3 }
 0x195   : > { %1386 = vmatmul.bf16.gmra.mxu0 %v1290_v49  ;;  %v1203_v40 = vadd.f32 %v1202_v36, %v1154_v9 }
 0x197   : > { %v1158_v38 = vpop.f32.mrf.mxu1  ;;  %v1252_v46 = vadd.f32 %v1251_v37, %v1203_v40  ;;  %v1119_v15 = vpop.f32.mrf.mxu0 }
 0x198   : > { %v1159_v8 = vadd.f32 %v1158_v38, %v1110_v24  ;;  %v1120_v31 = vadd.f32 %v2430_v23, %v1119_v15 }
 0x199   : > { %v1279_v52 = vmax.f32 %v1252_v46, 0.0 }
 0x19c   : > { %v1204_v42 = vpop.f32.mrf.mxu2  ;;  %v1253_v43 = vpop.f32.mrf.mxu3 }
 0x19d   : > { %v1205_v47 = vadd.f32 %v1204_v42, %v1156_v41  ;;  %v2451_v42 = vld [vmem:[%s2522_s6] ss:$0 sm:$0xff] }
 0x19f   : > { %v1254_v48 = vadd.f32 %v1253_v43, %v1205_v47  ;;  %v1160_v51 = vpop.f32.mrf.mxu1  ;;  %v1121_v32 = vpop.f32.mrf.mxu0 }
 0x1a0   : > { %v1161_v61 = vadd.f32 %v1160_v51, %v1112_v58  ;;  %v1122_v34 = vadd.f32 %v2430_v23, %v1121_v32 }
 0x1a1   : > { %v1280_v53 = vmax.f32 %v1254_v48, 0.0 }
 0x1a3   : > { %v1291_v54 = vpack.c.bf16 %v1280_v53, %v1279_v52 }
 0x1a4   : > { %v1207_v44 = vpop.f32.mrf.mxu2  ;;  %v1256_v56 = vpop.f32.mrf.mxu3 }
 0x1a5   : > { %1391 = vmatmul.bf16.gmra.mxu0 %v1291_v54  ;;  %v1208_v59 = vadd.f32 %v1207_v44, %v1159_v8 }
 0x1a7   : > { %v1163_v60 = vpop.f32.mrf.mxu1  ;;  %v1257_v63 = vadd.f32 %v1256_v56, %v1208_v59 }
 0x1a8   : > { %v1164_v13 = vadd.f32 %v1163_v60, %v1115_v12 }
 0x1a9   : > { %v1281_v4 = vmax.f32 %v1257_v63, 0.0 }
 0x1ac   : > { %v1209_v62 = vpop.f32.mrf.mxu2  ;;  %v1258_v55 = vpop.f32.mrf.mxu3 }
 0x1ad   : > { %v1210_v0 = vadd.f32 %v1209_v62, %v1161_v61 }
 0x1af   : > { %v1259_v1 = vadd.f32 %v1258_v55, %v1210_v0  ;;  %v1165_v7 = vpop.f32.mrf.mxu1 }
 0x1b0   : > { %v1166_v16 = vadd.f32 %v1165_v7, %v1117_v3 }
 0x1b1   : > { %v1282_v5 = vmax.f32 %v1259_v1, 0.0 }
 0x1b3   : > { %v1292_v6 = vpack.c.bf16 %v1282_v5, %v1281_v4 }
 0x1b4   : > { %v1212_v10 = vpop.f32.mrf.mxu2  ;;  %v1261_v11 = vpop.f32.mrf.mxu3 }
 0x1b5   : > { %1396 = vmatmul.bf16.gmra.mxu0 %v1292_v6  ;;  %v1213_v14 = vadd.f32 %v1212_v10, %v1164_v13 }
 0x1b7   : > { %v1262_v18 = vadd.f32 %v1261_v11, %v1213_v14  ;;  %v1168_v25 = vpop.f32.mrf.mxu1 }
 0x1b8   : > { %v1169_v33 = vadd.f32 %v1168_v25, %v1120_v31 }
 0x1b9   : > { %v1283_v22 = vmax.f32 %v1262_v18, 0.0 }
 0x1bc   : > { %v1214_v50 = vpop.f32.mrf.mxu2  ;;  %v1263_v17 = vpop.f32.mrf.mxu3 }
 0x1bd   : > { %v1215_v19 = vadd.f32 %v1214_v50, %v1166_v16 }
 0x1bf   : > { %v1264_v20 = vadd.f32 %v1263_v17, %v1215_v19  ;;  %v1170_v21 = vpop.f32.mrf.mxu1 }
 0x1c0   : > { %v1171_v49 = vadd.f32 %v1170_v21, %v1122_v34 }
 0x1c1   : > { %v1284_v26 = vmax.f32 %v1264_v20, 0.0 }
 0x1c3   : > { %v1293_v28 = vpack.c.bf16 %v1284_v26, %v1283_v22 }
 0x1c4   : > { %v1217_v29 = vpop.f32.mrf.mxu2  ;;  %v1266_v30 = vpop.f32.mrf.mxu3 }
 0x1c5   : > { %1401 = vmatmul.bf16.gmra.mxu0 %v1293_v28  ;;  %v1218_v35 = vadd.f32 %v1217_v29, %v1169_v33 }
 0x1c7   : > { %v1267_v37 = vadd.f32 %v1266_v30, %v1218_v35 }
 0x1c9   : > { %v1285_v39 = vmax.f32 %v1267_v37, 0.0 }
 0x1cc   : > { %v1219_v36 = vpop.f32.mrf.mxu2  ;;  %v1268_v9 = vpop.f32.mrf.mxu3 }
 0x1cd   : > { %v1220_v27 = vadd.f32 %v1219_v36, %v1171_v49 }
 0x1cf   : > { %v1269_v38 = vadd.f32 %v1268_v9, %v1220_v27 }
 0x1d1   : > { %v1286_v40 = vmax.f32 %v1269_v38, 0.0 }
 0x1d3   : > { %v1294_v41 = vpack.c.bf16 %v1286_v40, %v1285_v39 }
 0x1d5   : > { %1406 = vmatmul.bf16.gmra.mxu0 %v1294_v41 }
 0x1e2   : > { %v1372_v43 = vpop.f32.mrf.mxu0 }
 0x1e3   : > { %v1373_v23 = vadd.f32 %v2451_v42, %v1372_v43 }
 0x1e5   : > { %v1412_v45 = vmax.f32 %v1373_v23, 0.0 }
 0x1e7   : > { %1429 = vst.msk [vmem:[%s2458_s14] sm:$0xff] %vm1428_vm1, %v1412_v45 }
 0x1ea   : > { %v1374_v46 = vpop.f32.mrf.mxu0 }
 0x1eb   : > { %v1375_v47 = vadd.f32 %v2451_v42, %v1374_v46 }
 0x1ed   : > { %v1413_v48 = vmax.f32 %v1375_v47, 0.0 }
 0x1ef   : > { %1430 = vst.msk [vmem:[%s2458_s14 + $0x8] sm:$0xff] %vm1428_vm1, %v1413_v48 }
 0x1f2   : > { %v1377_v51 = vpop.f32.mrf.mxu0 }
 0x1f3   : > { %v1378_v52 = vadd.f32 %v2451_v42, %v1377_v51 }
 0x1f5   : > { %v1414_v53 = vmax.f32 %v1378_v52, 0.0 }
 0x1f7   : > { %1431 = vst.msk [vmem:[%s2458_s14 + $0x10] sm:$0xff] %vm1428_vm1, %v1414_v53 }
 0x1fa   : > { %v1379_v54 = vpop.f32.mrf.mxu0 }
 0x1fb   : > { %v1380_v44 = vadd.f32 %v2451_v42, %v1379_v54 }
 0x1fd   : > { %v1415_v56 = vmax.f32 %v1380_v44, 0.0 }
 0x1ff   : > { %1432 = vst.msk [vmem:[%s2458_s14 + $0x18] sm:$0xff] %vm1428_vm1, %v1415_v56 }
 0x202   : > { %v1382_v24 = vpop.f32.mrf.mxu0 }
 0x203   : > { %v1383_v57 = vadd.f32 %v2451_v42, %v1382_v24 }
 0x205   : > { %v1416_v8 = vmax.f32 %v1383_v57, 0.0 }
 0x207   : > { %1433 = vst.msk [vmem:[%s2458_s14 + $0x20] sm:$0xff] %vm1428_vm1, %v1416_v8 }
 0x20a   : > { %v1384_v58 = vpop.f32.mrf.mxu0 }
 0x20b   : > { %v1385_v59 = vadd.f32 %v2451_v42, %v1384_v58 }
 0x20d   : > { %v1417_v60 = vmax.f32 %v1385_v59, 0.0 }
 0x20f   : > { %1434 = vst.msk [vmem:[%s2458_s14 + $0x28] sm:$0xff] %vm1428_vm1, %v1417_v60 }
 0x212   : > { %v1387_v61 = vpop.f32.mrf.mxu0 }
 0x213   : > { %v1388_v62 = vadd.f32 %v2451_v42, %v1387_v61 }
 0x215   : > { %v1418_v55 = vmax.f32 %v1388_v62, 0.0 }
 0x217   : > { %1435 = vst.msk [vmem:[%s2458_s14 + $0x30] sm:$0xff] %vm1428_vm1, %v1418_v55 }
 0x21a   : > { %v1389_v63 = vpop.f32.mrf.mxu0 }
 0x21b   : > { %v1390_v0 = vadd.f32 %v2451_v42, %v1389_v63 }
 0x21d   : > { %v1419_v1 = vmax.f32 %v1390_v0, 0.0 }
 0x21f   : > { %1436 = vst.msk [vmem:[%s2458_s14 + $0x38] sm:$0xff] %vm1428_vm1, %v1419_v1 }
 0x222   : > { %v1392_v2 = vpop.f32.mrf.mxu0 }
 0x223   : > { %v1393_v4 = vadd.f32 %v2451_v42, %v1392_v2 }
 0x225   : > { %v1420_v5 = vmax.f32 %v1393_v4, 0.0 }
 0x227   : > { %1437 = vst.msk [vmem:[%s2458_s14 + $0x40] sm:$0xff] %vm1428_vm1, %v1420_v5 }
 0x22a   : > { %v1394_v6 = vpop.f32.mrf.mxu0 }
 0x22b   : > { %v1395_v7 = vadd.f32 %v2451_v42, %v1394_v6 }
 0x22d   : > { %v1421_v10 = vmax.f32 %v1395_v7, 0.0 }
 0x22f   : > { %1438 = vst.msk [vmem:[%s2458_s14 + $0x48] sm:$0xff] %vm1428_vm1, %v1421_v10 }
 0x232   : > { %v1397_v11 = vpop.f32.mrf.mxu0 }
 0x233   : > { %v1398_v12 = vadd.f32 %v2451_v42, %v1397_v11 }
 0x235   : > { %v1422_v13 = vmax.f32 %v1398_v12, 0.0 }
 0x237   : > { %1439 = vst.msk [vmem:[%s2458_s14 + $0x50] sm:$0xff] %vm1428_vm1, %v1422_v13 }
 0x23a   : > { %v1399_v3 = vpop.f32.mrf.mxu0 }
 0x23b   : > { %v1400_v14 = vadd.f32 %v2451_v42, %v1399_v3 }
 0x23d   : > { %v1423_v15 = vmax.f32 %v1400_v14, 0.0 }
 0x23f   : > { %1440 = vst.msk [vmem:[%s2458_s14 + $0x58] sm:$0xff] %vm1428_vm1, %v1423_v15 }
 0x242   : > { %v1402_v16 = vpop.f32.mrf.mxu0 }
 0x243   : > { %v1403_v50 = vadd.f32 %v2451_v42, %v1402_v16 }
 0x245   : > { %v1424_v17 = vmax.f32 %v1403_v50, 0.0 }
 0x247   : > { %1441 = vst.msk [vmem:[%s2458_s14 + $0x60] sm:$0xff] %vm1428_vm1, %v1424_v17 }
 0x24a   : > { %v1404_v18 = vpop.f32.mrf.mxu0 }
 0x24b   : > { %v1405_v19 = vadd.f32 %v2451_v42, %v1404_v18 }
 0x24d   : > { %v1425_v25 = vmax.f32 %v1405_v19, 0.0 }
 0x24f   : > { %1442 = vst.msk [vmem:[%s2458_s14 + $0x68] sm:$0xff] %vm1428_vm1, %v1425_v25 }
 0x252   : > { %v1407_v20 = vpop.f32.mrf.mxu0 }
 0x253   : > { %v1408_v22 = vadd.f32 %v2451_v42, %v1407_v20 }
 0x255   : > { %v1426_v26 = vmax.f32 %v1408_v22, 0.0 }
 0x257   : > { %1443 = vst.msk [vmem:[%s2458_s14 + $0x70] sm:$0xff] %vm1428_vm1, %v1426_v26 }
 0x25a   : > { %v1409_v28 = vpop.f32.mrf.mxu0 }
 0x25b   : > { %v1410_v29 = vadd.f32 %v2451_v42, %v1409_v28 }
 0x25d   : > { %v1427_v30 = vmax.f32 %v1410_v29, 0.0 }
 0x25f   : > { %1444 = vst.msk [vmem:[%s2458_s14 + $0x78] sm:$0xff] %vm1428_vm1, %v1427_v30 }
 0x260 PF: > { %s17_s26 = sadd.s32 1, %s1970_s26   ;;  %s2524_s24 = smov %s1966_s25 }
 0x261   : > { %p14_p5 = scmp.ge.s32.totalorder %s17_s26, 4   ;;  %s2525_s25 = smov %s2527_s27 }
 0x263   :  { %16 = sbr.rel (!%p14_p5) target bundleno = 2 (0x2), region = 81 }

</bundles_post_ra>
